<compile_context>
chip_gen: v7x
topology: tpu7x:2x2x1
jax: 0.10.0
libtpu: 0.0.40
codegen_flags: <defaults>
</compile_context>

<pallas_src>
import jax
import jax.numpy as jnp
from jax.experimental import pallas as pl
from jax.experimental.pallas import tpu as pltpu

_EPS = 1e-12  # eps used by F.normalize(..., p=1) in the torch model


# --------------------------------------------------------------------------------------
# Kernel
# --------------------------------------------------------------------------------------
def node_update_kernel(
    # data (per batch block)
    uk_ref, uc_ref, rl_ref, e_ref, et_ref, erc_ref,
    # parameters (grid-invariant)
    fu_w1_ref, fu_b1_ref, fu_w2_ref, fu_b2_ref,
    f_w1_ref, f_b1_ref, f_w2_ref, f_b2_ref,
    fc_w1_ref, fc_b1_ref, fc_w2_ref, fc_b2_ref,
    eu_w1_ref, eu_b1_ref, eu_w2t_ref, eu_b2_ref,
    # outputs
    tmp_uk_ref, tmp_uc_ref, tmp_rl_ref, logit_ref,
):
    f32, bf16 = jnp.float32, jnp.bfloat16

    uk = uk_ref[...]      # (TB, K, D) f32
    uc = uc_ref[...]      # (TB, D)
    rl = rl_ref[...]      # (TB, L, D)
    e = e_ref[...]        # (TB, L, K)
    et = et_ref[...]      # (TB, K, L)   == e transposed (done in the wrapper)
    erc = erc_ref[...]    # (TB, K)

    TB, K, D = uk.shape
    L = rl.shape[1]
    ch = fu_w2_ref.shape[1]
    R, RL = TB * K, TB * L

    def mm(a, w_ref):     # bf16 MXU matmul, f32 accumulate
        return jnp.dot(a.astype(bf16), w_ref[...], preferred_element_type=f32)

    # ---------- neighbour aggregations on the VPU (exact f32, no tiny per-batch MXU ops) ----
    # mean_uk[b,k,:] = (sum_l e[b,l,k] * rl[b,l,:]) / max(sum_l |e[b,l,k]|, eps)
    mean_uk = et[:, :, 0:1] * rl[:, 0:1, :]
    for l in range(1, L):                                     # static unroll (L is small)
        mean_uk = mean_uk + et[:, :, l:l + 1] * rl[:, l:l + 1, :]
    den_uk = jnp.maximum(jnp.sum(jnp.abs(et), axis=2, keepdims=True), _EPS)   # (TB, K, 1)
    mean_uk = mean_uk * (1.0 / den_uk)

    # mean_rl[b,l,:] = (sum_k e[b,l,k] * uk[b,k,:]) / max(sum_k |e[b,l,k]|, eps)
    mean_rl = e[:, :, 0:1] * uk[:, 0:1, :]
    for k in range(1, K):
        mean_rl = mean_rl + e[:, :, k:k + 1] * uk[:, k:k + 1, :]
    den_rl = jnp.maximum(jnp.sum(jnp.abs(e), axis=2, keepdims=True), _EPS)    # (TB, L, 1)
    mean_rl = mean_rl * (1.0 / den_rl)

    # mean_uc[b,:] = sum_k e_rc[b,k] * uk[b,k,:]   (tiny: VPU multiply + sublane reduce)
    mean_uc = jnp.sum(uk * erc[:, :, None], axis=1)                           # (TB, D)

    # ---------- leave-one-out max over users: top-2 trick, O(TB*K*D) ------------------------
    m1 = jnp.max(uk, axis=1, keepdims=True)                                   # (TB, 1, D)
    is_max = uk == m1
    n_max = jnp.sum(is_max.astype(f32), axis=1, keepdims=True)                # multiplicity
    m2 = jnp.max(jnp.where(is_max, -jnp.inf, uk), axis=1, keepdims=True)      # strict 2nd
    at_max = jnp.where(n_max > 1.0, m1, m2)
    max_user = jnp.where(is_max, at_max, m1)                                  # (TB, K, D)

    # ---------- MLPs: fused first layers via lane concat, rows flattened --------------------
    # fu: Linear(3D, 2ch) -> ReLU -> Linear(2ch, ch), rows = TB*K
    x_fu = jnp.concatenate(
        [uk.reshape(R, D), max_user.reshape(R, D), mean_uk.reshape(R, D)], axis=-1)
    h = jnp.maximum(mm(x_fu, fu_w1_ref) + fu_b1_ref[...], 0.0)
    tmp_uk = mm(h, fu_w2_ref) + fu_b2_ref[...]                                # (R, ch)

    # f: Linear(2D, 2ch) -> ReLU -> Linear(2ch, ch), rows = TB*L
    x_f = jnp.concatenate([rl.reshape(RL, D), mean_rl.reshape(RL, D)], axis=-1)
    h = jnp.maximum(mm(x_f, f_w1_ref) + f_b1_ref[...], 0.0)
    tmp_rl = mm(h, f_w2_ref) + f_b2_ref[...]                                  # (RL, ch)

    # fc: Linear(2D, 2ch) -> ReLU -> Linear(2ch, ch), rows = TB
    x_fc = jnp.concatenate([mean_uc, uc], axis=-1)
    h = jnp.maximum(mm(x_fc, fc_w1_ref) + fc_b1_ref[...], 0.0)
    tmp_uc = mm(h, fc_w2_ref) + fc_b2_ref[...]                                # (TB, ch)
    tmp_uc_ref[...] = tmp_uc

    # edge update on |uc_update - uk_update|: first `ch` features are the MLP outputs,
    # the last `D` are the raw features (matches the torch concat order).
    tmp_uk3 = tmp_uk.reshape(TB, K, ch)
    d_tmp = jnp.abs(tmp_uc[:, None, :] - tmp_uk3)                             # (TB, K, ch)
    d_raw = jnp.abs(uc[:, None, :] - uk)                                      # (TB, K, D)
    x_eu = jnp.concatenate([d_tmp, d_raw], axis=-1).reshape(R, ch + D)
    h = jnp.maximum(mm(x_eu, eu_w1_ref) + eu_b1_ref[...], 0.0)                # (R, ch)
    # lane-dense (TB, K) logits: contract the final (ch,1) weight as multiply + lane reduce
    logit_ref[...] = (jnp.sum(h.reshape(TB, K, ch) * eu_w2t_ref[...], axis=-1)
                      + eu_b2_ref[...])                                       # (TB, K)

    # ---------- lane-dense stores of the per-user / per-RB MLP outputs ----------------------
    # (TB*K, ch) -> (TB, K*ch) relayout via sublane selects + lane concat (rides the XLU).
    tmp_uk_ref[...] = jnp.concatenate([tmp_uk3[:, k, :] for k in range(K)], axis=-1)
    tmp_rl3 = tmp_rl.reshape(TB, L, ch)
    tmp_rl_ref[...] = jnp.concatenate([tmp_rl3[:, l, :] for l in range(L)], axis=-1)


# --------------------------------------------------------------------------------------
# Wrapper
# --------------------------------------------------------------------------------------
def node_update_forward(params, uk, uc, rl, e, e_rc, *, block_b=512):
    """Forward pass of node_update_layer.

    block_b = batch elements per grid step.  At this feature layout each element needs
    roughly 40-60 KB of VMEM (pipeline buffers + temporaries), so block_b=512 fits the
    56 MiB cap below on every generation; raise it further on v5e/v6e (128 MiB VMEM)
    if the grid becomes long.
    """
    B, K, D = uk.shape
    L = rl.shape[1]
    ch = params["fu_w2"].shape[1]
    f32, bf16 = jnp.float32, jnp.bfloat16

    # --- batch tiling: split into >=2 grid steps so both v7x TensorCores get work ---
    half = -(-B // 2)                         # ceil(B/2)
    tb = max(8, min(block_b, half))
    tb = -(-tb // 8) * 8                      # sublane-aligned batch blocks
    Bp = -(-B // tb) * tb                     # pad batch to a multiple of tb
    grid = (Bp // tb,)

    def pad_b(x):
        x = x.astype(f32)
        if Bp == B:
            return x
        return jnp.pad(x, ((0, Bp - B),) + ((0, 0),) * (x.ndim - 1))

    uk_p, uc_p, rl_p, e_p, erc_p = (pad_b(a) for a in (uk, uc, rl, e, e_rc))
    # Feed e^T from the wrapper (free XLA transpose): keeps both aggregation broadcasts
    # layout-friendly inside the kernel; the extra DMA is ~256 B per batch element.
    et_p = jnp.swapaxes(e_p, 1, 2)

    p = params
    param_list = [
        p["fu_w1"].astype(bf16), p["fu_b1"].astype(f32),
        p["fu_w2"].astype(bf16), p["fu_b2"].astype(f32),
        p["f_w1"].astype(bf16), p["f_b1"].astype(f32),
        p["f_w2"].astype(bf16), p["f_b2"].astype(f32),
        p["fc_w1"].astype(bf16), p["fc_b1"].astype(f32),
        p["fc_w2"].astype(bf16), p["fc_b2"].astype(f32),
        p["eu_w1"].astype(bf16), p["eu_b1"].astype(f32),
        p["eu_w2"].astype(f32).T,             # (1, ch): used on the VPU for lane-dense logits
        p["eu_b2"].astype(f32),               # (1, 1)
    ]

    data_specs = [
        pl.BlockSpec((tb, K, D), lambda i: (i, 0, 0)),   # uk
        pl.BlockSpec((tb, D), lambda i: (i, 0)),         # uc
        pl.BlockSpec((tb, L, D), lambda i: (i, 0, 0)),   # rl
        pl.BlockSpec((tb, L, K), lambda i: (i, 0, 0)),   # e
        pl.BlockSpec((tb, K, L), lambda i: (i, 0, 0)),   # e^T
        pl.BlockSpec((tb, K), lambda i: (i, 0)),         # e_rc
    ]
    const2 = lambda i: (0, 0)                            # grid-invariant 2-D params
    param_specs = [pl.BlockSpec(w.shape, const2) for w in param_list]

    out_shapes = (
        jax.ShapeDtypeStruct((Bp, K * ch), f32),   # fu outputs, lane-packed per user
        jax.ShapeDtypeStruct((Bp, ch), f32),       # fc output
        jax.ShapeDtypeStruct((Bp, L * ch), f32),   # f outputs, lane-packed per RB
        jax.ShapeDtypeStruct((Bp, K), f32),        # edge-update logits (lane-dense)
    )
    out_specs = (
        pl.BlockSpec((tb, K * ch), lambda i: (i, 0)),
        pl.BlockSpec((tb, ch), lambda i: (i, 0)),
        pl.BlockSpec((tb, L * ch), lambda i: (i, 0)),
        pl.BlockSpec((tb, K), lambda i: (i, 0)),
    )

    # ~128 KB/elem budget, capped at 56 MiB so it stays inside v7x's 64 MiB physical VMEM.
    vmem_limit = int(min(56 * 2**20, max(16 * 2**20, tb * 128 * 1024)))

    tmp_uk, tmp_uc, tmp_rl, logits = pl.pallas_call(
        node_update_kernel,
        out_shape=out_shapes,
        grid=grid,
        in_specs=data_specs + param_specs,
        out_specs=out_specs,
        compiler_params=pltpu.CompilerParams(
            dimension_semantics=("parallel",),
            vmem_limit_bytes=vmem_limit),
    )(uk_p, uc_p, rl_p, e_p, et_p, erc_p, *param_list)

    # Feature concat of (MLP output, raw features), un-packing of the lane-dense slabs and
    # the softmax are cheap XLA ops kept out of the kernel.
    tmp_uk = tmp_uk.reshape(Bp, K, ch)[:B]
    tmp_rl = tmp_rl.reshape(Bp, L, ch)[:B]
    tmp_uc = tmp_uc[:B]
    logits = logits[:B]

    uk_update = jnp.concatenate([tmp_uk, uk.astype(f32)], axis=-1)
    uc_update = jnp.concatenate([tmp_uc, uc.astype(f32)], axis=-1)
    rl_update = jnp.concatenate([tmp_rl, rl.astype(f32)], axis=-1)
    e_rc_update = jax.nn.softmax(logits, axis=1)
    return uk_update, uc_update, rl_update, e_rc_update


# --------------------------------------------------------------------------------------
# Deterministic parameter init (torch Linear-style fan-in uniform) and pure-JAX reference
# --------------------------------------------------------------------------------------
def init_params(key, in_dim, ch):
    in_dim_p, in_dim_c, in_dim_l = in_dim * 3, in_dim * 2, in_dim * 2
    layer_dims = {
        "fu_w1": (in_dim_p, 2 * ch), "fu_w2": (2 * ch, ch),
        "f_w1": (in_dim_l, 2 * ch), "f_w2": (2 * ch, ch),
        "fc_w1": (in_dim_c, 2 * ch), "fc_w2": (2 * ch, ch),
        "eu_w1": (in_dim + ch, ch), "eu_w2": (ch, 1),
    }
    params = {}
    keys = jax.random.split(key, len(layer_dims))
    for k, (name, (din, dout)) in zip(keys, layer_dims.items()):
        kw, kb = jax.random.split(k)
        bound = 1.0 / float(din) ** 0.5
        params[name] = jax.random.uniform(kw, (din, dout), jnp.float32, -bound, bound)
        params[name.replace("w", "b")] = jax.random.uniform(kb, (1, dout), jnp.float32, -bound, bound)
    return params


def reference(params, uk, uc, rl, e, e_rc):
    def mlp(x, w1, b1, w2, b2):
        return jnp.maximum(x @ w1 + b1, 0.0) @ w2 + b2

    B, K, D = uk.shape
    e_l = jnp.swapaxes(e, 1, 2)
    e_l = e_l / jnp.maximum(jnp.sum(jnp.abs(e_l), axis=2, keepdims=True), _EPS)
    mean_uk = jnp.einsum("bkl,bld->bkd", e_l, rl)
    mask = jnp.eye(K, dtype=bool)[None, :, :, None]
    max_user = jnp.max(jnp.where(mask, -jnp.inf, uk[:, None, :, :]), axis=2)
    tmp_uk = mlp(jnp.concatenate([uk, max_user, mean_uk], axis=-1),
                 params["fu_w1"], params["fu_b1"], params["fu_w2"], params["fu_b2"])
    uk_update = jnp.concatenate([tmp_uk, uk], axis=-1)

    e_h = e / jnp.maximum(jnp.sum(jnp.abs(e), axis=2, keepdims=True), _EPS)
    mean_rl = jnp.einsum("blk,bkd->bld", e_h, uk)
    tmp_rl = mlp(jnp.concatenate([rl, mean_rl], axis=-1),
                 params["f_w1"], params["f_b1"], params["f_w2"], params["f_b2"])
    rl_update = jnp.concatenate([tmp_rl, rl], axis=-1)

    mean_uc = jnp.einsum("bkd,bk->bd", uk, e_rc)
    tmp_uc = mlp(jnp.concatenate([mean_uc, uc], axis=-1),
                 params["fc_w1"], params["fc_b1"], params["fc_w2"], params["fc_b2"])
    uc_update = jnp.concatenate([tmp_uc, uc], axis=-1)

    diff = jnp.abs(uc_update[:, None, :] - uk_update)
    logits = mlp(diff, params["eu_w1"], params["eu_b1"], params["eu_w2"], params["eu_b2"])[..., 0]
    e_rc_update = jax.nn.softmax(logits, axis=1)
    return uk_update, uc_update, rl_update, e_rc_update


if __name__ == "__main__":
    B, K, L, D, CH = 10, 8, 8, 16, 32
    M, N = 4, 2  # present in the torch __init__, unused by the forward pass

    key = jax.random.PRNGKey(0)
    k_uk, k_uc, k_rl, k_e, k_erc, k_p = jax.random.split(key, 6)
    uk = jax.random.normal(k_uk, (B, K, D), jnp.float32)
    uc = jax.random.normal(k_uc, (B, D), jnp.float32)
    rl = jax.random.normal(k_rl, (B, L, D), jnp.float32)
    e = jax.random.normal(k_e, (B, L, K), jnp.float32)
    e_rc = jax.nn.softmax(jax.random.normal(k_erc, (B, K), jnp.float32), axis=1)
    params = init_params(k_p, D, CH)

    # B=10 -> tb=8, grid=(2,): exercises the multi-step parallel grid and the batch-pad path.
    fwd = jax.jit(node_update_forward)
    outs = jax.block_until_ready(fwd(params, uk, uc, rl, e, e_rc))

    refs = reference(params, uk, uc, rl, e, e_rc)
    for o, r in zip(outs, refs):
        assert o.shape == r.shape, (o.shape, r.shape)
        assert jnp.allclose(o, r, rtol=2e-2, atol=2e-2), float(jnp.max(jnp.abs(o - r)))

    print("KERNEL_OK")
</pallas_src>

<mosaic_0001>
module attributes {stable_mosaic.version = 11 : i64} {
  func.func @node_update_kernel(%arg0: i32, %arg1: memref<8x8x16xf32, #tpu.memory_space<vmem>>, %arg2: memref<8x16xf32, #tpu.memory_space<vmem>>, %arg3: memref<8x8x16xf32, #tpu.memory_space<vmem>>, %arg4: memref<8x8x8xf32, #tpu.memory_space<vmem>>, %arg5: memref<8x8x8xf32, #tpu.memory_space<vmem>>, %arg6: memref<8x8xf32, #tpu.memory_space<vmem>>, %arg7: memref<48x64xbf16, #tpu.memory_space<vmem>>, %arg8: memref<1x64xf32, #tpu.memory_space<vmem>>, %arg9: memref<64x32xbf16, #tpu.memory_space<vmem>>, %arg10: memref<1x32xf32, #tpu.memory_space<vmem>>, %arg11: memref<32x64xbf16, #tpu.memory_space<vmem>>, %arg12: memref<1x64xf32, #tpu.memory_space<vmem>>, %arg13: memref<64x32xbf16, #tpu.memory_space<vmem>>, %arg14: memref<1x32xf32, #tpu.memory_space<vmem>>, %arg15: memref<32x64xbf16, #tpu.memory_space<vmem>>, %arg16: memref<1x64xf32, #tpu.memory_space<vmem>>, %arg17: memref<64x32xbf16, #tpu.memory_space<vmem>>, %arg18: memref<1x32xf32, #tpu.memory_space<vmem>>, %arg19: memref<48x32xbf16, #tpu.memory_space<vmem>>, %arg20: memref<1x32xf32, #tpu.memory_space<vmem>>, %arg21: memref<1x32xf32, #tpu.memory_space<vmem>>, %arg22: memref<1x1xf32, #tpu.memory_space<vmem>>, %arg23: memref<8x256xf32, #tpu.memory_space<vmem>>, %arg24: memref<8x32xf32, #tpu.memory_space<vmem>>, %arg25: memref<8x256xf32, #tpu.memory_space<vmem>>, %arg26: memref<8x8xf32, #tpu.memory_space<vmem>>) attributes {dimension_semantics = [#tpu.dimension_semantics<parallel>], iteration_bounds = array<i64: 2>, scalar_prefetch = 0 : i64, scratch_operands = 0 : i64, tpu.core_type = #tpu.core_type<tc>, window_params = [{transform_indices = @transform_0, window_bounds = array<i64: 8, 8, 16>}, {transform_indices = @transform_1, window_bounds = array<i64: 8, 16>}, {transform_indices = @transform_2, window_bounds = array<i64: 8, 8, 16>}, {transform_indices = @transform_3, window_bounds = array<i64: 8, 8, 8>}, {transform_indices = @transform_4, window_bounds = array<i64: 8, 8, 8>}, {transform_indices = @transform_5, window_bounds = array<i64: 8, 8>}, {pipeline_mode = #tpu.pipeline_mode<synchronous>, transform_indices = @transform_6, window_bounds = array<i64: 48, 64>}, {pipeline_mode = #tpu.pipeline_mode<synchronous>, transform_indices = @transform_7, window_bounds = array<i64: 1, 64>}, {pipeline_mode = #tpu.pipeline_mode<synchronous>, transform_indices = @transform_8, window_bounds = array<i64: 64, 32>}, {pipeline_mode = #tpu.pipeline_mode<synchronous>, transform_indices = @transform_9, window_bounds = array<i64: 1, 32>}, {pipeline_mode = #tpu.pipeline_mode<synchronous>, transform_indices = @transform_10, window_bounds = array<i64: 32, 64>}, {pipeline_mode = #tpu.pipeline_mode<synchronous>, transform_indices = @transform_11, window_bounds = array<i64: 1, 64>}, {pipeline_mode = #tpu.pipeline_mode<synchronous>, transform_indices = @transform_12, window_bounds = array<i64: 64, 32>}, {pipeline_mode = #tpu.pipeline_mode<synchronous>, transform_indices = @transform_13, window_bounds = array<i64: 1, 32>}, {pipeline_mode = #tpu.pipeline_mode<synchronous>, transform_indices = @transform_14, window_bounds = array<i64: 32, 64>}, {pipeline_mode = #tpu.pipeline_mode<synchronous>, transform_indices = @transform_15, window_bounds = array<i64: 1, 64>}, {pipeline_mode = #tpu.pipeline_mode<synchronous>, transform_indices = @transform_16, window_bounds = array<i64: 64, 32>}, {pipeline_mode = #tpu.pipeline_mode<synchronous>, transform_indices = @transform_17, window_bounds = array<i64: 1, 32>}, {pipeline_mode = #tpu.pipeline_mode<synchronous>, transform_indices = @transform_18, window_bounds = array<i64: 48, 32>}, {pipeline_mode = #tpu.pipeline_mode<synchronous>, transform_indices = @transform_19, window_bounds = array<i64: 1, 32>}, {pipeline_mode = #tpu.pipeline_mode<synchronous>, transform_indices = @transform_20, window_bounds = array<i64: 1, 32>}, {pipeline_mode = #tpu.pipeline_mode<synchronous>, transform_indices = @transform_21, window_bounds = array<i64: 1, 1>}, {transform_indices = @transform_22, window_bounds = array<i64: 8, 256>}, {transform_indices = @transform_23, window_bounds = array<i64: 8, 32>}, {transform_indices = @transform_24, window_bounds = array<i64: 8, 256>}, {transform_indices = @transform_25, window_bounds = array<i64: 8, 8>}]} {
    %c0 = arith.constant 0 : index
    %c0_0 = arith.constant 0 : index
    %c0_1 = arith.constant 0 : index
    %0 = vector.load %arg1[%c0, %c0_0, %c0_1] : memref<8x8x16xf32, #tpu.memory_space<vmem>>, vector<8x8x16xf32>
    %c0_2 = arith.constant 0 : index
    %c0_3 = arith.constant 0 : index
    %1 = vector.load %arg2[%c0_2, %c0_3] : memref<8x16xf32, #tpu.memory_space<vmem>>, vector<8x16xf32>
    %c0_4 = arith.constant 0 : index
    %c0_5 = arith.constant 0 : index
    %c0_6 = arith.constant 0 : index
    %2 = vector.load %arg3[%c0_4, %c0_5, %c0_6] : memref<8x8x16xf32, #tpu.memory_space<vmem>>, vector<8x8x16xf32>
    %c0_7 = arith.constant 0 : index
    %c0_8 = arith.constant 0 : index
    %c0_9 = arith.constant 0 : index
    %3 = vector.load %arg4[%c0_7, %c0_8, %c0_9] : memref<8x8x8xf32, #tpu.memory_space<vmem>>, vector<8x8x8xf32>
    %c0_10 = arith.constant 0 : index
    %c0_11 = arith.constant 0 : index
    %c0_12 = arith.constant 0 : index
    %4 = vector.load %arg5[%c0_10, %c0_11, %c0_12] : memref<8x8x8xf32, #tpu.memory_space<vmem>>, vector<8x8x8xf32>
    %c0_13 = arith.constant 0 : index
    %c0_14 = arith.constant 0 : index
    %5 = vector.load %arg6[%c0_13, %c0_14] : memref<8x8xf32, #tpu.memory_space<vmem>>, vector<8x8xf32>
    %6 = vector.extract_strided_slice %4 {offsets = [0, 0, 0], sizes = [8, 8, 1], strides = [1, 1, 1]} : vector<8x8x8xf32> to vector<8x8x1xf32>
    %7 = vector.extract_strided_slice %2 {offsets = [0, 0, 0], sizes = [8, 1, 16], strides = [1, 1, 1]} : vector<8x8x16xf32> to vector<8x1x16xf32>
    %8 = vector.broadcast %6 : vector<8x8x1xf32> to vector<8x8x16xf32>
    %9 = vector.broadcast %7 : vector<8x1x16xf32> to vector<8x8x16xf32>
    %10 = arith.mulf %8, %9 : vector<8x8x16xf32>
    %11 = vector.extract_strided_slice %4 {offsets = [0, 0, 1], sizes = [8, 8, 1], strides = [1, 1, 1]} : vector<8x8x8xf32> to vector<8x8x1xf32>
    %12 = vector.extract_strided_slice %2 {offsets = [0, 1, 0], sizes = [8, 1, 16], strides = [1, 1, 1]} : vector<8x8x16xf32> to vector<8x1x16xf32>
    %13 = vector.broadcast %11 : vector<8x8x1xf32> to vector<8x8x16xf32>
    %14 = vector.broadcast %12 : vector<8x1x16xf32> to vector<8x8x16xf32>
    %15 = arith.mulf %13, %14 : vector<8x8x16xf32>
    %16 = arith.addf %10, %15 : vector<8x8x16xf32>
    %17 = vector.extract_strided_slice %4 {offsets = [0, 0, 2], sizes = [8, 8, 1], strides = [1, 1, 1]} : vector<8x8x8xf32> to vector<8x8x1xf32>
    %18 = vector.extract_strided_slice %2 {offsets = [0, 2, 0], sizes = [8, 1, 16], strides = [1, 1, 1]} : vector<8x8x16xf32> to vector<8x1x16xf32>
    %19 = vector.broadcast %17 : vector<8x8x1xf32> to vector<8x8x16xf32>
    %20 = vector.broadcast %18 : vector<8x1x16xf32> to vector<8x8x16xf32>
    %21 = arith.mulf %19, %20 : vector<8x8x16xf32>
    %22 = arith.addf %16, %21 : vector<8x8x16xf32>
    %23 = vector.extract_strided_slice %4 {offsets = [0, 0, 3], sizes = [8, 8, 1], strides = [1, 1, 1]} : vector<8x8x8xf32> to vector<8x8x1xf32>
    %24 = vector.extract_strided_slice %2 {offsets = [0, 3, 0], sizes = [8, 1, 16], strides = [1, 1, 1]} : vector<8x8x16xf32> to vector<8x1x16xf32>
    %25 = vector.broadcast %23 : vector<8x8x1xf32> to vector<8x8x16xf32>
    %26 = vector.broadcast %24 : vector<8x1x16xf32> to vector<8x8x16xf32>
    %27 = arith.mulf %25, %26 : vector<8x8x16xf32>
    %28 = arith.addf %22, %27 : vector<8x8x16xf32>
    %29 = vector.extract_strided_slice %4 {offsets = [0, 0, 4], sizes = [8, 8, 1], strides = [1, 1, 1]} : vector<8x8x8xf32> to vector<8x8x1xf32>
    %30 = vector.extract_strided_slice %2 {offsets = [0, 4, 0], sizes = [8, 1, 16], strides = [1, 1, 1]} : vector<8x8x16xf32> to vector<8x1x16xf32>
    %31 = vector.broadcast %29 : vector<8x8x1xf32> to vector<8x8x16xf32>
    %32 = vector.broadcast %30 : vector<8x1x16xf32> to vector<8x8x16xf32>
    %33 = arith.mulf %31, %32 : vector<8x8x16xf32>
    %34 = arith.addf %28, %33 : vector<8x8x16xf32>
    %35 = vector.extract_strided_slice %4 {offsets = [0, 0, 5], sizes = [8, 8, 1], strides = [1, 1, 1]} : vector<8x8x8xf32> to vector<8x8x1xf32>
    %36 = vector.extract_strided_slice %2 {offsets = [0, 5, 0], sizes = [8, 1, 16], strides = [1, 1, 1]} : vector<8x8x16xf32> to vector<8x1x16xf32>
    %37 = vector.broadcast %35 : vector<8x8x1xf32> to vector<8x8x16xf32>
    %38 = vector.broadcast %36 : vector<8x1x16xf32> to vector<8x8x16xf32>
    %39 = arith.mulf %37, %38 : vector<8x8x16xf32>
    %40 = arith.addf %34, %39 : vector<8x8x16xf32>
    %41 = vector.extract_strided_slice %4 {offsets = [0, 0, 6], sizes = [8, 8, 1], strides = [1, 1, 1]} : vector<8x8x8xf32> to vector<8x8x1xf32>
    %42 = vector.extract_strided_slice %2 {offsets = [0, 6, 0], sizes = [8, 1, 16], strides = [1, 1, 1]} : vector<8x8x16xf32> to vector<8x1x16xf32>
    %43 = vector.broadcast %41 : vector<8x8x1xf32> to vector<8x8x16xf32>
    %44 = vector.broadcast %42 : vector<8x1x16xf32> to vector<8x8x16xf32>
    %45 = arith.mulf %43, %44 : vector<8x8x16xf32>
    %46 = arith.addf %40, %45 : vector<8x8x16xf32>
    %47 = vector.extract_strided_slice %4 {offsets = [0, 0, 7], sizes = [8, 8, 1], strides = [1, 1, 1]} : vector<8x8x8xf32> to vector<8x8x1xf32>
    %48 = vector.extract_strided_slice %2 {offsets = [0, 7, 0], sizes = [8, 1, 16], strides = [1, 1, 1]} : vector<8x8x16xf32> to vector<8x1x16xf32>
    %49 = vector.broadcast %47 : vector<8x8x1xf32> to vector<8x8x16xf32>
    %50 = vector.broadcast %48 : vector<8x1x16xf32> to vector<8x8x16xf32>
    %51 = arith.mulf %49, %50 : vector<8x8x16xf32>
    %52 = arith.addf %46, %51 : vector<8x8x16xf32>
    %53 = math.absf %4 : vector<8x8x8xf32>
    %cst = arith.constant dense<0.000000e+00> : vector<8x8xf32>
    %54 = vector.multi_reduction <add>, %53, %cst [2] : vector<8x8x8xf32> to vector<8x8xf32>
    %55 = vector.shape_cast %54 : vector<8x8xf32> to vector<8x8x1xf32>
    %cst_15 = arith.constant 9.99999996E-13 : f32
    %56 = vector.broadcast %cst_15 : f32 to vector<8x8x1xf32>
    %57 = arith.maximumf %55, %56 : vector<8x8x1xf32>
    %cst_16 = arith.constant 1.000000e+00 : f32
    %58 = vector.broadcast %cst_16 : f32 to vector<8x8x1xf32>
    %59 = arith.divf %58, %57 : vector<8x8x1xf32>
    %60 = vector.broadcast %59 : vector<8x8x1xf32> to vector<8x8x16xf32>
    %61 = arith.mulf %52, %60 : vector<8x8x16xf32>
    %62 = vector.extract_strided_slice %3 {offsets = [0, 0, 0], sizes = [8, 8, 1], strides = [1, 1, 1]} : vector<8x8x8xf32> to vector<8x8x1xf32>
    %63 = vector.extract_strided_slice %0 {offsets = [0, 0, 0], sizes = [8, 1, 16], strides = [1, 1, 1]} : vector<8x8x16xf32> to vector<8x1x16xf32>
    %64 = vector.broadcast %62 : vector<8x8x1xf32> to vector<8x8x16xf32>
    %65 = vector.broadcast %63 : vector<8x1x16xf32> to vector<8x8x16xf32>
    %66 = arith.mulf %64, %65 : vector<8x8x16xf32>
    %67 = vector.extract_strided_slice %3 {offsets = [0, 0, 1], sizes = [8, 8, 1], strides = [1, 1, 1]} : vector<8x8x8xf32> to vector<8x8x1xf32>
    %68 = vector.extract_strided_slice %0 {offsets = [0, 1, 0], sizes = [8, 1, 16], strides = [1, 1, 1]} : vector<8x8x16xf32> to vector<8x1x16xf32>
    %69 = vector.broadcast %67 : vector<8x8x1xf32> to vector<8x8x16xf32>
    %70 = vector.broadcast %68 : vector<8x1x16xf32> to vector<8x8x16xf32>
    %71 = arith.mulf %69, %70 : vector<8x8x16xf32>
    %72 = arith.addf %66, %71 : vector<8x8x16xf32>
    %73 = vector.extract_strided_slice %3 {offsets = [0, 0, 2], sizes = [8, 8, 1], strides = [1, 1, 1]} : vector<8x8x8xf32> to vector<8x8x1xf32>
    %74 = vector.extract_strided_slice %0 {offsets = [0, 2, 0], sizes = [8, 1, 16], strides = [1, 1, 1]} : vector<8x8x16xf32> to vector<8x1x16xf32>
    %75 = vector.broadcast %73 : vector<8x8x1xf32> to vector<8x8x16xf32>
    %76 = vector.broadcast %74 : vector<8x1x16xf32> to vector<8x8x16xf32>
    %77 = arith.mulf %75, %76 : vector<8x8x16xf32>
    %78 = arith.addf %72, %77 : vector<8x8x16xf32>
    %79 = vector.extract_strided_slice %3 {offsets = [0, 0, 3], sizes = [8, 8, 1], strides = [1, 1, 1]} : vector<8x8x8xf32> to vector<8x8x1xf32>
    %80 = vector.extract_strided_slice %0 {offsets = [0, 3, 0], sizes = [8, 1, 16], strides = [1, 1, 1]} : vector<8x8x16xf32> to vector<8x1x16xf32>
    %81 = vector.broadcast %79 : vector<8x8x1xf32> to vector<8x8x16xf32>
    %82 = vector.broadcast %80 : vector<8x1x16xf32> to vector<8x8x16xf32>
    %83 = arith.mulf %81, %82 : vector<8x8x16xf32>
    %84 = arith.addf %78, %83 : vector<8x8x16xf32>
    %85 = vector.extract_strided_slice %3 {offsets = [0, 0, 4], sizes = [8, 8, 1], strides = [1, 1, 1]} : vector<8x8x8xf32> to vector<8x8x1xf32>
    %86 = vector.extract_strided_slice %0 {offsets = [0, 4, 0], sizes = [8, 1, 16], strides = [1, 1, 1]} : vector<8x8x16xf32> to vector<8x1x16xf32>
    %87 = vector.broadcast %85 : vector<8x8x1xf32> to vector<8x8x16xf32>
    %88 = vector.broadcast %86 : vector<8x1x16xf32> to vector<8x8x16xf32>
    %89 = arith.mulf %87, %88 : vector<8x8x16xf32>
    %90 = arith.addf %84, %89 : vector<8x8x16xf32>
    %91 = vector.extract_strided_slice %3 {offsets = [0, 0, 5], sizes = [8, 8, 1], strides = [1, 1, 1]} : vector<8x8x8xf32> to vector<8x8x1xf32>
    %92 = vector.extract_strided_slice %0 {offsets = [0, 5, 0], sizes = [8, 1, 16], strides = [1, 1, 1]} : vector<8x8x16xf32> to vector<8x1x16xf32>
    %93 = vector.broadcast %91 : vector<8x8x1xf32> to vector<8x8x16xf32>
    %94 = vector.broadcast %92 : vector<8x1x16xf32> to vector<8x8x16xf32>
    %95 = arith.mulf %93, %94 : vector<8x8x16xf32>
    %96 = arith.addf %90, %95 : vector<8x8x16xf32>
    %97 = vector.extract_strided_slice %3 {offsets = [0, 0, 6], sizes = [8, 8, 1], strides = [1, 1, 1]} : vector<8x8x8xf32> to vector<8x8x1xf32>
    %98 = vector.extract_strided_slice %0 {offsets = [0, 6, 0], sizes = [8, 1, 16], strides = [1, 1, 1]} : vector<8x8x16xf32> to vector<8x1x16xf32>
    %99 = vector.broadcast %97 : vector<8x8x1xf32> to vector<8x8x16xf32>
    %100 = vector.broadcast %98 : vector<8x1x16xf32> to vector<8x8x16xf32>
    %101 = arith.mulf %99, %100 : vector<8x8x16xf32>
    %102 = arith.addf %96, %101 : vector<8x8x16xf32>
    %103 = vector.extract_strided_slice %3 {offsets = [0, 0, 7], sizes = [8, 8, 1], strides = [1, 1, 1]} : vector<8x8x8xf32> to vector<8x8x1xf32>
    %104 = vector.extract_strided_slice %0 {offsets = [0, 7, 0], sizes = [8, 1, 16], strides = [1, 1, 1]} : vector<8x8x16xf32> to vector<8x1x16xf32>
    %105 = vector.broadcast %103 : vector<8x8x1xf32> to vector<8x8x16xf32>
    %106 = vector.broadcast %104 : vector<8x1x16xf32> to vector<8x8x16xf32>
    %107 = arith.mulf %105, %106 : vector<8x8x16xf32>
    %108 = arith.addf %102, %107 : vector<8x8x16xf32>
    %109 = math.absf %3 : vector<8x8x8xf32>
    %cst_17 = arith.constant dense<0.000000e+00> : vector<8x8xf32>
    %110 = vector.multi_reduction <add>, %109, %cst_17 [2] : vector<8x8x8xf32> to vector<8x8xf32>
    %111 = vector.shape_cast %110 : vector<8x8xf32> to vector<8x8x1xf32>
    %cst_18 = arith.constant 9.99999996E-13 : f32
    %112 = vector.broadcast %cst_18 : f32 to vector<8x8x1xf32>
    %113 = arith.maximumf %111, %112 : vector<8x8x1xf32>
    %cst_19 = arith.constant 1.000000e+00 : f32
    %114 = vector.broadcast %cst_19 : f32 to vector<8x8x1xf32>
    %115 = arith.divf %114, %113 : vector<8x8x1xf32>
    %116 = vector.broadcast %115 : vector<8x8x1xf32> to vector<8x8x16xf32>
    %117 = arith.mulf %108, %116 : vector<8x8x16xf32>
    %118 = vector.shape_cast %5 : vector<8x8xf32> to vector<8x8x1xf32>
    %119 = vector.broadcast %118 : vector<8x8x1xf32> to vector<8x8x16xf32>
    %120 = arith.mulf %0, %119 : vector<8x8x16xf32>
    %cst_20 = arith.constant dense<0.000000e+00> : vector<8x16xf32>
    %121 = vector.multi_reduction <add>, %120, %cst_20 [1] : vector<8x8x16xf32> to vector<8x16xf32>
    %cst_21 = arith.constant dense<0xFF800000> : vector<8x16xf32>
    %122 = vector.multi_reduction <maximumf>, %0, %cst_21 [1] : vector<8x8x16xf32> to vector<8x16xf32>
    %123 = vector.shape_cast %122 : vector<8x16xf32> to vector<8x1x16xf32>
    %124 = vector.broadcast %123 : vector<8x1x16xf32> to vector<8x8x16xf32>
    %125 = arith.cmpf oeq, %0, %124 : vector<8x8x16xf32>
    %126 = arith.extui %125 : vector<8x8x16xi1> to vector<8x8x16xi32>
    %127 = arith.sitofp %126 : vector<8x8x16xi32> to vector<8x8x16xf32>
    %cst_22 = arith.constant dense<0.000000e+00> : vector<8x16xf32>
    %128 = vector.multi_reduction <add>, %127, %cst_22 [1] : vector<8x8x16xf32> to vector<8x16xf32>
    %129 = vector.shape_cast %128 : vector<8x16xf32> to vector<8x1x16xf32>
    %cst_23 = arith.constant 0xFF800000 : f32
    %130 = vector.broadcast %cst_23 : f32 to vector<8x8x16xf32>
    %131 = arith.select %125, %130, %0 : vector<8x8x16xi1>, vector<8x8x16xf32>
    %cst_24 = arith.constant dense<0xFF800000> : vector<8x16xf32>
    %132 = vector.multi_reduction <maximumf>, %131, %cst_24 [1] : vector<8x8x16xf32> to vector<8x16xf32>
    %133 = vector.shape_cast %132 : vector<8x16xf32> to vector<8x1x16xf32>
    %cst_25 = arith.constant 1.000000e+00 : f32
    %134 = vector.broadcast %cst_25 : f32 to vector<8x1x16xf32>
    %135 = arith.cmpf ogt, %129, %134 : vector<8x1x16xf32>
    %136 = arith.select %135, %123, %133 : vector<8x1x16xi1>, vector<8x1x16xf32>
    %137 = vector.shape_cast %136 : vector<8x1x16xf32> to vector<8x1x16xf32>
    %138 = vector.broadcast %137 : vector<8x1x16xf32> to vector<8x8x16xf32>
    %139 = vector.shape_cast %123 : vector<8x1x16xf32> to vector<8x1x16xf32>
    %140 = vector.broadcast %139 : vector<8x1x16xf32> to vector<8x8x16xf32>
    %141 = arith.select %125, %138, %140 : vector<8x8x16xi1>, vector<8x8x16xf32>
    %142 = vector.shape_cast %0 : vector<8x8x16xf32> to vector<64x16xf32>
    %143 = vector.shape_cast %141 : vector<8x8x16xf32> to vector<64x16xf32>
    %144 = vector.shape_cast %61 : vector<8x8x16xf32> to vector<64x16xf32>
    %145 = tpu.concatenate %142, %143, %144 in 1 : vector<64x16xf32>, vector<64x16xf32>, vector<64x16xf32> -> vector<64x48xf32>
    %146 = arith.truncf %145 : vector<64x48xf32> to vector<64x48xbf16>
    %c0_26 = arith.constant 0 : index
    %c0_27 = arith.constant 0 : index
    %147 = vector.load %arg7[%c0_26, %c0_27] : memref<48x64xbf16, #tpu.memory_space<vmem>>, vector<48x64xbf16>
    %cst_28 = arith.constant dense<0.000000e+00> : vector<64x64xf32>
    %148 = tpu.matmul %146, %147, %cst_28 {dimension_numbers = #tpu.dot_dimension_numbers<[1], [0], [0], [1], [0, 0, 1, 1], [], []>} : vector<64x48xbf16>, vector<48x64xbf16>, vector<64x64xf32> -> vector<64x64xf32>
    %c0_29 = arith.constant 0 : index
    %c0_30 = arith.constant 0 : index
    %149 = vector.load %arg8[%c0_29, %c0_30] : memref<1x64xf32, #tpu.memory_space<vmem>>, vector<1x64xf32>
    %150 = vector.broadcast %149 : vector<1x64xf32> to vector<64x64xf32>
    %151 = arith.addf %148, %150 : vector<64x64xf32>
    %cst_31 = arith.constant 0.000000e+00 : f32
    %152 = vector.broadcast %cst_31 : f32 to vector<64x64xf32>
    %153 = arith.maximumf %151, %152 : vector<64x64xf32>
    %154 = arith.truncf %153 : vector<64x64xf32> to vector<64x64xbf16>
    %c0_32 = arith.constant 0 : index
    %c0_33 = arith.constant 0 : index
    %155 = vector.load %arg9[%c0_32, %c0_33] : memref<64x32xbf16, #tpu.memory_space<vmem>>, vector<64x32xbf16>
    %cst_34 = arith.constant dense<0.000000e+00> : vector<64x32xf32>
    %156 = tpu.matmul %154, %155, %cst_34 {dimension_numbers = #tpu.dot_dimension_numbers<[1], [0], [0], [1], [0, 0, 1, 1], [], []>} : vector<64x64xbf16>, vector<64x32xbf16>, vector<64x32xf32> -> vector<64x32xf32>
    %c0_35 = arith.constant 0 : index
    %c0_36 = arith.constant 0 : index
    %157 = vector.load %arg10[%c0_35, %c0_36] : memref<1x32xf32, #tpu.memory_space<vmem>>, vector<1x32xf32>
    %158 = vector.broadcast %157 : vector<1x32xf32> to vector<64x32xf32>
    %159 = arith.addf %156, %158 : vector<64x32xf32>
    %160 = vector.shape_cast %2 : vector<8x8x16xf32> to vector<64x16xf32>
    %161 = vector.shape_cast %117 : vector<8x8x16xf32> to vector<64x16xf32>
    %162 = tpu.concatenate %160, %161 in 1 : vector<64x16xf32>, vector<64x16xf32> -> vector<64x32xf32>
    %163 = arith.truncf %162 : vector<64x32xf32> to vector<64x32xbf16>
    %c0_37 = arith.constant 0 : index
    %c0_38 = arith.constant 0 : index
    %164 = vector.load %arg11[%c0_37, %c0_38] : memref<32x64xbf16, #tpu.memory_space<vmem>>, vector<32x64xbf16>
    %cst_39 = arith.constant dense<0.000000e+00> : vector<64x64xf32>
    %165 = tpu.matmul %163, %164, %cst_39 {dimension_numbers = #tpu.dot_dimension_numbers<[1], [0], [0], [1], [0, 0, 1, 1], [], []>} : vector<64x32xbf16>, vector<32x64xbf16>, vector<64x64xf32> -> vector<64x64xf32>
    %c0_40 = arith.constant 0 : index
    %c0_41 = arith.constant 0 : index
    %166 = vector.load %arg12[%c0_40, %c0_41] : memref<1x64xf32, #tpu.memory_space<vmem>>, vector<1x64xf32>
    %167 = vector.broadcast %166 : vector<1x64xf32> to vector<64x64xf32>
    %168 = arith.addf %165, %167 : vector<64x64xf32>
    %cst_42 = arith.constant 0.000000e+00 : f32
    %169 = vector.broadcast %cst_42 : f32 to vector<64x64xf32>
    %170 = arith.maximumf %168, %169 : vector<64x64xf32>
    %171 = arith.truncf %170 : vector<64x64xf32> to vector<64x64xbf16>
    %c0_43 = arith.constant 0 : index
    %c0_44 = arith.constant 0 : index
    %172 = vector.load %arg13[%c0_43, %c0_44] : memref<64x32xbf16, #tpu.memory_space<vmem>>, vector<64x32xbf16>
    %cst_45 = arith.constant dense<0.000000e+00> : vector<64x32xf32>
    %173 = tpu.matmul %171, %172, %cst_45 {dimension_numbers = #tpu.dot_dimension_numbers<[1], [0], [0], [1], [0, 0, 1, 1], [], []>} : vector<64x64xbf16>, vector<64x32xbf16>, vector<64x32xf32> -> vector<64x32xf32>
    %c0_46 = arith.constant 0 : index
    %c0_47 = arith.constant 0 : index
    %174 = vector.load %arg14[%c0_46, %c0_47] : memref<1x32xf32, #tpu.memory_space<vmem>>, vector<1x32xf32>
    %175 = vector.broadcast %174 : vector<1x32xf32> to vector<64x32xf32>
    %176 = arith.addf %173, %175 : vector<64x32xf32>
    %177 = tpu.concatenate %121, %1 in 1 : vector<8x16xf32>, vector<8x16xf32> -> vector<8x32xf32>
    %178 = arith.truncf %177 : vector<8x32xf32> to vector<8x32xbf16>
    %c0_48 = arith.constant 0 : index
    %c0_49 = arith.constant 0 : index
    %179 = vector.load %arg15[%c0_48, %c0_49] : memref<32x64xbf16, #tpu.memory_space<vmem>>, vector<32x64xbf16>
    %cst_50 = arith.constant dense<0.000000e+00> : vector<8x64xf32>
    %180 = tpu.matmul %178, %179, %cst_50 {dimension_numbers = #tpu.dot_dimension_numbers<[1], [0], [0], [1], [0, 0, 1, 1], [], []>} : vector<8x32xbf16>, vector<32x64xbf16>, vector<8x64xf32> -> vector<8x64xf32>
    %c0_51 = arith.constant 0 : index
    %c0_52 = arith.constant 0 : index
    %181 = vector.load %arg16[%c0_51, %c0_52] : memref<1x64xf32, #tpu.memory_space<vmem>>, vector<1x64xf32>
    %182 = vector.broadcast %181 : vector<1x64xf32> to vector<8x64xf32>
    %183 = arith.addf %180, %182 : vector<8x64xf32>
    %cst_53 = arith.constant 0.000000e+00 : f32
    %184 = vector.broadcast %cst_53 : f32 to vector<8x64xf32>
    %185 = arith.maximumf %183, %184 : vector<8x64xf32>
    %186 = arith.truncf %185 : vector<8x64xf32> to vector<8x64xbf16>
    %c0_54 = arith.constant 0 : index
    %c0_55 = arith.constant 0 : index
    %187 = vector.load %arg17[%c0_54, %c0_55] : memref<64x32xbf16, #tpu.memory_space<vmem>>, vector<64x32xbf16>
    %cst_56 = arith.constant dense<0.000000e+00> : vector<8x32xf32>
    %188 = tpu.matmul %186, %187, %cst_56 {dimension_numbers = #tpu.dot_dimension_numbers<[1], [0], [0], [1], [0, 0, 1, 1], [], []>} : vector<8x64xbf16>, vector<64x32xbf16>, vector<8x32xf32> -> vector<8x32xf32>
    %c0_57 = arith.constant 0 : index
    %c0_58 = arith.constant 0 : index
    %189 = vector.load %arg18[%c0_57, %c0_58] : memref<1x32xf32, #tpu.memory_space<vmem>>, vector<1x32xf32>
    %190 = vector.broadcast %189 : vector<1x32xf32> to vector<8x32xf32>
    %191 = arith.addf %188, %190 : vector<8x32xf32>
    %c0_59 = arith.constant 0 : index
    %c0_60 = arith.constant 0 : index
    %192 = vector.load %arg24[%c0_59, %c0_60] : memref<8x32xf32, #tpu.memory_space<vmem>>, vector<8x32xf32>
    tpu.vector_store %arg24[%c0_59, %c0_60], %191 {strides = array<i32>} : memref<8x32xf32, #tpu.memory_space<vmem>>, vector<8x32xf32>,
    %193 = vector.shape_cast %159 : vector<64x32xf32> to vector<8x8x32xf32>
    %194 = vector.shape_cast %191 : vector<8x32xf32> to vector<8x1x32xf32>
    %195 = vector.broadcast %194 : vector<8x1x32xf32> to vector<8x8x32xf32>
    %196 = arith.subf %195, %193 : vector<8x8x32xf32>
    %197 = math.absf %196 : vector<8x8x32xf32>
    %198 = vector.shape_cast %1 : vector<8x16xf32> to vector<8x1x16xf32>
    %199 = vector.broadcast %198 : vector<8x1x16xf32> to vector<8x8x16xf32>
    %200 = arith.subf %199, %0 : vector<8x8x16xf32>
    %201 = math.absf %200 : vector<8x8x16xf32>
    %202 = tpu.concatenate %197, %201 in 2 : vector<8x8x32xf32>, vector<8x8x16xf32> -> vector<8x8x48xf32>
    %203 = vector.shape_cast %202 : vector<8x8x48xf32> to vector<64x48xf32>
    %204 = arith.truncf %203 : vector<64x48xf32> to vector<64x48xbf16>
    %c0_61 = arith.constant 0 : index
    %c0_62 = arith.constant 0 : index
    %205 = vector.load %arg19[%c0_61, %c0_62] : memref<48x32xbf16, #tpu.memory_space<vmem>>, vector<48x32xbf16>
    %cst_63 = arith.constant dense<0.000000e+00> : vector<64x32xf32>
    %206 = tpu.matmul %204, %205, %cst_63 {dimension_numbers = #tpu.dot_dimension_numbers<[1], [0], [0], [1], [0, 0, 1, 1], [], []>} : vector<64x48xbf16>, vector<48x32xbf16>, vector<64x32xf32> -> vector<64x32xf32>
    %c0_64 = arith.constant 0 : index
    %c0_65 = arith.constant 0 : index
    %207 = vector.load %arg20[%c0_64, %c0_65] : memref<1x32xf32, #tpu.memory_space<vmem>>, vector<1x32xf32>
    %208 = vector.broadcast %207 : vector<1x32xf32> to vector<64x32xf32>
    %209 = arith.addf %206, %208 : vector<64x32xf32>
    %cst_66 = arith.constant 0.000000e+00 : f32
    %210 = vector.broadcast %cst_66 : f32 to vector<64x32xf32>
    %211 = arith.maximumf %209, %210 : vector<64x32xf32>
    %212 = vector.shape_cast %211 : vector<64x32xf32> to vector<8x8x32xf32>
    %c0_67 = arith.constant 0 : index
    %c0_68 = arith.constant 0 : index
    %213 = vector.load %arg21[%c0_67, %c0_68] : memref<1x32xf32, #tpu.memory_space<vmem>>, vector<1x32xf32>
    %214 = vector.shape_cast %213 : vector<1x32xf32> to vector<1x1x32xf32>
    %215 = vector.broadcast %214 : vector<1x1x32xf32> to vector<8x8x32xf32>
    %216 = arith.mulf %212, %215 : vector<8x8x32xf32>
    %cst_69 = arith.constant dense<0.000000e+00> : vector<8x8xf32>
    %217 = vector.multi_reduction <add>, %216, %cst_69 [2] : vector<8x8x32xf32> to vector<8x8xf32>
    %c0_70 = arith.constant 0 : index
    %c0_71 = arith.constant 0 : index
    %218 = vector.load %arg22[%c0_70, %c0_71] : memref<1x1xf32, #tpu.memory_space<vmem>>, vector<1x1xf32>
    %219 = vector.broadcast %218 : vector<1x1xf32> to vector<8x8xf32>
    %220 = arith.addf %217, %219 : vector<8x8xf32>
    %c0_72 = arith.constant 0 : index
    %c0_73 = arith.constant 0 : index
    %221 = vector.load %arg26[%c0_72, %c0_73] : memref<8x8xf32, #tpu.memory_space<vmem>>, vector<8x8xf32>
    tpu.vector_store %arg26[%c0_72, %c0_73], %220 {strides = array<i32>} : memref<8x8xf32, #tpu.memory_space<vmem>>, vector<8x8xf32>,
    %222 = vector.extract_strided_slice %193 {offsets = [0, 0, 0], sizes = [8, 1, 32], strides = [1, 1, 1]} : vector<8x8x32xf32> to vector<8x1x32xf32>
    %223 = vector.shape_cast %222 : vector<8x1x32xf32> to vector<8x32xf32>
    %224 = vector.extract_strided_slice %193 {offsets = [0, 1, 0], sizes = [8, 1, 32], strides = [1, 1, 1]} : vector<8x8x32xf32> to vector<8x1x32xf32>
    %225 = vector.shape_cast %224 : vector<8x1x32xf32> to vector<8x32xf32>
    %226 = vector.extract_strided_slice %193 {offsets = [0, 2, 0], sizes = [8, 1, 32], strides = [1, 1, 1]} : vector<8x8x32xf32> to vector<8x1x32xf32>
    %227 = vector.shape_cast %226 : vector<8x1x32xf32> to vector<8x32xf32>
    %228 = vector.extract_strided_slice %193 {offsets = [0, 3, 0], sizes = [8, 1, 32], strides = [1, 1, 1]} : vector<8x8x32xf32> to vector<8x1x32xf32>
    %229 = vector.shape_cast %228 : vector<8x1x32xf32> to vector<8x32xf32>
    %230 = vector.extract_strided_slice %193 {offsets = [0, 4, 0], sizes = [8, 1, 32], strides = [1, 1, 1]} : vector<8x8x32xf32> to vector<8x1x32xf32>
    %231 = vector.shape_cast %230 : vector<8x1x32xf32> to vector<8x32xf32>
    %232 = vector.extract_strided_slice %193 {offsets = [0, 5, 0], sizes = [8, 1, 32], strides = [1, 1, 1]} : vector<8x8x32xf32> to vector<8x1x32xf32>
    %233 = vector.shape_cast %232 : vector<8x1x32xf32> to vector<8x32xf32>
    %234 = vector.extract_strided_slice %193 {offsets = [0, 6, 0], sizes = [8, 1, 32], strides = [1, 1, 1]} : vector<8x8x32xf32> to vector<8x1x32xf32>
    %235 = vector.shape_cast %234 : vector<8x1x32xf32> to vector<8x32xf32>
    %236 = vector.extract_strided_slice %193 {offsets = [0, 7, 0], sizes = [8, 1, 32], strides = [1, 1, 1]} : vector<8x8x32xf32> to vector<8x1x32xf32>
    %237 = vector.shape_cast %236 : vector<8x1x32xf32> to vector<8x32xf32>
    %238 = tpu.concatenate %223, %225, %227, %229, %231, %233, %235, %237 in 1 : vector<8x32xf32>, vector<8x32xf32>, vector<8x32xf32>, vector<8x32xf32>, vector<8x32xf32>, vector<8x32xf32>, vector<8x32xf32>, vector<8x32xf32> -> vector<8x256xf32>
    %c0_74 = arith.constant 0 : index
    %c0_75 = arith.constant 0 : index
    %239 = vector.load %arg23[%c0_74, %c0_75] : memref<8x256xf32, #tpu.memory_space<vmem>>, vector<8x256xf32>
    tpu.vector_store %arg23[%c0_74, %c0_75], %238 {strides = array<i32>} : memref<8x256xf32, #tpu.memory_space<vmem>>, vector<8x256xf32>,
    %240 = vector.shape_cast %176 : vector<64x32xf32> to vector<8x8x32xf32>
    %241 = vector.extract_strided_slice %240 {offsets = [0, 0, 0], sizes = [8, 1, 32], strides = [1, 1, 1]} : vector<8x8x32xf32> to vector<8x1x32xf32>
    %242 = vector.shape_cast %241 : vector<8x1x32xf32> to vector<8x32xf32>
    %243 = vector.extract_strided_slice %240 {offsets = [0, 1, 0], sizes = [8, 1, 32], strides = [1, 1, 1]} : vector<8x8x32xf32> to vector<8x1x32xf32>
    %244 = vector.shape_cast %243 : vector<8x1x32xf32> to vector<8x32xf32>
    %245 = vector.extract_strided_slice %240 {offsets = [0, 2, 0], sizes = [8, 1, 32], strides = [1, 1, 1]} : vector<8x8x32xf32> to vector<8x1x32xf32>
    %246 = vector.shape_cast %245 : vector<8x1x32xf32> to vector<8x32xf32>
    %247 = vector.extract_strided_slice %240 {offsets = [0, 3, 0], sizes = [8, 1, 32], strides = [1, 1, 1]} : vector<8x8x32xf32> to vector<8x1x32xf32>
    %248 = vector.shape_cast %247 : vector<8x1x32xf32> to vector<8x32xf32>
    %249 = vector.extract_strided_slice %240 {offsets = [0, 4, 0], sizes = [8, 1, 32], strides = [1, 1, 1]} : vector<8x8x32xf32> to vector<8x1x32xf32>
    %250 = vector.shape_cast %249 : vector<8x1x32xf32> to vector<8x32xf32>
    %251 = vector.extract_strided_slice %240 {offsets = [0, 5, 0], sizes = [8, 1, 32], strides = [1, 1, 1]} : vector<8x8x32xf32> to vector<8x1x32xf32>
    %252 = vector.shape_cast %251 : vector<8x1x32xf32> to vector<8x32xf32>
    %253 = vector.extract_strided_slice %240 {offsets = [0, 6, 0], sizes = [8, 1, 32], strides = [1, 1, 1]} : vector<8x8x32xf32> to vector<8x1x32xf32>
    %254 = vector.shape_cast %253 : vector<8x1x32xf32> to vector<8x32xf32>
    %255 = vector.extract_strided_slice %240 {offsets = [0, 7, 0], sizes = [8, 1, 32], strides = [1, 1, 1]} : vector<8x8x32xf32> to vector<8x1x32xf32>
    %256 = vector.shape_cast %255 : vector<8x1x32xf32> to vector<8x32xf32>
    %257 = tpu.concatenate %242, %244, %246, %248, %250, %252, %254, %256 in 1 : vector<8x32xf32>, vector<8x32xf32>, vector<8x32xf32>, vector<8x32xf32>, vector<8x32xf32>, vector<8x32xf32>, vector<8x32xf32>, vector<8x32xf32> -> vector<8x256xf32>
    %c0_76 = arith.constant 0 : index
    %c0_77 = arith.constant 0 : index
    %258 = vector.load %arg25[%c0_76, %c0_77] : memref<8x256xf32, #tpu.memory_space<vmem>>, vector<8x256xf32>
    tpu.vector_store %arg25[%c0_76, %c0_77], %257 {strides = array<i32>} : memref<8x256xf32, #tpu.memory_space<vmem>>, vector<8x256xf32>,
    return
  }
  func.func @transform_0(%arg0: i32) -> (i32, i32, i32) {
    %c0_i32 = arith.constant 0 : i32
    %c0_i32_0 = arith.constant 0 : i32
    %c0_i32_1 = arith.constant 0 : i32
    return %arg0, %c0_i32, %c0_i32_0 : i32, i32, i32
  }
  func.func @transform_1(%arg0: i32) -> (i32, i32) {
    %c0_i32 = arith.constant 0 : i32
    %c0_i32_0 = arith.constant 0 : i32
    return %arg0, %c0_i32 : i32, i32
  }
  func.func @transform_2(%arg0: i32) -> (i32, i32, i32) {
    %c0_i32 = arith.constant 0 : i32
    %c0_i32_0 = arith.constant 0 : i32
    %c0_i32_1 = arith.constant 0 : i32
    return %arg0, %c0_i32, %c0_i32_0 : i32, i32, i32
  }
  func.func @transform_3(%arg0: i32) -> (i32, i32, i32) {
    %c0_i32 = arith.constant 0 : i32
    %c0_i32_0 = arith.constant 0 : i32
    %c0_i32_1 = arith.constant 0 : i32
    return %arg0, %c0_i32, %c0_i32_0 : i32, i32, i32
  }
  func.func @transform_4(%arg0: i32) -> (i32, i32, i32) {
    %c0_i32 = arith.constant 0 : i32
    %c0_i32_0 = arith.constant 0 : i32
    %c0_i32_1 = arith.constant 0 : i32
    return %arg0, %c0_i32, %c0_i32_0 : i32, i32, i32
  }
  func.func @transform_5(%arg0: i32) -> (i32, i32) {
    %c0_i32 = arith.constant 0 : i32
    %c0_i32_0 = arith.constant 0 : i32
    return %arg0, %c0_i32 : i32, i32
  }
  func.func @transform_6(%arg0: i32) -> (i32, i32) {
    %c0_i32 = arith.constant 0 : i32
    %c0_i32_0 = arith.constant 0 : i32
    %c0_i32_1 = arith.constant 0 : i32
    return %c0_i32, %c0_i32_0 : i32, i32
  }
  func.func @transform_7(%arg0: i32) -> (i32, i32) {
    %c0_i32 = arith.constant 0 : i32
    %c0_i32_0 = arith.constant 0 : i32
    %c0_i32_1 = arith.constant 0 : i32
    return %c0_i32, %c0_i32_0 : i32, i32
  }
  func.func @transform_8(%arg0: i32) -> (i32, i32) {
    %c0_i32 = arith.constant 0 : i32
    %c0_i32_0 = arith.constant 0 : i32
    %c0_i32_1 = arith.constant 0 : i32
    return %c0_i32, %c0_i32_0 : i32, i32
  }
  func.func @transform_9(%arg0: i32) -> (i32, i32) {
    %c0_i32 = arith.constant 0 : i32
    %c0_i32_0 = arith.constant 0 : i32
    %c0_i32_1 = arith.constant 0 : i32
    return %c0_i32, %c0_i32_0 : i32, i32
  }
  func.func @transform_10(%arg0: i32) -> (i32, i32) {
    %c0_i32 = arith.constant 0 : i32
    %c0_i32_0 = arith.constant 0 : i32
    %c0_i32_1 = arith.constant 0 : i32
    return %c0_i32, %c0_i32_0 : i32, i32
  }
  func.func @transform_11(%arg0: i32) -> (i32, i32) {
    %c0_i32 = arith.constant 0 : i32
    %c0_i32_0 = arith.constant 0 : i32
    %c0_i32_1 = arith.constant 0 : i32
    return %c0_i32, %c0_i32_0 : i32, i32
  }
  func.func @transform_12(%arg0: i32) -> (i32, i32) {
    %c0_i32 = arith.constant 0 : i32
    %c0_i32_0 = arith.constant 0 : i32
    %c0_i32_1 = arith.constant 0 : i32
    return %c0_i32, %c0_i32_0 : i32, i32
  }
  func.func @transform_13(%arg0: i32) -> (i32, i32) {
    %c0_i32 = arith.constant 0 : i32
    %c0_i32_0 = arith.constant 0 : i32
    %c0_i32_1 = arith.constant 0 : i32
    return %c0_i32, %c0_i32_0 : i32, i32
  }
  func.func @transform_14(%arg0: i32) -> (i32, i32) {
    %c0_i32 = arith.constant 0 : i32
    %c0_i32_0 = arith.constant 0 : i32
    %c0_i32_1 = arith.constant 0 : i32
    return %c0_i32, %c0_i32_0 : i32, i32
  }
  func.func @transform_15(%arg0: i32) -> (i32, i32) {
    %c0_i32 = arith.constant 0 : i32
    %c0_i32_0 = arith.constant 0 : i32
    %c0_i32_1 = arith.constant 0 : i32
    return %c0_i32, %c0_i32_0 : i32, i32
  }
  func.func @transform_16(%arg0: i32) -> (i32, i32) {
    %c0_i32 = arith.constant 0 : i32
    %c0_i32_0 = arith.constant 0 : i32
    %c0_i32_1 = arith.constant 0 : i32
    return %c0_i32, %c0_i32_0 : i32, i32
  }
  func.func @transform_17(%arg0: i32) -> (i32, i32) {
    %c0_i32 = arith.constant 0 : i32
    %c0_i32_0 = arith.constant 0 : i32
    %c0_i32_1 = arith.constant 0 : i32
    return %c0_i32, %c0_i32_0 : i32, i32
  }
  func.func @transform_18(%arg0: i32) -> (i32, i32) {
    %c0_i32 = arith.constant 0 : i32
    %c0_i32_0 = arith.constant 0 : i32
    %c0_i32_1 = arith.constant 0 : i32
    return %c0_i32, %c0_i32_0 : i32, i32
  }
  func.func @transform_19(%arg0: i32) -> (i32, i32) {
    %c0_i32 = arith.constant 0 : i32
    %c0_i32_0 = arith.constant 0 : i32
    %c0_i32_1 = arith.constant 0 : i32
    return %c0_i32, %c0_i32_0 : i32, i32
  }
  func.func @transform_20(%arg0: i32) -> (i32, i32) {
    %c0_i32 = arith.constant 0 : i32
    %c0_i32_0 = arith.constant 0 : i32
    %c0_i32_1 = arith.constant 0 : i32
    return %c0_i32, %c0_i32_0 : i32, i32
  }
  func.func @transform_21(%arg0: i32) -> (i32, i32) {
    %c0_i32 = arith.constant 0 : i32
    %c0_i32_0 = arith.constant 0 : i32
    %c0_i32_1 = arith.constant 0 : i32
    return %c0_i32, %c0_i32_0 : i32, i32
  }
  func.func @transform_22(%arg0: i32) -> (i32, i32) {
    %c0_i32 = arith.constant 0 : i32
    %c0_i32_0 = arith.constant 0 : i32
    return %arg0, %c0_i32 : i32, i32
  }
  func.func @transform_23(%arg0: i32) -> (i32, i32) {
    %c0_i32 = arith.constant 0 : i32
    %c0_i32_0 = arith.constant 0 : i32
    return %arg0, %c0_i32 : i32, i32
  }
  func.func @transform_24(%arg0: i32) -> (i32, i32) {
    %c0_i32 = arith.constant 0 : i32
    %c0_i32_0 = arith.constant 0 : i32
    return %arg0, %c0_i32 : i32, i32
  }
  func.func @transform_25(%arg0: i32) -> (i32, i32) {
    %c0_i32 = arith.constant 0 : i32
    %c0_i32_0 = arith.constant 0 : i32
    return %arg0, %c0_i32 : i32, i32
  }
}

</mosaic_0001>

<bundles_post_ra>
// kernel: node_update_forward.1
= control target key start
LH: loop header
LB: loop body
LE: loop exit
PB: predicated region body
PF: predicated region fallthrough
CT: control target
= control target key end

     0   :  { %s7132_s0 = inlined_call_operand.vmem [shape: f32[16,8,16], index: 0, kind: input, shape index: {}]   ;;  %s7133_s1 = inlined_call_operand.vmem [shape: f32[16,16], index: 1, kind: input, shape index: {}]   ;;  %s7134_s2 = inlined_call_operand.vmem [shape: f32[16,8,16], index: 2, kind: input, shape index: {}]   ;;  %s7135_s3 = inlined_call_operand.vmem [shape: f32[16,8,8], index: 3, kind: input, shape index: {}]   ;;  %s7136_s4 = inlined_call_operand.vmem [shape: f32[16,8,8], index: 4, kind: input, shape index: {}]   ;;  %s7137_s5 = inlined_call_operand.vmem [shape: f32[16,8], index: 5, kind: input, shape index: {}]   ;;  %s7138_s6 = inlined_call_operand.vmem [shape: bf16[48,64], index: 6, kind: input, shape index: {}]   ;;  %s7139_s7 = inlined_call_operand.vmem [shape: f32[1,64], index: 7, kind: input, shape index: {}]   ;;  %s7140_s8 = inlined_call_operand.vmem [shape: bf16[64,32], index: 8, kind: input, shape index: {}]   ;;  %s7141_s9 = inlined_call_operand.vmem [shape: f32[1,32], index: 9, kind: input, shape index: {}]   ;;  %s7142_s10 = inlined_call_operand.vmem [shape: bf16[32,64], index: 10, kind: input, shape index: {}]   ;;  %s7143_s11 = inlined_call_operand.vmem [shape: f32[1,64], index: 11, kind: input, shape index: {}]   ;;  %s7144_s12 = inlined_call_operand.vmem [shape: bf16[64,32], index: 12, kind: input, shape index: {}]   ;;  %s7145_s13 = inlined_call_operand.vmem [shape: f32[1,32], index: 13, kind: input, shape index: {}]   ;;  %s7146_s14 = inlined_call_operand.vmem [shape: bf16[32,64], index: 14, kind: input, shape index: {}]   ;;  %s7147_s15 = inlined_call_operand.vmem [shape: f32[1,64], index: 15, kind: input, shape index: {}]   ;;  %s7148_s16 = inlined_call_operand.vmem [shape: bf16[64,32], index: 16, kind: input, shape index: {}]   ;;  %s7149_s17 = inlined_call_operand.vmem [shape: f32[1,32], index: 17, kind: input, shape index: {}]   ;;  %s7150_s18 = inlined_call_operand.vmem [shape: bf16[48,32], index: 18, kind: input, shape index: {}]   ;;  %s7151_s19 = inlined_call_operand.vmem [shape: f32[1,32], index: 19, kind: input, shape index: {}]   ;;  %s7152_s20 = inlined_call_operand.vmem [shape: f32[1,32], index: 20, kind: input, shape index: {}]   ;;  %s7153_s21 = inlined_call_operand.<no memory space> [shape: f32[1,1], index: 21, kind: input, shape index: {}]   ;;  %s7154_s22 = inlined_call_operand.vmem [shape: f32[16,256], index: 22, kind: output, shape index: {0}]   ;;  %s7155_s23 = inlined_call_operand.vmem [shape: f32[16,32], index: 23, kind: output, shape index: {1}]   ;;  %s7156_s24 = inlined_call_operand.vmem [shape: f32[16,256], index: 24, kind: output, shape index: {2}]   ;;  %s7157_s25 = inlined_call_operand.vmem [shape: f32[16,8], index: 25, kind: output, shape index: {3}]  }
   0x1   :  { %7201 = sst [smem:[#allocation82_spill]] %s7132_s0  ;;  %v31_v0 = vstv %s7153_s21 }
   0x2   :  { %7202 = sst [smem:[#allocation83_spill]] %s7133_s1  ;;  %32 = vst [vmem:[#allocation2] sm:$0x1] %v31_v0 }
   0x3   :  { %7203 = sst [smem:[#allocation84_spill]] %s7134_s2 }
   0x4   :  { %7204 = sst [smem:[#allocation85_spill]] %s7135_s3 }
   0x5   :  { %7205 = sst [smem:[#allocation86_spill]] %s7136_s4 }
   0x6   :  { %7206 = sst [smem:[#allocation87_spill]] %s7137_s5 }
   0x7   :  { %7207 = sst [smem:[#allocation88_spill]] %s7138_s6  ;;  %s5063_s6 = smov 0  }
   0x8   :  { %7208 = sst [smem:[#allocation89_spill]] %s7139_s7 }
   0x9   :  { %7209 = sst [smem:[#allocation90_spill]] %s7140_s8 }
   0xa   :  { %7210 = sst [smem:[#allocation91_spill]] %s7141_s9 }
   0xb LB: > { %s5069_s30 = sadd.s32 4294967295, %s4913_s6   ;;  %p4456_p0 = scmp.ge.s32.totalorder %s4913_s6, 1  ;;  %s4913_s6 = sphi %s5063_s6, %s38_s6  }
   0xc   : > { %p748_p1 = scmp.lt.s32.totalorder %s4913_s6, 3 }
   0xe   : > { %p749_p2 = pnand %p4456_p0, %p748_p1 }
  0x10   : > { %752 = sbr.rel (%p749_p2) target bundleno = 1844 (0x734), region = 108 }
  0x17   : > { %s4457_s7 = sshll.u32 %s5069_s30, 3  ;;  %v7164_v1 = vmov 1   ;;  %v7166_v2 = vmov 0   ;;  %s7211_s1 = sld [smem:[#allocation86_spill]]  ;;  %vm1585_vm0 = vcmask 64512   ;;  %v7168_v27 = vmov 2  }
  0x18   : > { %4697 = vset.pattern.permute.xlu1 %v7164_v1  ;;  %p853_p3 = scmp.lt.s32.totalorder %s4457_s7, 15  ;;  %4709 = vset.pattern.permute.xlu0 %v7166_v2  ;;  %s7212_s28 = sld [smem:[#allocation85_spill]]  ;;  %v7172_v42 = vmov 3   ;;  %v7174_v43 = vmov 7   ;;  %v7170_v44 = vmov 4   ;;  %v7160_v45 = vmov 6  }
  0x19   : > { %v7162_v46 = vmov 5   ;;  %s7262_s29 = sld [smem:[#allocation82_spill]]  ;;  %vm2410_vm1 = vcmask 130048   ;;  %p858_p4 = scmp.lt.s32.totalorder %s5069_s30, 1 }
  0x1a   : > { %s7469_s7 = smov (!%p853_p3, %s4457_s7), 15  ;;  %s7393_s5 = sld [smem:[#allocation87_spill]] }
  0x1b   : > { %s5076_s21 = sshll.u32 %s7469_s7, 3  ;;  %s4924_s7 = smov 16  }
  0x1c   : > { %s7471_s30 = smov (!%p858_p4, %s5069_s30), 1  ;;  %s7422_s3 = sld [smem:[#allocation88_spill]] }
  0x1d   : > { %s5082_s8 = scalar_lea.vmem %s7211_s1, %s5076_s21  ;;  %s7287_s1 = sld [smem:[#allocation84_spill]] }
  0x1e   : > { %v5085_v3 = vld [vmem:[%s5082_s8] sm:$0xff]  ;;  %v5088_v4 = vld [vmem:[%s5082_s8 + $0x8] sm:$0xff]  ;;  %s5094_s9 = scalar_lea.vmem %s7212_s28, %s5076_s21  ;;  %v5104_v9 = vld [vmem:[%s5082_s8 + $0x38] sm:$0xff]  ;;  %s6087_s27 = sshll.u32 %s7471_s30, 3 }
  0x1f   : > { %1018 = vperm.xlu1 %4697, %v5085_v3   ;;  %v1577_v5 = vand.u32 2147483647, %v5085_v3  ;;  %v1578_v6 = vand.u32 2147483647, %v5088_v4  ;;  %v5100_v7 = vld [vmem:[%s5082_s8 + $0x28] sm:$0xff]  ;;  %v5114_v15 = vld [vmem:[%s5094_s9 + $0x18] sm:$0xff]  ;;  %s5418_s2 = scalar_lea.vmem %s7262_s29, %s5076_s21 }
  0x20   : > { %v5107_v10 = vld [vmem:[%s5094_s9 + $0x8] sm:$0xff]  ;;  %v1582_v12 = vand.u32 2147483647, %v5100_v7  ;;  %v1584_v13 = vand.u32 2147483647, %v5104_v9  ;;  %v5122_v21 = vld [vmem:[%s5082_s8 + $0x10] sm:$0xff]  ;;  %s883_s0 = scalar_lea.vmem %s7393_s5, %s6087_s27 }
  0x21   : > { %v1586_v8 = vsel %vm1585_vm0, %v1577_v5, 0.0  ;;  %v1589_v11 = vsel %vm1585_vm0, %v1578_v6, 0.0  ;;  %v2283_v14 = vand.u32 2147483647, %v5107_v10  ;;  %v2285_v17 = vand.u32 2147483647, %v5114_v15 }
  0x22   : > { %1587 = vadd.xlane.f32.xlu0 %v1586_v8  ;;  %v1601_v16 = vsel %vm1585_vm0, %v1582_v12, 0.0  ;;  %v1607_v18 = vsel %vm1585_vm0, %v1584_v13, 0.0  ;;  %v1579_v22 = vand.u32 2147483647, %v5122_v21  ;;  %v5126_v23 = vld [vmem:[%s5082_s8 + $0x18] sm:$0xff]  ;;  %v5140_v28 = vld [vmem:[%s5094_s9 + $0x28] sm:$0xff] }
  0x23   : > { %v2293_v19 = vsel %vm1585_vm0, %v2283_v14, 0.0  ;;  %v2299_v20 = vsel %vm1585_vm0, %v2285_v17, 0.0  ;;  %v1580_v25 = vand.u32 2147483647, %v5126_v23  ;;  %v2287_v29 = vand.u32 2147483647, %v5140_v28 }
  0x24   : > { %v1592_v24 = vsel %vm1585_vm0, %v1579_v22, 0.0  ;;  %v5145_v30 = vld [vmem:[%s5094_s9 + $0x38] sm:$0xff]  ;;  %v5153_v34 = vld [vmem:[%s5082_s8 + $0x30] sm:$0xff]  ;;  %v5156_v35 = vld [vmem:[%s5082_s8 + $0x20] sm:$0xff]  ;;  %s5548_s8 = scalar_lea.vmem %s7287_s1, %s5076_s21  ;;  %s4925_s21 = smov 32  }
  0x25   : > { %v1595_v26 = vsel %vm1585_vm0, %v1580_v25, 0.0  ;;  %v2305_v31 = vsel %vm1585_vm0, %v2287_v29, 0.0  ;;  %v2289_v32 = vand.u32 2147483647, %v5145_v30  ;;  %v1581_v36 = vand.u32 2147483647, %v5156_v35 }
  0x26   : > { %1590 = vadd.xlane.f32.xlu0 %v1589_v11  ;;  %v1583_v38 = vand.u32 2147483647, %v5153_v34  ;;  %v5169_v40 = vld [vmem:[%s5094_s9 + $0x10] sm:$0xff]  ;;  %v5173_v41 = vld [vmem:[%s5094_s9 + $0x20] sm:$0xff]  ;;  %s7462_s4 = sld [smem:[#allocation83_spill]]  ;;  %s7465_s1 = sld [smem:[#allocation89_spill]] }
  0x27   : > { %v2311_v33 = vsel %vm1585_vm0, %v2289_v32, 0.0  ;;  %v1598_v37 = vsel %vm1585_vm0, %v1581_v36, 0.0  ;;  %v5228_v47 = vld [vmem:[%s5094_s9] sm:$0xff]  ;;  %v2284_v57 = vand.u32 2147483647, %v5169_v40  ;;  %s4929_s29 = smov 96  }
  0x28   : > { %v1604_v39 = vsel %vm1585_vm0, %v1583_v38, 0.0  ;;  %v2282_v48 = vand.u32 2147483647, %v5228_v47 }
  0x29   : > { %v2296_v59 = vsel %vm1585_vm0, %v2284_v57, 0.0 }
  0x2a   : > { %1602 = vadd.xlane.f32.xlu0 %v1601_v16  ;;  %v2290_v49 = vsel %vm1585_vm0, %v2282_v48, 0.0 }
  0x2c   : > { %s861_s28 = scalar_lea.vmem %s7462_s4, %s6087_s27  ;;  %s7466_s4 = sld [smem:[#allocation91_spill]] }
  0x2e   : > { %1608 = vadd.xlane.f32.xlu0 %v1607_v18 }
  0x32   : > { %2294 = vadd.xlane.f32.xlu0 %v2293_v19 }
  0x36   : > { %2300 = vadd.xlane.f32.xlu0 %v2299_v20 }
  0x43   : > { %1593 = vadd.xlane.f32.xlu1 %v1592_v24 }
  0x47   : > { %1596 = vadd.xlane.f32.xlu1 %v1595_v26 }
  0x4c   : > { %939 = vperm.xlu0 %4709, %v5085_v3  }
  0x50   : > { %1659 = vperm.xlu0 %4709, %v5114_v15  }
  0x54   : > { %4723 = vset.pattern.permute.xlu0 %v7164_v1 }
  0x58   : > { %1022 = vperm.xlu1 %4697, %v5088_v4  }
  0x5c   : > { %1026 = vperm.xlu1 %4697, %v5122_v21  }
  0x60   : > { %1030 = vperm.xlu1 %4697, %v5126_v23  }
  0x64   : > { %4698 = vset.pattern.permute.xlu1 %v7168_v27 }
  0x65   : > { %1098 = vperm.xlu1 %4698, %v5085_v3  }
  0x69   : > { %1106 = vperm.xlu1 %4698, %v5122_v21  }
  0x6d   : > { %1110 = vperm.xlu1 %4698, %v5126_v23  }
  0x6f   : > { %2306 = vadd.xlane.f32.xlu0 %v2305_v31 }
  0x71   : > { %4699 = vset.pattern.permute.xlu1 %v7166_v2 }
  0x73   : > { %2312 = vadd.xlane.f32.xlu0 %v2311_v33 }
  0x89   : > { %1042 = vperm.xlu0 %4723, %v5153_v34  }
  0x8d   : > { %1751 = vperm.xlu0 %4723, %v5145_v30  }
  0x91   : > { %1599 = vadd.xlane.f32.xlu1 %v1598_v37  ;;  %4729 = vset.pattern.permute.xlu0 %v7168_v27 }
  0x92   : > { %1102 = vperm.xlu0 %4729, %v5088_v4  }
  0x95   : > { %1605 = vadd.xlane.f32.xlu1 %v1604_v39 }
  0x96   : > { %1126 = vperm.xlu0 %4729, %v5104_v9  }
  0x9a   : > { %1807 = vperm.xlu0 %4729, %v5107_v10  }
  0x9e   : > { %1811 = vperm.xlu0 %4729, %v5169_v40   ;;  %v5240_v50 = vpop.permute.xlu1 %1018 }
  0xa2   : > { %1819 = vperm.xlu0 %4729, %v5173_v41  }
  0xa6   : > { %944 = vperm.xlu1 %4699, %v5088_v4   ;;  %4731 = vset.pattern.permute.xlu0 %v7172_v42 }
  0xa7   : > { %1178 = vperm.xlu0 %4731, %v5085_v3  }
  0xaa   : > { %949 = vperm.xlu1 %4699, %v5122_v21  }
  0xab   : > { %1186 = vperm.xlu0 %4731, %v5122_v21  }
  0xae   : > { %954 = vperm.xlu1 %4699, %v5126_v23  }
  0xaf   : > { %1194 = vperm.xlu0 %4731, %v5156_v35   ;;  %v5263_v61 = vpop.xlane.xlu0 %1587 }
  0xb2   : > { %959 = vperm.xlu1 %4699, %v5156_v35  }
  0xb3   : > { %1202 = vperm.xlu0 %4731, %v5153_v34   ;;  %v5267_v63 = vpop.xlane.xlu0 %1590 }
  0xb6   : > { %964 = vperm.xlu1 %4699, %v5100_v7  }
  0xb7   : > { %1887 = vperm.xlu0 %4731, %v5107_v10   ;;  %v5272_v5 = vpop.xlane.xlu0 %1602 }
  0xba   : > { %4700 = vset.pattern.permute.xlu1 %v7164_v1 }
  0xbb   : > { %1034 = vperm.xlu1 %4700, %v5156_v35   ;;  %1899 = vperm.xlu0 %4731, %v5173_v41   ;;  %v5277_v8 = vpop.xlane.xlu0 %1608 }
  0xbf   : > { %1038 = vperm.xlu1 %4700, %v5100_v7   ;;  %4736 = vset.pattern.permute.xlu0 %v7174_v43  ;;  %v5283_v12 = vpop.xlane.xlu0 %2294 }
  0xc0   : > { %1502 = vperm.xlu0 %4736, %v5088_v4   ;;  %7215 = vst [vmem:[#allocation5_spill] sm:$0xff] %v5283_v12 }
  0xc3   : > { %4701 = vset.pattern.permute.xlu1 %v7166_v2  ;;  %v5289_v14 = vpop.xlane.xlu0 %2300 }
  0xc4   : > { %969 = vperm.xlu1 %4701, %v5153_v34   ;;  %1514 = vperm.xlu0 %4736, %v5156_v35   ;;  %7217 = vst [vmem:[#allocation7_spill] sm:$0xff] %v5289_v14 }
  0xc8   : > { %974 = vperm.xlu1 %4701, %v5104_v9   ;;  %1522 = vperm.xlu0 %4736, %v5153_v34  }
  0xcb   : > { %v5294_v17 = vpop.permute.xlu0 %939 }
  0xcc   : > { %4702 = vset.pattern.permute.xlu1 %v7164_v1  ;;  %2207 = vperm.xlu0 %4736, %v5107_v10  }
  0xcd   : > { %1046 = vperm.xlu1 %4702, %v5104_v9  }
  0xcf   : > { %v5300_v19 = vpop.permute.xlu0 %1659 }
  0xd0   : > { %2211 = vperm.xlu0 %4736, %v5169_v40   ;;  %v5243_v51 = vpop.xlane.xlu1 %1593  ;;  %7220 = vst [vmem:[#allocation10_spill] sm:$0xff] %v5300_v19 }
  0xd1   : > { %4703 = vset.pattern.permute.xlu1 %v7168_v27 }
  0xd2   : > { %1114 = vperm.xlu1 %4703, %v5156_v35  }
  0xd4   : > { %4740 = vset.pattern.permute.xlu0 %v7170_v44  ;;  %v5246_v52 = vpop.xlane.xlu1 %1596 }
  0xd5   : > { %1258 = vperm.xlu0 %4740, %v5085_v3  }
  0xd6   : > { %1118 = vperm.xlu1 %4703, %v5100_v7  }
  0xd8   : > { %v5249_v53 = vpop.permute.xlu1 %1022 }
  0xd9   : > { %1278 = vperm.xlu0 %4740, %v5100_v7  }
  0xda   : > { %4704 = vset.pattern.permute.xlu1 %v7160_v45 }
  0xdb   : > { %1422 = vperm.xlu1 %4704, %v5088_v4  }
  0xdc   : > { %v5251_v54 = vpop.permute.xlu1 %1026 }
  0xdd   : > { %1967 = vperm.xlu0 %4740, %v5107_v10  }
  0xdf   : > { %4705 = vset.pattern.permute.xlu1 %v7168_v27 }
  0xe0   : > { %1122 = vperm.xlu1 %4705, %v5153_v34   ;;  %v5253_v55 = vpop.permute.xlu1 %1030 }
  0xe1   : > { %1979 = vperm.xlu0 %4740, %v5173_v41  }
  0xe4   : > { %4706 = vset.pattern.permute.xlu1 %v7160_v45  ;;  %v5255_v56 = vpop.permute.xlu1 %1098 }
  0xe5   : > { %1426 = vperm.xlu1 %4706, %v5122_v21   ;;  %1991 = vperm.xlu0 %4740, %v5145_v30  }
  0xe8   : > { %v5258_v58 = vpop.permute.xlu1 %1106 }
  0xe9   : > { %1430 = vperm.xlu1 %4706, %v5126_v23   ;;  %4743 = vset.pattern.permute.xlu0 %v7162_v46 }
  0xea   : > { %1342 = vperm.xlu0 %4743, %v5088_v4  }
  0xec   : > { %v5261_v60 = vpop.permute.xlu1 %1110 }
  0xed   : > { %4707 = vset.pattern.permute.xlu1 %v7172_v42  ;;  %7213 = vst [vmem:[#allocation3_spill] sm:$0xff] %v5261_v60 }
  0xee   : > { %1350 = vperm.xlu0 %4743, %v5126_v23  }
  0xf2   : > { %2063 = vperm.xlu0 %4743, %v5140_v28  }
  0xf6   : > { %4745 = vset.pattern.permute.xlu0 %v7160_v45 }
  0xf7   : > { %1418 = vperm.xlu0 %4745, %v5085_v3  }
  0xfb   : > { %1434 = vperm.xlu0 %4745, %v5156_v35  }
  0xfc   : > { %v5306_v22 = vpop.xlane.xlu0 %2306 }
  0xfd   : > { %7222 = vst [vmem:[#allocation12_spill] sm:$0xff] %v5306_v22 }
  0xff   : > { %2127 = vperm.xlu0 %4745, %v5107_v10  }
 0x100   : > { %v5312_v25 = vpop.xlane.xlu0 %2312 }
 0x101   : > { %7224 = vst [vmem:[#allocation14_spill] sm:$0xff] %v5312_v25 }
 0x103   : > { %2131 = vperm.xlu0 %4745, %v5169_v40  }
 0x107   : > { %2139 = vperm.xlu0 %4745, %v5173_v41  }
 0x108   : > { %v5318_v29 = vpop.permute.xlu0 %1042 }
 0x109   : > { %7226 = vst [vmem:[#allocation16_spill] sm:$0xff] %v5318_v29 }
 0x10b   : > { %2151 = vperm.xlu0 %4745, %v5145_v30  }
 0x10c   : > { %v5324_v32 = vpop.permute.xlu0 %1751 }
 0x10d   : > { %2291 = vadd.xlane.f32.xlu1 %v2290_v49  ;;  %7228 = vst [vmem:[#allocation18_spill] sm:$0xff] %v5324_v32 }
 0x10f   : > { %4748 = vset.pattern.permute.xlu0 %v7174_v43 }
 0x110   : > { %2223 = vperm.xlu0 %4748, %v5140_v28  }
 0x111   : > { %v5331_v36 = vpop.permute.xlu0 %1102 }
 0x112   : > { %7230 = vst [vmem:[#allocation20_spill] sm:$0xff] %v5331_v36 }
 0x114   : > { %4830 = vset.pattern.permute.xlu0 %v7166_v2 }
 0x115   : > { %v5337_v38 = vpop.permute.xlu0 %1126 }
 0x116   : > { %7232 = vst [vmem:[#allocation22_spill] sm:$0xff] %v5337_v38 }
 0x119   : > { %v5343_v48 = vpop.permute.xlu0 %1807 }
 0x11d   : > { %v5349_v57 = vpop.permute.xlu0 %1811 }
 0x11e   : > { %1182 = vperm.xlu1 %4707, %v5088_v4   ;;  %v5265_v62 = vpop.xlane.xlu1 %1599  ;;  %7235 = vst [vmem:[#allocation25_spill] sm:$0xff] %v5349_v57  ;;  %v2286_v57 = vand.u32 2147483647, %v5173_v41 }
 0x120   : > { %v2302_v14 = vsel %vm1585_vm0, %v2286_v57, 0.0 }
 0x122   : > { %1190 = vperm.xlu1 %4707, %v5126_v23   ;;  %v5269_v0 = vpop.xlane.xlu1 %1605 }
 0x123   : > { %7214 = vst [vmem:[#allocation4_spill] sm:$0xff] %v5269_v0 }
 0x126   : > { %1198 = vperm.xlu1 %4707, %v5100_v7   ;;  %v5274_v6 = vpop.permute.xlu1 %944 }
 0x12a   : > { %1206 = vperm.xlu1 %4707, %v5104_v9   ;;  %v5279_v11 = vpop.permute.xlu1 %949 }
 0x12e   : > { %4708 = vset.pattern.permute.xlu1 %v7162_v46  ;;  %v5285_v13 = vpop.permute.xlu1 %954 }
 0x12f   : > { %7216 = vst [vmem:[#allocation6_spill] sm:$0xff] %v5285_v13 }
 0x132   : > { %v5291_v16 = vpop.permute.xlu1 %959 }
 0x133   : > { %7218 = vst [vmem:[#allocation8_spill] sm:$0xff] %v5291_v16  ;;  %v7269_v16 = vmov 4  }
 0x136   : > { %v5297_v18 = vpop.permute.xlu1 %964 }
 0x137   : > { %7219 = vst [vmem:[#allocation9_spill] sm:$0xff] %v5297_v18 }
 0x13a   : > { %v5303_v20 = vpop.permute.xlu1 %1034 }
 0x13b   : > { %7221 = vst [vmem:[#allocation11_spill] sm:$0xff] %v5303_v20 }
 0x13e   : > { %v5309_v24 = vpop.permute.xlu1 %1038 }
 0x13f   : > { %7223 = vst [vmem:[#allocation13_spill] sm:$0xff] %v5309_v24 }
 0x143   : > { %v5315_v26 = vpop.permute.xlu1 %969 }
 0x144   : > { %7225 = vst [vmem:[#allocation15_spill] sm:$0xff] %v5315_v26 }
 0x147   : > { %v5322_v31 = vpop.permute.xlu1 %974 }
 0x148   : > { %7227 = vst [vmem:[#allocation17_spill] sm:$0xff] %v5322_v31 }
 0x14c   : > { %v5327_v33 = vpop.permute.xlu1 %1046 }
 0x14d   : > { %7229 = vst [vmem:[#allocation19_spill] sm:$0xff] %v5327_v33 }
 0x14e   : > { %2297 = vadd.xlane.f32.xlu1 %v2296_v59 }
 0x151   : > { %v5333_v37 = vpop.permute.xlu1 %1114 }
 0x152   : > { %7231 = vst [vmem:[#allocation21_spill] sm:$0xff] %v5333_v37 }
 0x155   : > { %v5340_v39 = vpop.permute.xlu1 %1118 }
 0x156   : > { %7233 = vst [vmem:[#allocation23_spill] sm:$0xff] %v5340_v39 }
 0x15a   : > { %v5346_v49 = vpop.permute.xlu1 %1422 }
 0x15b   : > { %7234 = vst [vmem:[#allocation24_spill] sm:$0xff] %v5346_v49  ;;  %v7267_v49 = vmov 3  }
 0x15f   : > { %1338 = vperm.xlu1 %4708, %v5085_v3   ;;  %v5352_v59 = vpop.permute.xlu1 %1122 }
 0x160   : > { %7236 = vst [vmem:[#allocation26_spill] sm:$0xff] %v5352_v59 }
 0x163   : > { %1346 = vperm.xlu1 %4708, %v5122_v21  }
 0x167   : > { %1354 = vperm.xlu1 %4708, %v5156_v35  }
 0x16b   : > { %1358 = vperm.xlu1 %4708, %v5100_v7  }
 0x16f   : > { %4710 = vset.pattern.permute.xlu1 %v7166_v2 }
 0x170   : > { %1644 = vperm.xlu1 %4710, %v5228_v47  }
 0x174   : > { %1649 = vperm.xlu1 %4710, %v5107_v10  }
 0x178   : > { %4711 = vset.pattern.permute.xlu1 %v7164_v1 }
 0x179   : > { %1723 = vperm.xlu1 %4711, %v5228_v47  }
 0x17d   : > { %1727 = vperm.xlu1 %4711, %v5107_v10  }
 0x181   : > { %4712 = vset.pattern.permute.xlu1 %v7162_v46  ;;  %v5358_v46 = vpop.permute.xlu1 %1426 }
 0x182   : > { %1362 = vperm.xlu1 %4712, %v5153_v34   ;;  %7238 = vst [vmem:[#allocation28_spill] sm:$0xff] %v5358_v46 }
 0x186   : > { %1366 = vperm.xlu1 %4712, %v5104_v9  }
 0x18a   : > { %4713 = vset.pattern.permute.xlu1 %v7166_v2  ;;  %v5363_v2 = vpop.permute.xlu1 %1430 }
 0x18b   : > { %1654 = vperm.xlu1 %4713, %v5169_v40   ;;  %7240 = vst [vmem:[#allocation30_spill] sm:$0xff] %v5363_v2 }
 0x18f   : > { %4714 = vset.pattern.permute.xlu1 %v7164_v1 }
 0x190   : > { %1731 = vperm.xlu1 %4714, %v5169_v40  }
 0x194   : > { %1735 = vperm.xlu1 %4714, %v5114_v15  }
 0x198   : > { %4715 = vset.pattern.permute.xlu1 %v7160_v45 }
 0x199   : > { %1438 = vperm.xlu1 %4715, %v5100_v7  }
 0x19a   : > { %v5367_v44 = vpop.xlane.xlu1 %2291 }
 0x19b   : > { %7242 = vst [vmem:[#allocation32_spill] sm:$0xff] %v5367_v44 }
 0x19d   : > { %4716 = vset.pattern.permute.xlu1 %v7168_v27 }
 0x19e   : > { %1803 = vperm.xlu1 %4716, %v5228_v47   ;;  %v5371_v22 = vpop.permute.xlu1 %1182 }
 0x19f   : > { %7244 = vst [vmem:[#allocation34_spill] sm:$0xff] %v5371_v22 }
 0x1a2   : > { %4717 = vset.pattern.permute.xlu1 %v7160_v45  ;;  %v5356_v45 = vpop.permute.xlu0 %1819  ;;  %v5375_v32 = vpop.permute.xlu1 %1190 }
 0x1a3   : > { %1442 = vperm.xlu1 %4717, %v5153_v34   ;;  %7237 = vst [vmem:[#allocation27_spill] sm:$0xff] %v5356_v45  ;;  %7246 = vst [vmem:[#allocation36_spill] sm:$0xff] %v5375_v32 }
 0x1a6   : > { %v5361_v1 = vpop.permute.xlu0 %1178 }
 0x1a7   : > { %1446 = vperm.xlu1 %4717, %v5104_v9   ;;  %7239 = vst [vmem:[#allocation29_spill] sm:$0xff] %v5361_v1 }
 0x1ab   : > { %4718 = vset.pattern.permute.xlu1 %v7168_v27  ;;  %v5365_v27 = vpop.permute.xlu0 %1186 }
 0x1ac   : > { %1815 = vperm.xlu1 %4718, %v5114_v15   ;;  %7241 = vst [vmem:[#allocation31_spill] sm:$0xff] %v5365_v27 }
 0x1af   : > { %v5369_v25 = vpop.permute.xlu0 %1194 }
 0x1b0   : > { %4719 = vset.pattern.permute.xlu1 %v7172_v42  ;;  %7243 = vst [vmem:[#allocation33_spill] sm:$0xff] %v5369_v25  ;;  %v5463_v25 = vld [vmem:[%s5094_s9 + $0x30] sm:$0xff] }
 0x1b1   : > { %1883 = vperm.xlu1 %4719, %v5228_v47  }
 0x1b3   : > { %v5373_v42 = vpop.permute.xlu0 %1202 }
 0x1b4   : > { %7245 = vst [vmem:[#allocation35_spill] sm:$0xff] %v5373_v42 }
 0x1b5   : > { %4720 = vset.pattern.permute.xlu1 %v7174_v43  ;;  %v5378_v43 = vpop.permute.xlu1 %1198 }
 0x1b6   : > { %7247 = vst [vmem:[#allocation37_spill] sm:$0xff] %v5378_v43 }
 0x1b7   : > { %v1888_v19 = vpop.permute.xlu0 %1887 }
 0x1b9   : > { %v5383_v45 = vpop.permute.xlu1 %1206 }
 0x1ba   : > { %7249 = vst [vmem:[#allocation39_spill] sm:$0xff] %v5383_v45 }
 0x1bb   : > { %v5381_v12 = vpop.permute.xlu0 %1899 }
 0x1bc   : > { %7248 = vst [vmem:[#allocation38_spill] sm:$0xff] %v5381_v12 }
 0x1bf   : > { %v5385_v44 = vpop.permute.xlu0 %1502 }
 0x1c0   : > { %7250 = vst [vmem:[#allocation40_spill] sm:$0xff] %v5385_v44 }
 0x1c3   : > { %v5391_v0 = vpop.permute.xlu0 %1514 }
 0x1c4   : > { %7253 = vst [vmem:[#allocation43_spill] sm:$0xff] %v5391_v0 }
 0x1c7   : > { %v5395_v33 = vpop.permute.xlu0 %1522 }
 0x1c8   : > { %7255 = vst [vmem:[#allocation45_spill] sm:$0xff] %v5395_v33 }
 0x1cb   : > { %v5403_v12 = vpop.permute.xlu0 %2207 }
 0x1cc   : > { %7258 = vst [vmem:[#allocation48_spill] sm:$0xff] %v5403_v12  ;;  %v5421_v12 = vld [vmem:[%s5418_s2 + $0x8] sm:$0xff] }
 0x1cf   : > { %v5408_v22 = vpop.permute.xlu0 %2211 }
 0x1d0   : > { %7260 = vst [vmem:[#allocation50_spill] sm:$0xff] %v5408_v22 }
 0x1d5   : > { %2303 = vadd.xlane.f32.xlu1 %v2302_v14 }
 0x1db   : > { %v5387_v2 = vpop.xlane.xlu1 %2297 }
 0x1dc   : > { %7251 = vst [vmem:[#allocation41_spill] sm:$0xff] %v5387_v2  ;;  %v7177_v2 = vlaneseq }
 0x1df   : > { %v5389_v46 = vpop.permute.xlu1 %1338 }
 0x1e0   : > { %7252 = vst [vmem:[#allocation42_spill] sm:$0xff] %v5389_v46 }
 0x1e3   : > { %v5393_v32 = vpop.permute.xlu1 %1346 }
 0x1e4   : > { %7254 = vst [vmem:[#allocation44_spill] sm:$0xff] %v5393_v32  ;;  %v5412_v32 = vshrl.u32 %v7177_v2, 7  ;;  %v5433_v2 = vpop.permute.xlu0 %1258 }
 0x1e5   : > { %7265 = vst [vmem:[#allocation54_spill] sm:$0xff] %v5433_v2 }
 0x1e6   : > { %1498 = vperm.xlu1 %4720, %v5085_v3   ;;  %7261 = vst [vmem:[#allocation51_spill] sm:$0xff] %v5412_v32  ;;  %v5428_v22 = vsub.s32 0, %v5412_v32  ;;  %v5450_v0 = vsub.s32 4, %v5412_v32 }
 0x1e7   : > { %v5398_v57 = vpop.permute.xlu1 %1354 }
 0x1e8   : > { %7256 = vst [vmem:[#allocation46_spill] sm:$0xff] %v5398_v57  ;;  %v5440_v57 = vsub.s32 3, %v5412_v32  ;;  %v1689_v46 = vrot.slane %v5421_v12, %v5428_v22  ;;  %v2001_v2 = vrot.slane %v5421_v12, %v5450_v0 }
 0x1ea   : > { %1506 = vperm.xlu1 %4720, %v5122_v21   ;;  %v1921_v31 = vrot.slane %v5421_v12, %v5440_v57 }
 0x1eb   : > { %v5401_v14 = vpop.permute.xlu1 %1358 }
 0x1ec   : > { %7257 = vst [vmem:[#allocation47_spill] sm:$0xff] %v5401_v14  ;;  %v1947_v18 = vmul.f32 %v1921_v31, %v1888_v19 }
 0x1ee   : > { %1510 = vperm.xlu1 %4720, %v5126_v23  }
 0x1ef   : > { %v5406_v45 = vpop.permute.xlu1 %1644 }
 0x1f0   : > { %7259 = vst [vmem:[#allocation49_spill] sm:$0xff] %v5406_v45  ;;  %v5425_v45 = vsub.s32 1, %v5412_v32 }
 0x1f2   : > { %1518 = vperm.xlu1 %4720, %v5100_v7   ;;  %7263 = vst [vmem:[#allocation52_spill] sm:$0xff] %v5425_v45  ;;  %v5431_v7 = vsub.s32 2, %v5412_v32  ;;  %v1761_v43 = vrot.slane %v5421_v12, %v5425_v45 }
 0x1f3   : > { %v1650_v3 = vpop.permute.xlu1 %1649 }
 0x1f4   : > { %7264 = vst [vmem:[#allocation53_spill] sm:$0xff] %v5431_v7  ;;  %v1841_v14 = vrot.slane %v5421_v12, %v5431_v7  ;;  %v1715_v44 = vmul.f32 %v1689_v46, %v1650_v3  ;;  %v7178_v3 = vmov 0.0  }
 0x1f6   : > { %1526 = vperm.xlu1 %4720, %v5104_v9   ;;  %v1867_v39 = vmul.f32 %v1841_v14, %v5343_v48  ;;  %v2288_v48 = vand.u32 2147483647, %v5463_v25  ;;  %v903_v14 = vld [vmem:[%s5418_s2] sm:$0xff] }
 0x1f8   : > { %v5435_v33 = vpop.permute.xlu1 %1723 }
 0x1f9   : > { %7266 = vst [vmem:[#allocation55_spill] sm:$0xff] %v5435_v33  ;;  %v5453_v33 = vpop.permute.xlu0 %1278 }
 0x1fa   : > { %4721 = vset.pattern.permute.xlu1 %v7267_v49  ;;  %7268 = vst [vmem:[#allocation56_spill] sm:$0xff] %v5453_v33 }
 0x1fb   : > { %1891 = vperm.xlu1 %4721, %v5169_v40  }
 0x1fc   : > { %v1728_v59 = vpop.permute.xlu1 %1727 }
 0x1fd   : > { %v1787_v26 = vmul.f32 %v1761_v43, %v1728_v59  ;;  %v1968_v49 = vpop.permute.xlu0 %1967  ;;  %v2467_v43 = vsel %vm2410_vm1, %v903_v14, -inf }
 0x1fe   : > { %v2027_v37 = vmul.f32 %v2001_v2, %v1968_v49  ;;  %v2468_v46 = vrot.slane %v2467_v43, 4  ;;  %v2308_v2 = vsel %vm1585_vm0, %v2288_v48, 0.0 }
 0x1ff   : > { %v1795_v42 = vadd.f32 %v1787_v26, %v1715_v44  ;;  %1895 = vperm.xlu1 %4721, %v5114_v15   ;;  %v2474_v44 = vsel %vm2410_vm1, %v5421_v12, -inf }
 0x200   : > { %v2475_v19 = vrot.slane %v2474_v44, 4 }
 0x201   : > { %v1875_v24 = vadd.f32 %v1867_v39, %v1795_v42  ;;  %v2469_v42 = vmax.f32 %v2467_v43, %v2468_v46 }
 0x202   : > { %v2476_v26 = vmax.f32 %v2474_v44, %v2475_v19 }
 0x203   : > { %4722 = vset.pattern.permute.xlu1 %v7269_v16  ;;  %v1955_v20 = vadd.f32 %v1947_v18, %v1875_v24  ;;  %v2470_v18 = vrot.slane %v2469_v42, 2 }
 0x205   : > { %v5460_v33 = vadd.f32 %v2027_v37, %v1955_v20  ;;  %v2477_v20 = vrot.slane %v2476_v26, 2  ;;  %v2471_v24 = vmax.f32 %v2469_v42, %v2470_v18 }
 0x207   : > { %7270 = vst [vmem:[#allocation57_spill] sm:$0xff] %v5460_v33  ;;  %v2478_v31 = vmax.f32 %v2476_v26, %v2477_v20  ;;  %v2472_v37 = vrot.slane %v2471_v24, 1 }
 0x209   : > { %v2479_v39 = vrot.slane %v2478_v31, 1  ;;  %v2473_v49 = vmax.f32 %v2471_v24, %v2472_v37 }
 0x20b   : > { %v2480_v59 = vmax.f32 %v2478_v31, %v2479_v39  ;;  %vm2523_vm2 = vcmp.eq.f32.partialorder %v903_v14, %v2473_v49 }
 0x20c   : > { %v4473_v33 = vsel %vm2523_vm2, 1.0, %v7178_v3  ;;  %v2603_v46 = vsel %vm2523_vm2, -inf, %v903_v14  ;;  %v5531_v14 = vld [vmem:[%s5418_s2 + $0x20] sm:$0xff] }
 0x20d   : > { %vm2524_vm3 = vcmp.eq.f32.partialorder %v5421_v12, %v2480_v59  ;;  %v2547_v43 = vsel %vm2410_vm1, %v4473_v33, 0.0  ;;  %v2611_v26 = vsel %vm2410_vm1, %v2603_v46, -inf  ;;  %7284 = vst [vmem:[#allocation68_spill] sm:$0xff] %v5531_v14 }
 0x20e   : > { %v4474_v48 = vsel %vm2524_vm3, 1.0, %v7178_v3  ;;  %v2604_v19 = vsel %vm2524_vm3, -inf, %v5421_v12  ;;  %v2612_v18 = vrot.slane %v2611_v26, 4 }
 0x20f   : > { %v2554_v44 = vsel %vm2410_vm1, %v4474_v48, 0.0  ;;  %v2618_v20 = vsel %vm2410_vm1, %v2604_v19, -inf }
 0x210   : > { %v2555_v42 = vrot.slane %v2554_v44, 4  ;;  %v2619_v37 = vrot.slane %v2618_v20, 4  ;;  %v2613_v39 = vmax.f32 %v2611_v26, %v2612_v18 }
 0x212   : > { %v2556_v31 = vadd.f32 %v2555_v42, %v2554_v44  ;;  %v2620_v48 = vmax.f32 %v2618_v20, %v2619_v37  ;;  %v2614_v16 = vrot.slane %v2613_v39, 2  ;;  %v5555_v37 = vld [vmem:[%s5548_s8] sm:$0xff] }
 0x214   : > { %v2557_v3 = vrot.slane %v2556_v31, 2  ;;  %v2621_v38 = vrot.slane %v2620_v48, 2  ;;  %v2615_v1 = vmax.f32 %v2613_v39, %v2614_v16  ;;  %v5558_v39 = vld [vmem:[%s5548_s8 + $0x8] sm:$0xff] }
 0x216   : > { %v2558_v27 = vadd.f32 %v2557_v3, %v2556_v31  ;;  %v2622_v46 = vmax.f32 %v2620_v48, %v2621_v38  ;;  %v2616_v60 = vrot.slane %v2615_v1, 1  ;;  %v5564_v48 = vld [vmem:[%s5548_s8 + $0x18] sm:$0xff] }
 0x217   : > { %7290 = vst [vmem:[#allocation73_spill] sm:$0xff] %v5564_v48 }
 0x218   : > { %v2559_v29 = vrot.slane %v2558_v27, 1  ;;  %v2623_v19 = vrot.slane %v2622_v46, 1 }
 0x21a   : > { %v2560_v44 = vadd.f32 %v2559_v29, %v2558_v27  ;;  %v2624_v42 = vmax.f32 %v2622_v46, %v2623_v19  ;;  %v1052_v19 = vrot.slane %v5555_v37, %v5425_v45 }
 0x21c   : > { %vm2668_vm5 = vcmp.gt.f32.partialorder %v2560_v44, 1.0 }
 0x223   : > { %2309 = vadd.xlane.f32.xlu1 %v2308_v2  ;;  %v2548_v2 = vrot.slane %v2547_v43, 4 }
 0x225   : > { %v2549_v24 = vadd.f32 %v2548_v2, %v2547_v43  ;;  %v2617_v2 = vmax.f32 %v2615_v1, %v2616_v60 }
 0x227   : > { %v2550_v33 = vrot.slane %v2549_v24, 2 }
 0x229   : > { %v2551_v13 = vadd.f32 %v2550_v33, %v2549_v24  ;;  %v5561_v33 = vld [vmem:[%s5548_s8 + $0x10] sm:$0xff] }
 0x22a   : > { %7289 = vst [vmem:[#allocation72_spill] sm:$0xff] %v5561_v33 }
 0x22b   : > { %v2552_v36 = vrot.slane %v2551_v13, 1 }
 0x22d   : > { %v2553_v43 = vadd.f32 %v2552_v36, %v2551_v13  ;;  %v7280_v13 = vmov 5  }
 0x22f   : > { %vm2667_vm4 = vcmp.gt.f32.partialorder %v2553_v43, 1.0  ;;  %v5567_v43 = vld [vmem:[%s5548_s8 + $0x30] sm:$0xff] }
 0x230   : > { %v2675_v26 = vsel %vm2667_vm4, %v2473_v49, %v2617_v2  ;;  %v980_v2 = vrot.slane %v5555_v37, %v5428_v22  ;;  %vm2763_vm4 = vcmask 261120  }
 0x231   : > { %v2683_v3 = vsel %vm2523_vm2, %v2675_v26, %v2473_v49  ;;  %v5534_v49 = vld [vmem:[%s5418_s2 + $0x28] sm:$0xff]  ;;  %v1615_v26 = vmax.f32 %v5272_v5, 1e-12 }
 0x232   : > { %7285 = vst [vmem:[#allocation69_spill] sm:$0xff] %v5534_v49  ;;  %v2502_v18 = vsel %vm2410_vm1, %v5534_v49, -inf  ;;  %v1009_v5 = vmul.f32 %v980_v2, %v5294_v17  ;;  %v7293_v17 = vmov 6   ;;  %v1613_v2 = vmax.f32 %v5246_v52, 1e-12 }
 0x233   : > { %v2503_v24 = vrot.slane %v2502_v18, 4 }
 0x234   : > { %1262 = vperm.xlu1 %4722, %v5088_v4   ;;  %v2676_v4 = vsel %vm2668_vm5, %v2480_v59, %v2624_v42  ;;  %v1617_v42 = vmax.f32 %v5277_v8, 1e-12  ;;  %v7310_v8 = vrot.slane %v5558_v39, %v5431_v7  ;;  %vm2807_vm5 = vcmask 392192  }
 0x235   : > { %v2684_v16 = vsel %vm2524_vm3, %v2676_v4, %v2480_v59  ;;  %v2504_v44 = vmax.f32 %v2502_v18, %v2503_v24  ;;  %v1132_v4 = vrot.slane %v5555_v37, %v5431_v7 }
 0x236   : > { %v4749_v38 = vpack.i.bf16 %v2684_v16, %v2683_v3  ;;  %v1610_v16 = vmax.f32 %v5263_v61, 1e-12  ;;  %v988_v61 = vrot.slane %v5561_v33, %v5428_v22 }
 0x237   : > { %v2505_v3 = vrot.slane %v2504_v44, 2 }
 0x238   : > { %1266 = vperm.xlu1 %4722, %v5122_v21   ;;  %4750 = vrot.lane.b32.xlu0 %v4749_v38, %s4924_s7  ;;  %v5493_v21 = vpop.permute.xlu1 %1362  ;;  %v1081_v38 = vmul.f32 %v1052_v19, %v5240_v50  ;;  %v5618_v19 = vld [vmem:[%s5548_s8 + $0x28] sm:$0xff]  ;;  %4854 = vrcp.f32 %v1610_v16  ;;  %v5653_v16 = vsub.s32 6, %v5412_v32  ;;  %v5655_v50 = vpop.permute.xlu0 %1979 }
 0x239   : > { %7271 = vst [vmem:[#allocation58_spill] sm:$0xff] %v5493_v21  ;;  %7294 = vst [vmem:[#allocation75_spill] sm:$0xff] %v5655_v50 }
 0x23c   : > { %1270 = vperm.xlu1 %4722, %v5126_v23   ;;  %v5496_v1 = vpop.permute.xlu1 %1366 }
 0x23d   : > { %7272 = vst [vmem:[#allocation59_spill] sm:$0xff] %v5496_v1 }
 0x240   : > { %1274 = vperm.xlu1 %4722, %v5156_v35   ;;  %v5500_v23 = vpop.permute.xlu1 %1654  ;;  %v7275_v35 = vmov 0  }
 0x241   : > { %7273 = vst [vmem:[#allocation60_spill] sm:$0xff] %v5500_v23 }
 0x244   : > { %1282 = vperm.xlu1 %4722, %v5153_v34   ;;  %v5503_v27 = vpop.permute.xlu1 %1731  ;;  %v7278_v34 = vmov 1  }
 0x245   : > { %7274 = vst [vmem:[#allocation61_spill] sm:$0xff] %v5503_v27  ;;  %v7319_v27 = vrot.slane %v5561_v33, %v5440_v57 }
 0x248   : > { %1286 = vperm.xlu1 %4722, %v5104_v9   ;;  %v5508_v60 = vpop.permute.xlu1 %1735 }
 0x249   : > { %7276 = vst [vmem:[#allocation62_spill] sm:$0xff] %v5508_v60  ;;  %v2506_v60 = vmax.f32 %v2504_v44, %v2505_v3  ;;  %v5641_v44 = vsub.s32 7, %v5412_v32  ;;  %v1161_v3 = vmul.f32 %v1132_v4, %v5255_v56  ;;  %v7296_v56 = vrot.slane %v5558_v39, %v5425_v45 }
 0x24b   : > { %v1082_v4 = vmul.f32 %v7296_v56, %v5249_v53  ;;  %v7305_v56 = vrot.slane %v5564_v48, %v5431_v7 }
 0x24c   : > { %1963 = vperm.xlu1 %4722, %v5228_v47   ;;  %v5511_v9 = vpop.permute.xlu1 %1438 }
 0x24d   : > { %7277 = vst [vmem:[#allocation63_spill] sm:$0xff] %v5511_v9 }
 0x250   : > { %1971 = vperm.xlu1 %4722, %v5169_v40   ;;  %v5515_v12 = vpop.permute.xlu1 %1803 }
 0x251   : > { %7279 = vst [vmem:[#allocation64_spill] sm:$0xff] %v5515_v12 }
 0x254   : > { %1975 = vperm.xlu1 %4722, %v5114_v15   ;;  %v5520_v29 = vpop.permute.xlu1 %1442 }
 0x255   : > { %7281 = vst [vmem:[#allocation65_spill] sm:$0xff] %v5520_v29 }
 0x258   : > { %4724 = vset.pattern.permute.xlu1 %v7275_v35  ;;  %v5523_v36 = vpop.permute.xlu1 %1446 }
 0x259   : > { %1664 = vperm.xlu1 %4724, %v5173_v41   ;;  %7282 = vst [vmem:[#allocation66_spill] sm:$0xff] %v5523_v36 }
 0x25d   : > { %1669 = vperm.xlu1 %4724, %v5140_v28  }
 0x261   : > { %4725 = vset.pattern.permute.xlu1 %v7278_v34 }
 0x262   : > { %1739 = vperm.xlu1 %4725, %v5173_v41   ;;  %v5527_v41 = vpop.permute.xlu1 %1815 }
 0x263   : > { %7283 = vst [vmem:[#allocation67_spill] sm:$0xff] %v5527_v41 }
 0x266   : > { %1743 = vperm.xlu1 %4725, %v5140_v28   ;;  %v5540_v59 = vpop.permute.xlu1 %1883 }
 0x267   : > { %7286 = vst [vmem:[#allocation70_spill] sm:$0xff] %v5540_v59 }
 0x26a   : > { %4726 = vset.pattern.permute.xlu1 %v7280_v13  ;;  %v5551_v31 = vpop.xlane.xlu1 %2303 }
 0x26b   : > { %2043 = vperm.xlu1 %4726, %v5228_v47   ;;  %7288 = vst [vmem:[#allocation71_spill] sm:$0xff] %v5551_v31 }
 0x26f   : > { %2047 = vperm.xlu1 %4726, %v5107_v10   ;;  %v2495_v10 = vsel %vm2410_vm1, %v5531_v14, -inf }
 0x270   : > { %v2496_v20 = vrot.slane %v2495_v10, 4 }
 0x272   : > { %v2497_v46 = vmax.f32 %v2495_v10, %v2496_v20  ;;  %v5592_v10 = vpop.permute.xlu1 %1498  ;;  %v1611_v20 = vmax.f32 %v5267_v63, 1e-12  ;;  %v7291_v63 = vmov 2  }
 0x273   : > { %4727 = vset.pattern.permute.xlu1 %v7275_v35 }
 0x274   : > { %1674 = vperm.xlu1 %4727, %v5463_v25   ;;  %v2498_v18 = vrot.slane %v2497_v46, 2  ;;  %4856 = vrcp.f32 %v1611_v20  ;;  %v1089_v20 = vadd.f32 %v1081_v38, %v1009_v5  ;;  %v1011_v38 = vmul.f32 %v988_v61, %v5279_v11  ;;  %v7309_v5 = vld [vmem:[#allocation20_spill] sm:$0xff] }
 0x275   : > { %4858 = vrcp.f32 %v1615_v26  ;;  %v1614_v11 = vmax.f32 %v5265_v62, 1e-12  ;;  %v5726_v62 = vld [vmem:[%s5418_s2 + $0x10] sm:$0xff] }
 0x276   : > { %v2499_v24 = vmax.f32 %v2497_v46, %v2498_v18  ;;  %v5633_v23 = vpop.permute.xlu1 %1506  ;;  %v1612_v46 = vmax.f32 %v5243_v51, 1e-12  ;;  %4860 = vrcp.f32 %v1617_v42  ;;  %v2507_v42 = vrot.slane %v2506_v60, 1 }
 0x277   : > { %7292 = vst [vmem:[#allocation74_spill] sm:$0xff] %v5633_v23  ;;  %v7312_v18 = vrot.slane %v5555_v37, %v5440_v57 }
 0x278   : > { %1679 = vperm.xlu1 %4727, %v5145_v30   ;;  %v2500_v51 = vrot.slane %v2499_v24, 1  ;;  %4862 = vrcp.f32 %v1612_v46  ;;  %v7297_v46 = vrot.slane %v5561_v33, %v5425_v45  ;;  %v5687_v61 = vmax.f32 %v2506_v60, %v2507_v42 }
 0x279   : > { %4864 = vrcp.f32 %v1613_v2  ;;  %v1169_v60 = vadd.f32 %v1161_v3, %v1089_v20  ;;  %v7301_v42 = vrot.slane %v5561_v33, %v5431_v7  ;;  %v7307_v20 = vld [vmem:[#allocation16_spill] sm:$0xff]  ;;  %v7308_v3 = vrot.slane %v5567_v43, %v5425_v45 }
 0x27a   : > { %v5671_v52 = vpop.permute.xlu1 %1510  ;;  %v5674_v41 = vmax.f32 %v2499_v24, %v2500_v51  ;;  %v1083_v2 = vmul.f32 %v7297_v46, %v5251_v54  ;;  %v5689_v24 = vpop.eup %4854  ;;  %vm2528_vm7 = vcmp.eq.f32.partialorder %v5534_v49, %v5687_v61  ;;  %4866 = vrcp.f32 %v1614_v11 }
 0x27b   : > { %7295 = vst [vmem:[#allocation76_spill] sm:$0xff] %v5671_v52  ;;  %7298 = vst [vmem:[#allocation77_spill] sm:$0xff] %v5689_v24  ;;  %v1163_v26 = vmul.f32 %v7301_v42, %v5258_v58  ;;  %v5723_v58 = vmul.f32 %v7308_v3, %v7307_v20  ;;  %v7314_v20 = vld [vmem:[#allocation22_spill] sm:$0xff] }
 0x27c   : > { %4728 = vset.pattern.permute.xlu1 %v7278_v34  ;;  %v5590_v34 = vld [vmem:[%s5548_s8 + $0x38] sm:$0xff]  ;;  %v1091_v42 = vadd.f32 %v1083_v2, %v1011_v38  ;;  %vm2527_vm6 = vcmp.eq.f32.partialorder %v5531_v14, %v5674_v41  ;;  %v2481_v38 = vsel %vm2410_vm1, %v5726_v62, -inf }
 0x27d   : > { %1747 = vperm.xlu1 %4728, %v5463_v25   ;;  %v7315_v3 = vrot.slane %v5590_v34, %v5431_v7  ;;  %v2607_v35 = vsel %vm2527_vm6, -inf, %v5531_v14  ;;  %v7357_v14 = vrot.slane %v5567_v43, %v5431_v7  ;;  %v7363_v24 = vrot.slane %v5590_v34, %v5428_v22 }
 0x27e   : > { %v5700_v46 = vpop.eup %4856 }
 0x27f   : > { %7300 = vst [vmem:[#allocation78_spill] sm:$0xff] %v5700_v46  ;;  %v7362_v46 = vld [vmem:[#allocation17_spill] sm:$0xff] }
 0x280   : > { %v5905_v9 = vmul.f32 %v7363_v24, %v7362_v46 }
 0x281   : > { %4730 = vset.pattern.permute.xlu1 %v7280_v13  ;;  %v7350_v13 = vrot.slane %v5558_v39, %v5641_v44 }
 0x282   : > { %2051 = vperm.xlu1 %4730, %v5169_v40   ;;  %v5606_v40 = vld [vmem:[%s5548_s8 + $0x20] sm:$0xff] }
 0x286   : > { %2055 = vperm.xlu1 %4730, %v5114_v15   ;;  %v984_v15 = vrot.slane %v5558_v39, %v5428_v22 }
 0x288   : > { %v1010_v51 = vmul.f32 %v984_v15, %v5274_v6  ;;  %v5709_v6 = vpop.permute.xlu0 %1991  ;;  %v5711_v15 = vpop.eup %4858 }
 0x289   : > { %7302 = vst [vmem:[#allocation79_spill] sm:$0xff] %v5709_v6  ;;  %7303 = vst [vmem:[#allocation80_spill] sm:$0xff] %v5711_v15  ;;  %v5746_v2 = vpop.eup %4860  ;;  %v7318_v6 = vld [vmem:[#allocation31_spill] sm:$0xff] }
 0x28a   : > { %4732 = vset.pattern.permute.xlu1 %v7291_v63  ;;  %7313 = vst [vmem:[#allocation16_spill] sm:$0xff] %v5746_v2  ;;  %v1243_v59 = vmul.f32 %v7319_v27, %v7318_v6  ;;  %v2482_v6 = vrot.slane %v2481_v38, 4  ;;  %v5778_v2 = vpop.eup %4862 }
 0x28b   : > { %1823 = vperm.xlu1 %4732, %v5140_v28   ;;  %7323 = vst [vmem:[#allocation22_spill] sm:$0xff] %v5778_v2  ;;  %v7328_v2 = vrot.slane %v5606_v40, %v5425_v45 }
 0x28f   : > { %4733 = vset.pattern.permute.xlu1 %v7293_v17 }
 0x290   : > { %2123 = vperm.xlu1 %4733, %v5228_v47  }
 0x294   : > { %4734 = vset.pattern.permute.xlu1 %v7291_v63  ;;  %v7299_v63 = vrot.slane %v5564_v48, %v5425_v45 }
 0x295   : > { %1827 = vperm.xlu1 %4734, %v5463_v25  }
 0x296   : > { %v1084_v53 = vmul.f32 %v7299_v63, %v5253_v55  ;;  %v7304_v63 = vld [vmem:[#allocation3_spill] sm:$0xff]  ;;  %v5731_v55 = vld [vmem:[%s5418_s2 + $0x18] sm:$0xff] }
 0x297   : > { %v5717_v54 = vmul.f32 %v7305_v56, %v7304_v63  ;;  %v1162_v56 = vmul.f32 %v7310_v8, %v7309_v5  ;;  %v7311_v63 = vld [vmem:[#allocation29_spill] sm:$0xff]  ;;  %v5752_v8 = vmul.f32 %v7315_v3, %v7314_v20  ;;  %v1090_v5 = vadd.f32 %v1082_v4, %v1010_v51  ;;  %v7321_v3 = vld [vmem:[#allocation6_spill] sm:$0xff] }
 0x298   : > { %v1241_v31 = vmul.f32 %v7312_v18, %v7311_v63  ;;  %v5756_v63 = vpop.permute.xlu1 %1518  ;;  %v7320_v20 = vmov 0.0   ;;  %v1171_v51 = vadd.f32 %v1163_v26, %v1091_v42  ;;  %v7322_v18 = vrot.slane %v5564_v48, %v5428_v22  ;;  %v5786_v42 = vpop.permute.xlu0 %1342  ;;  %v7325_v26 = vld [vmem:[#allocation33_spill] sm:$0xff] }
 0x299   : > { %7306 = vst [vmem:[#allocation3_spill] sm:$0xff] %v5717_v54  ;;  %1831 = vperm.xlu1 %4734, %v5145_v30   ;;  %7316 = vst [vmem:[#allocation20_spill] sm:$0xff] %v5752_v8  ;;  %v2488_v30 = vsel %vm2410_vm1, %v5731_v55, -inf  ;;  %v4477_v4 = vsel %vm2527_vm6, 1.0, %v7320_v20  ;;  %v4478_v27 = vsel %vm2528_vm7, 1.0, %v7320_v20  ;;  %v5791_v50 = vadd.f32 %v1162_v56, %v1090_v5  ;;  %v5832_v48 = vld [vmem:[%s5418_s2 + $0x30] sm:$0xff] }
 0x29a   : > { %7317 = vst [vmem:[#allocation29_spill] sm:$0xff] %v5756_v63  ;;  %v1012_v11 = vmul.f32 %v7322_v18, %v7321_v3  ;;  %v5780_v12 = vadd.f32 %v1241_v31, %v1169_v60  ;;  %v2489_v18 = vrot.slane %v2488_v30, 4  ;;  %v5789_v3 = vpop.eup %4864  ;;  %v5796_v31 = vld [vmem:[%s5094_s9 + $0x18] sm:$0xff]  ;;  %v2575_v60 = vsel %vm2410_vm1, %v4477_v4, 0.0 }
 0x29b   : > { %7324 = vst [vmem:[#allocation31_spill] sm:$0xff] %v5789_v3  ;;  %v7326_v56 = vrot.slane %v5606_v40, %v5440_v57  ;;  %v7327_v3 = vld [vmem:[#allocation11_spill] sm:$0xff]  ;;  %v2582_v23 = vsel %vm2410_vm1, %v4478_v27, 0.0  ;;  %v2608_v4 = vsel %vm2528_vm7, -inf, %v5534_v49  ;;  %v5817_v52 = vadd.f32 %v1243_v59, %v1171_v51  ;;  %v5835_v59 = vld [vmem:[%s5418_s2 + $0x38] sm:$0xff]  ;;  %v5866_v21 = vpop.eup %4866 }
 0x29c   : > { %v1085_v36 = vmul.f32 %v7328_v2, %v7327_v3  ;;  %v5819_v1 = vadd.f32 %v1084_v53, %v1012_v11  ;;  %v5822_v8 = vsub.s32 5, %v5412_v32  ;;  %v7333_v2 = vrot.slane %v5606_v40, %v5428_v22  ;;  %7335 = vst [vmem:[#allocation81_spill] sm:$0xff] %v5835_v59  ;;  %v7336_v53 = vld [vmem:[#allocation13_spill] sm:$0xff] }
 0x29d   : > { %4735 = vset.pattern.permute.xlu1 %v7293_v17  ;;  %v1245_v5 = vmul.f32 %v7326_v56, %v7325_v26  ;;  %7329 = vst [vmem:[#allocation6_spill] sm:$0xff] %v5817_v52  ;;  %v5824_v26 = vpop.permute.xlu1 %1526  ;;  %v2483_v56 = vmax.f32 %v2481_v38, %v2482_v6  ;;  %v7332_v17 = vld [vmem:[#allocation8_spill] sm:$0xff]  ;;  %v2576_v3 = vrot.slane %v2575_v60, 4  ;;  %v2639_v54 = vsel %vm2410_vm1, %v2607_v35, -inf  ;;  %v7338_v32 = vld [vmem:[#allocation21_spill] sm:$0xff] }
 0x29e   : > { %2135 = vperm.xlu1 %4735, %v5796_v31   ;;  %7330 = vst [vmem:[#allocation33_spill] sm:$0xff] %v5819_v1  ;;  %7331 = vst [vmem:[#allocation11_spill] sm:$0xff] %v5824_v26  ;;  %v1013_v27 = vmul.f32 %v7333_v2, %v7332_v17  ;;  %v2490_v33 = vmax.f32 %v2488_v30, %v2489_v18  ;;  %v7337_v51 = vrot.slane %v5618_v19, %v5425_v45  ;;  %v7340_v26 = vmov 3   ;;  %v7341_v30 = vld [vmem:[#allocation35_spill] sm:$0xff]  ;;  %v7343_v52 = vld [vmem:[#allocation9_spill] sm:$0xff] }
 0x29f   : > { %7334 = vst [vmem:[#allocation8_spill] sm:$0xff] %v5832_v48  ;;  %v7339_v38 = vrot.slane %v5606_v40, %v5431_v7  ;;  %v2583_v17 = vrot.slane %v2582_v23, 4  ;;  %v2646_v35 = vsel %vm2410_vm1, %v2608_v4, -inf  ;;  %v7342_v18 = vrot.slane %v5567_v43, %v5440_v57  ;;  %7348 = vst [vmem:[#allocation21_spill] sm:$0xff] %v5866_v21  ;;  %v7354_v21 = vld [vmem:[#allocation23_spill] sm:$0xff] }
 0x2a0   : > { %v1086_v11 = vmul.f32 %v7337_v51, %v7336_v53  ;;  %v7344_v1 = vrot.slane %v5618_v19, %v5428_v22  ;;  %v1093_v51 = vadd.f32 %v1085_v36, %v1013_v27  ;;  %v1376_v45 = vrot.slane %v5558_v39, %v5822_v8 }
 0x2a1   : > { %v1165_v6 = vmul.f32 %v7339_v38, %v7338_v32  ;;  %v1247_v2 = vmul.f32 %v7342_v18, %v7341_v30  ;;  %v5857_v32 = vpop.permute.xlu0 %1350  ;;  %v7346_v38 = vld [vmem:[#allocation15_spill] sm:$0xff]  ;;  %v7347_v4 = vrot.slane %v5567_v43, %v5428_v22  ;;  %v2640_v29 = vrot.slane %v2639_v54, 4 }
 0x2a2   : > { %4737 = vset.pattern.permute.xlu1 %v7340_v26  ;;  %v1014_v53 = vmul.f32 %v7344_v1, %v7343_v52  ;;  %7345 = vst [vmem:[#allocation13_spill] sm:$0xff] %v5857_v32  ;;  %v2484_v30 = vrot.slane %v2483_v56, 2  ;;  %v2509_v18 = vsel %vm2410_vm1, %v5832_v48, -inf  ;;  %v2577_v1 = vadd.f32 %v2576_v3, %v2575_v60  ;;  %v7352_v48 = vld [vmem:[#allocation54_spill] sm:$0xff] }
 0x2a3   : > { %1903 = vperm.xlu1 %4737, %v5140_v28   ;;  %v1015_v15 = vmul.f32 %v7347_v4, %v7346_v38  ;;  %v2647_v36 = vrot.slane %v2646_v35, 4  ;;  %v2491_v52 = vrot.slane %v2490_v33, 2  ;;  %v2516_v27 = vsel %vm2410_vm1, %v5835_v59, -inf  ;;  %v7349_v28 = vld [vmem:[#allocation40_spill] sm:$0xff]  ;;  %v5876_v4 = vpop.permute.xlu1 %1891 }
 0x2a4   : > { %v1094_v32 = vadd.f32 %v1086_v11, %v1014_v53  ;;  %v5874_v63 = vmul.f32 %v7350_v13, %v7349_v28  ;;  %v1173_v38 = vadd.f32 %v1165_v6, %v1093_v51  ;;  %7351 = vst [vmem:[#allocation35_spill] sm:$0xff] %v5876_v4  ;;  %v2584_v49 = vadd.f32 %v2583_v17, %v2582_v23  ;;  %v7356_v53 = vld [vmem:[#allocation26_spill] sm:$0xff]  ;;  %v7359_v51 = vld [vmem:[#allocation43_spill] sm:$0xff] }
 0x2a5   : > { %v7353_v60 = vrot.slane %v5555_v37, %v5450_v0  ;;  %v7355_v59 = vrot.slane %v5618_v19, %v5431_v7  ;;  %v1167_v13 = vmul.f32 %v7357_v14, %v7356_v53  ;;  %v7358_v28 = vmov 7  }
 0x2a6   : > { %v2510_v6 = vrot.slane %v2509_v18, 4  ;;  %v7360_v23 = vrot.slane %v5606_v40, %v5641_v44  ;;  %v2517_v4 = vrot.slane %v2516_v27, 4  ;;  %v2578_v7 = vrot.slane %v2577_v1, 2 }
 0x2a7   : > { %v1321_v3 = vmul.f32 %v7353_v60, %v7352_v48  ;;  %v1166_v11 = vmul.f32 %v7355_v59, %v7354_v21  ;;  %4738 = vset.pattern.permute.xlu1 %v7358_v28  ;;  %v2641_v48 = vmax.f32 %v2639_v54, %v2640_v29  ;;  %v2485_v60 = vmax.f32 %v2483_v56, %v2484_v30  ;;  %v5899_v59 = vpop.permute.xlu0 %2063  ;;  %v7364_v30 = vld [vmem:[#allocation56_spill] sm:$0xff] }
 0x2a8   : > { %v5895_v17 = vmul.f32 %v7360_v23, %v7359_v51  ;;  %2203 = vperm.xlu1 %4738, %v5228_v47   ;;  %v1095_v21 = vadd.f32 %v5723_v58, %v1015_v15  ;;  %7361 = vst [vmem:[#allocation9_spill] sm:$0xff] %v5899_v59  ;;  %v2648_v14 = vmax.f32 %v2646_v35, %v2647_v36  ;;  %v2585_v29 = vrot.slane %v2584_v49, 2  ;;  %v5916_v36 = vpop.permute.xlu1 %1895 }
 0x2a9   : > { %v2492_v53 = vmax.f32 %v2490_v33, %v2491_v52  ;;  %v1372_v51 = vrot.slane %v5555_v37, %v5822_v8  ;;  %v5909_v47 = vadd.f32 %v1245_v5, %v1173_v38  ;;  %v1329_v54 = vadd.f32 %v1321_v3, %v5780_v12  ;;  %7366 = vst [vmem:[#allocation15_spill] sm:$0xff] %v5916_v36  ;;  %v7367_v5 = vld [vmem:[#allocation24_spill] sm:$0xff] }
 0x2aa   : > { %v1174_v15 = vadd.f32 %v1166_v11, %v1094_v32  ;;  %v1175_v58 = vadd.f32 %v1167_v13, %v1095_v21  ;;  %v2511_v56 = vmax.f32 %v2509_v18, %v2510_v6  ;;  %v7365_v33 = vrot.slane %v5618_v19, %v5450_v0  ;;  %v7369_v11 = vld [vmem:[#allocation37_spill] sm:$0xff]  ;;  %v7371_v6 = vld [vmem:[#allocation42_spill] sm:$0xff] }
 0x2ab   : > { %v2642_v24 = vrot.slane %v2641_v48, 2  ;;  %v2486_v46 = vrot.slane %v2485_v60, 1  ;;  %v2518_v52 = vmax.f32 %v2516_v27, %v2517_v4  ;;  %v7368_v38 = vrot.slane %v5558_v39, %v5653_v16 }
 0x2ac   : > { %v1326_v35 = vmul.f32 %v7365_v33, %v7364_v30  ;;  %4739 = vset.pattern.permute.xlu1 %v7340_v26  ;;  %v2579_v32 = vadd.f32 %v2578_v7, %v2577_v1  ;;  %v2649_v18 = vrot.slane %v2648_v14, 2  ;;  %v2493_v3 = vrot.slane %v2492_v53, 1  ;;  %v1419_v30 = vpop.permute.xlu0 %1418 }
 0x2ad   : > { %v5923_v12 = vmul.f32 %v7368_v38, %v7367_v5  ;;  %1907 = vperm.xlu1 %4739, %v5463_v25   ;;  %v7370_v13 = vrot.slane %v5618_v19, %v5440_v57  ;;  %v1401_v23 = vmul.f32 %v1372_v51, %v7371_v6  ;;  %v1452_v27 = vrot.slane %v5555_v37, %v5653_v16  ;;  %v7372_v5 = vld [vmem:[#allocation34_spill] sm:$0xff] }
 0x2ae   : > { %v2586_v4 = vadd.f32 %v2585_v29, %v2584_v49  ;;  %v1402_v21 = vmul.f32 %v1376_v45, %v5786_v42  ;;  %v1388_v7 = vrot.slane %v5606_v40, %v5822_v8  ;;  %v5936_v1 = vadd.f32 %v1247_v2, %v1175_v58  ;;  %v5947_v29 = vld [vmem:[%s5094_s9 + $0x38] sm:$0xff] }
 0x2af   : > { %v1246_v26 = vmul.f32 %v7370_v13, %v7369_v11  ;;  %v2512_v33 = vrot.slane %v2511_v56, 2  ;;  %v7373_v38 = vrot.slane %v5558_v39, %v5440_v57  ;;  %v2643_v51 = vmax.f32 %v2641_v48, %v2642_v24 }
 0x2b0   : > { %v5942_v13 = vpop.xlane.xlu1 %2309  ;;  %v5944_v6 = vmax.f32 %v2485_v60, %v2486_v46  ;;  %v2519_v49 = vrot.slane %v2518_v52, 2  ;;  %v1296_v45 = vrot.slane %v5558_v39, %v5450_v0  ;;  %v2580_v42 = vrot.slane %v2579_v32, 1 }
 0x2b1   : > { %v1242_v11 = vmul.f32 %v7373_v38, %v7372_v5  ;;  %7374 = vst [vmem:[#allocation40_spill] sm:$0xff] %v5942_v13  ;;  %1911 = vperm.xlu1 %4739, %v5947_v29   ;;  %v2650_v2 = vmax.f32 %v2648_v14, %v2649_v18  ;;  %v5952_v58 = vmax.f32 %v2492_v53, %v2493_v3  ;;  %v2587_v38 = vrot.slane %v2586_v4, 1 }
 0x2b2   : > { %v1254_v59 = vadd.f32 %v1246_v26, %v1174_v15  ;;  %v1409_v36 = vadd.f32 %v1401_v23, %v1329_v54  ;;  %v1481_v5 = vmul.f32 %v1452_v27, %v1419_v30  ;;  %v1392_v48 = vrot.slane %v5618_v19, %v5822_v8  ;;  %v7375_v27 = vld [vmem:[#allocation46_spill] sm:$0xff] }
 0x2b3   : > { %v1396_v60 = vrot.slane %v5567_v43, %v5822_v8  ;;  %v1532_v24 = vrot.slane %v5555_v37, %v5641_v44  ;;  %v2513_v46 = vmax.f32 %v2511_v56, %v2512_v33  ;;  %v1250_v39 = vadd.f32 %v1242_v11, %v5791_v50 }
 0x2b4   : > { %v1263_v13 = vpop.permute.xlu1 %1262  ;;  %v2644_v14 = vrot.slane %v2643_v51, 1  ;;  %vm2525_vm8 = vcmp.eq.f32.partialorder %v5726_v62, %v5944_v6  ;;  %v2520_v53 = vmax.f32 %v2518_v52, %v2519_v49  ;;  %v2581_v15 = vadd.f32 %v2580_v42, %v2579_v32  ;;  %v5996_v42 = vld [vmem:[%s5094_s9 + $0x28] sm:$0xff] }
 0x2b5   : > { %v1322_v54 = vmul.f32 %v1296_v45, %v1263_v13  ;;  %4741 = vset.pattern.permute.xlu1 %v7358_v28  ;;  %v2651_v18 = vrot.slane %v2650_v2, 1  ;;  %vm2526_vm9 = vcmp.eq.f32.partialorder %v5731_v55, %v5952_v58  ;;  %v1334_v3 = vadd.f32 %v1326_v35, %v1254_v59 }
 0x2b6   : > { %v1489_v26 = vadd.f32 %v1481_v5, %v1409_v36  ;;  %v1472_v37 = vrot.slane %v5618_v19, %v5653_v16  ;;  %2215 = vperm.xlu1 %4741, %v5796_v31   ;;  %v2588_v50 = vadd.f32 %v2587_v38, %v2586_v4  ;;  %v1561_v56 = vmul.f32 %v1532_v24, %v5592_v10  ;;  %v7376_v36 = vld [vmem:[#allocation47_spill] sm:$0xff] }
 0x2b7   : > { %v1330_v23 = vadd.f32 %v1322_v54, %v1250_v39  ;;  %v4475_v52 = vsel %vm2525_vm8, 1.0, %v7320_v20  ;;  %v2514_v32 = vrot.slane %v2513_v46, 1  ;;  %v5975_v30 = vmul.f32 %v1388_v7, %v7375_v27  ;;  %v7381_v27 = vld [vmem:[#allocation68_spill] sm:$0xff] }
 0x2b8   : > { %v5977_v59 = vpop.permute.xlu1 %1266  ;;  %v2645_v35 = vmax.f32 %v2643_v51, %v2644_v14  ;;  %v4476_v31 = vsel %vm2526_vm9, 1.0, %v7320_v20  ;;  %v2521_v10 = vrot.slane %v2520_v53, 1  ;;  %v1406_v4 = vmul.f32 %v1392_v48, %v7376_v36 }
 0x2b9   : > { %v1410_v33 = vadd.f32 %v1402_v21, %v1330_v23  ;;  %v2652_v11 = vmax.f32 %v2650_v2, %v2651_v18  ;;  %vm2671_vm10 = vcmp.gt.f32.partialorder %v2581_v15, 1.0  ;;  %v7377_v13 = vmov 4   ;;  %v7378_v18 = vld [vmem:[#allocation63_spill] sm:$0xff] }
 0x2ba   : > { %4742 = vset.pattern.permute.xlu1 %v7377_v13  ;;  %vm2672_vm11 = vcmp.gt.f32.partialorder %v2588_v50, 1.0  ;;  %v2561_v7 = vsel %vm2410_vm1, %v4475_v52, 0.0  ;;  %v2605_v51 = vsel %vm2525_vm8, -inf, %v5726_v62  ;;  %v2606_v49 = vsel %vm2526_vm9, -inf, %v5731_v55  ;;  %v7379_v52 = vld [vmem:[#allocation77_spill] sm:$0xff]  ;;  %v1435_v50 = vpop.permute.xlu0 %1434 }
 0x2bb   : > { %v1569_v45 = vadd.f32 %v1561_v56, %v1489_v26  ;;  %v1490_v21 = vadd.f32 %v5923_v12, %v1410_v33  ;;  %1983 = vperm.xlu1 %4742, %v5996_v42   ;;  %v2568_v2 = vsel %vm2410_vm1, %v4476_v31, 0.0  ;;  %v6000_v5 = vmax.f32 %v2513_v46, %v2514_v32  ;;  %v7382_v31 = vld [vmem:[#allocation8_spill] sm:$0xff] }
 0x2bc   : > { %v1552_v38 = vrot.slane %v5618_v19, %v5641_v44  ;;  %v6004_v48 = vpop.permute.xlu1 %1270  ;;  %v1308_v24 = vrot.slane %v5606_v40, %v5450_v0  ;;  %v2679_v39 = vsel %vm2671_vm10, %v5674_v41, %v2645_v35  ;;  %v6009_v14 = vmax.f32 %v2520_v53, %v2521_v10 }
 0x2bd   : > { %v1570_v12 = vadd.f32 %v5874_v63, %v1490_v21  ;;  %v2680_v54 = vsel %vm2672_vm11, %v5687_v61, %v2652_v11  ;;  %v2625_v46 = vsel %vm2410_vm1, %v2605_v51, -inf  ;;  %v2632_v15 = vsel %vm2410_vm1, %v2606_v49, -inf  ;;  %v7380_v63 = vld [vmem:[#allocation78_spill] sm:$0xff]  ;;  %v7384_v11 = vld [vmem:[#allocation81_spill] sm:$0xff] }
 0x2be   : > { %v1486_v19 = vmul.f32 %v1472_v37, %v7378_v18  ;;  %v1468_v26 = vrot.slane %v5606_v40, %v5653_v16  ;;  %v2562_v56 = vrot.slane %v2561_v7, 4  ;;  %v2569_v23 = vrot.slane %v2568_v2, 4 }
 0x2bf   : > { %v1634_v53 = vmul.f32 %v7379_v52, %v1569_v45  ;;  %1987 = vperm.xlu1 %4742, %v5463_v25   ;;  %v1635_v32 = vmul.f32 %v7380_v63, %v1570_v12  ;;  %v2687_v35 = vsel %vm2527_vm6, %v2679_v39, %v5674_v41  ;;  %vm2529_vm12 = vcmp.eq.f32.partialorder %v7382_v31, %v6000_v5  ;;  %v7385_v12 = vld [vmem:[#allocation29_spill] sm:$0xff] }
 0x2c0   : > { %v1275_v37 = vpop.permute.xlu1 %1274  ;;  %v2688_v10 = vsel %vm2528_vm7, %v2680_v54, %v5687_v61  ;;  %v2626_v36 = vrot.slane %v2625_v46, 4  ;;  %v2633_v33 = vrot.slane %v2632_v15, 4  ;;  %vm2530_vm13 = vcmp.eq.f32.partialorder %v7384_v11, %v6009_v14 }
 0x2c1   : > { %v1414_v13 = vadd.f32 %v1406_v4, %v1334_v3  ;;  %v1325_v51 = vmul.f32 %v1308_v24, %v1275_v37  ;;  %v4759_v49 = vpack.i.bf16 %v1635_v32, %v1634_v53  ;;  %v1316_v41 = vrot.slane %v5567_v43, %v5450_v0 }
 0x2c2   : > { %v1485_v45 = vmul.f32 %v1468_v26, %v1435_v50  ;;  %v2563_v21 = vadd.f32 %v2562_v56, %v2561_v7  ;;  %v2570_v39 = vadd.f32 %v2569_v23, %v2568_v2  ;;  %v4479_v61 = vsel %vm2529_vm12, 1.0, %v7320_v20  ;;  %v6052_v26 = vld [vmem:[%s5094_s9 + $0x20] sm:$0xff] }
 0x2c3   : > { %v1566_v54 = vmul.f32 %v1552_v38, %v7385_v12  ;;  %v1333_v3 = vadd.f32 %v1325_v51, %v5909_v47  ;;  %v7386_v4 = vmov 5   ;;  %4760 = vrot.lane.b32.xlu0 %v4759_v49, %s4925_s21  ;;  %v4769_v24 = vpack.i.bf16 %v2688_v10, %v2687_v35  ;;  %v7388_v10 = vld [vmem:[#allocation45_spill] sm:$0xff] }
 0x2c4   : > { %4744 = vset.pattern.permute.xlu1 %v7386_v4  ;;  %v4480_v7 = vsel %vm2530_vm13, 1.0, %v7320_v20  ;;  %v1494_v2 = vadd.f32 %v1486_v19, %v1414_v13  ;;  %v1476_v18 = vrot.slane %v5567_v43, %v5653_v16  ;;  %v1283_v47 = vpop.permute.xlu1 %1282  ;;  %v2627_v38 = vmax.f32 %v2625_v46, %v2626_v36  ;;  %v7390_v13 = vld [vmem:[#allocation65_spill] sm:$0xff]  ;;  %v7410_v20 = vld [vmem:[#allocation39_spill] sm:$0xff] }
 0x2c5   : > { %2059 = vperm.xlu1 %4744, %v6052_v26   ;;  %v2634_v56 = vmax.f32 %v2632_v15, %v2633_v33  ;;  %v1413_v23 = vadd.f32 %v5975_v30, %v1333_v3  ;;  %v1327_v52 = vmul.f32 %v1316_v41, %v1283_v47  ;;  %v2589_v53 = vsel %vm2410_vm1, %v4479_v61, 0.0  ;;  %v7387_v15 = vld [vmem:[#allocation58_spill] sm:$0xff] }
 0x2c6   : > { %v2609_v19 = vsel %vm2529_vm12, -inf, %v7382_v31  ;;  %v2564_v63 = vrot.slane %v2563_v21, 2  ;;  %v2571_v32 = vrot.slane %v2570_v39, 2  ;;  %v2596_v50 = vsel %vm2410_vm1, %v4480_v7, 0.0 }
 0x2c7   : > { %v2610_v46 = vsel %vm2530_vm13, -inf, %v7384_v11  ;;  %v1407_v30 = vmul.f32 %v1396_v60, %v7387_v15  ;;  %v1574_v35 = vadd.f32 %v1566_v54, %v1494_v2  ;;  %v1493_v37 = vadd.f32 %v1485_v45, %v1413_v23  ;;  %4770 = vrot.lane.b32.xlu0 %v4769_v24, %s4924_s7  ;;  %v7391_v24 = vld [vmem:[#allocation80_spill] sm:$0xff] }
 0x2c8   : > { %v1335_v40 = vadd.f32 %v1327_v52, %v5936_v1  ;;  %v7389_v36 = vrot.slane %v5567_v43, %v5641_v44  ;;  %v1487_v51 = vmul.f32 %v1476_v18, %v7390_v13  ;;  %v6083_v49 = vpop.permute.xlu1 %1286  ;;  %v2590_v41 = vrot.slane %v2589_v53, 4  ;;  %v7392_v18 = vld [vmem:[#allocation21_spill] sm:$0xff]  ;;  %v7394_v52 = vld [vmem:[#allocation19_spill] sm:$0xff] }
 0x2c9   : > { %2067 = vperm.xlu1 %4744, %v5463_v25   ;;  %v2653_v60 = vsel %vm2410_vm1, %v2609_v19, -inf  ;;  %v1573_v1 = vadd.f32 %v5895_v17, %v1493_v37  ;;  %v2597_v61 = vrot.slane %v2596_v50, 4  ;;  %v2660_v12 = vsel %vm2410_vm1, %v2610_v46, -inf  ;;  %v7395_v17 = vld [vmem:[#allocation52_spill] sm:$0xff] }
 0x2ca   : > { %v1567_v33 = vmul.f32 %v7389_v36, %v7388_v10  ;;  %v1415_v45 = vadd.f32 %v1407_v30, %v1335_v40  ;;  %v2565_v43 = vadd.f32 %v2564_v63, %v2563_v21  ;;  %v2572_v54 = vadd.f32 %v2571_v32, %v2570_v39  ;;  %v7397_v21 = vld [vmem:[#allocation73_spill] sm:$0xff]  ;;  %v7398_v10 = vld [vmem:[#allocation36_spill] sm:$0xff] }
 0x2cb   : > { %v2628_v3 = vrot.slane %v2627_v38, 2  ;;  %v2635_v4 = vrot.slane %v2634_v56, 2  ;;  %v1639_v7 = vmul.f32 %v7391_v24, %v1574_v35  ;;  %v1638_v47 = vmul.f32 %v7392_v18, %v1573_v1  ;;  %v6116_v18 = vld [vmem:[%s883_s0] sm:$0xff] }
 0x2cc   : > { %v1495_v2 = vadd.f32 %v1487_v51, %v1415_v45  ;;  %v2654_v23 = vrot.slane %v2653_v60, 4  ;;  %v7396_v19 = vrot.slane %v5590_v34, %v7395_v17  ;;  %v1304_v39 = vrot.slane %v7397_v21, %v5450_v0  ;;  %v6104_v63 = vpop.permute.xlu1 %1963  ;;  %v7400_v51 = vld [vmem:[#allocation72_spill] sm:$0xff] }
 0x2cd   : > { %2071 = vperm.xlu1 %4744, %v5947_v29   ;;  %v2591_v32 = vadd.f32 %v2590_v41, %v2589_v53  ;;  %v2661_v46 = vrot.slane %v2660_v12, 4  ;;  %v1384_v30 = vrot.slane %v7397_v21, %v5822_v8  ;;  %v4779_v37 = vpack.i.bf16 %v1639_v7, %v1638_v47  ;;  %v7402_v7 = vld [vmem:[#allocation3_spill] sm:$0xff] }
 0x2ce   : > { %v1088_v15 = vmul.f32 %v7396_v19, %v7394_v52  ;;  %v6108_v35 = vadd.f32 %v1567_v33, %v1495_v2  ;;  %v2598_v40 = vadd.f32 %v2597_v61, %v2596_v50  ;;  %v7399_v36 = vrot.slane %v7397_v21, %v5440_v57  ;;  %v7401_v61 = vld [vmem:[#allocation33_spill] sm:$0xff] }
 0x2cf   : > { %v1300_v1 = vrot.slane %v7400_v51, %v5450_v0  ;;  %v2629_v45 = vmax.f32 %v2627_v38, %v2628_v3  ;;  %v2636_v24 = vmax.f32 %v2634_v56, %v2635_v4  ;;  %4780 = vrot.lane.b32.xlu0 %v4779_v37, %s4925_s21  ;;  %v2566_v53 = vrot.slane %v2565_v43, 1  ;;  %v7405_v4 = vld [vmem:[#allocation13_spill] sm:$0xff] }
 0x2d0   : > { %v1244_v13 = vmul.f32 %v7399_v36, %v7398_v10  ;;  %v2573_v41 = vrot.slane %v2572_v54, 1  ;;  %v2655_v33 = vmax.f32 %v2653_v60, %v2654_v23  ;;  %v2349_v50 = vrot.slane %v6116_v18, %v5428_v22  ;;  %v6125_v19 = vpop.permute.xlu1 %1971 }
 0x2d1   : > { %v1172_v2 = vadd.f32 %v7402_v7, %v7401_v61  ;;  %v1324_v47 = vmul.f32 %v1304_v39, %v6004_v48  ;;  %v7403_v52 = vmov 6   ;;  %7404 = vst [vmem:[#allocation54_spill] sm:$0xff] %v6125_v19  ;;  %v2592_v38 = vrot.slane %v2591_v32, 2 }
 0x2d2   : > { %4746 = vset.pattern.permute.xlu1 %v7403_v52  ;;  %v2662_v56 = vmax.f32 %v2660_v12, %v2661_v46  ;;  %v1096_v3 = vadd.f32 %v1088_v15, %v5905_v9  ;;  %v1404_v37 = vmul.f32 %v1384_v30, %v7405_v4  ;;  %v1380_v60 = vrot.slane %v7400_v51, %v5822_v8  ;;  %v7406_v12 = vld [vmem:[#allocation53_spill] sm:$0xff] }
 0x2d3   : > { %2143 = vperm.xlu1 %4746, %v5996_v42   ;;  %v2599_v23 = vrot.slane %v2598_v40, 2  ;;  %v1252_v10 = vadd.f32 %v1244_v13, %v1172_v2  ;;  %v1323_v36 = vmul.f32 %v1300_v1, %v5977_v59  ;;  %v2630_v48 = vrot.slane %v2629_v45, 1  ;;  %2351 = vbcast.lane.b32.xlu0 %v2349_v50, 256  ;;  %v7408_v13 = vld [vmem:[#allocation4_spill] sm:$0xff] }
 0x2d4   : > { %v2637_v39 = vrot.slane %v2636_v24, 1  ;;  %v2567_v61 = vadd.f32 %v2566_v53, %v2565_v43  ;;  %v2574_v7 = vadd.f32 %v2573_v41, %v2572_v54  ;;  %v2656_v52 = vrot.slane %v2655_v33, 2  ;;  %v6137_v30 = vpop.permute.xlu1 %1975  ;;  %v7409_v59 = vld [vmem:[#allocation20_spill] sm:$0xff] }
 0x2d5   : > { %v2363_v9 = vrot.slane %v6116_v18, %v7406_v12  ;;  %v1332_v15 = vadd.f32 %v1324_v47, %v1252_v10  ;;  %v1320_v46 = vrot.slane %v5590_v34, %v5450_v0  ;;  %7407 = vst [vmem:[#allocation23_spill] sm:$0xff] %v6137_v30  ;;  %v2593_v42 = vadd.f32 %v2592_v38, %v2591_v32  ;;  %v7412_v41 = vld [vmem:[#allocation44_spill] sm:$0xff]  ;;  %v7413_v47 = vld [vmem:[#allocation6_spill] sm:$0xff] }
 0x2d6   : > { %v2663_v4 = vrot.slane %v2662_v56, 2  ;;  %v1616_v2 = vmax.f32 %v7408_v13, 1e-12  ;;  %v1176_v1 = vadd.f32 %v7409_v59, %v1096_v3  ;;  %v7411_v43 = vrot.slane %v5590_v34, %v5440_v57 }
 0x2d7   : > { %2147 = vperm.xlu1 %4746, %v5463_v25   ;;  %v2600_v53 = vadd.f32 %v2599_v23, %v2598_v40  ;;  %v1403_v50 = vmul.f32 %v1380_v60, %v7412_v41  ;;  %v1331_v10 = vadd.f32 %v1323_v36, %v7413_v47  ;;  %v2631_v19 = vmax.f32 %v2629_v45, %v2630_v48  ;;  %v7414_v40 = vld [vmem:[#allocation28_spill] sm:$0xff]  ;;  %v7416_v45 = vld [vmem:[#allocation30_spill] sm:$0xff] }
 0x2d8   : > { %v1248_v54 = vmul.f32 %v7411_v43, %v7410_v20  ;;  %v2638_v30 = vmax.f32 %v2636_v24, %v2637_v39  ;;  %vm2669_vm14 = vcmp.gt.f32.partialorder %v2567_v61, 1.0  ;;  %vm2670_vm15 = vcmp.gt.f32.partialorder %v2574_v7, 1.0  ;;  %2365 = vbcast.lane.b32.xlu0 %v2363_v9, 256  ;;  %v1665_v20 = vpop.permute.xlu1 %1664  ;;  %v4890_v47 = vld [vmem:[%s5094_s9 + $0x30] sm:$0xff]  ;;  %s7463_s9 = sld [smem:[#allocation90_spill]] }
 0x2d9   : > { %v2657_v32 = vmax.f32 %v2655_v33, %v2656_v52  ;;  %v2370_v38 = vrot.slane %v6116_v18, %v5440_v57  ;;  %v1412_v3 = vadd.f32 %v1404_v37, %v1332_v15  ;;  %v1328_v59 = vmul.f32 %v1320_v46, %v6083_v49 }
 0x2da   : > { %v2594_v43 = vrot.slane %v2593_v42, 1  ;;  %v2664_v25 = vmax.f32 %v2662_v56, %v2663_v4  ;;  %v7415_v60 = vrot.slane %v7400_v51, %v5653_v16  ;;  %v7417_v24 = vrot.slane %v7397_v21, %v5653_v16 }
 0x2db   : > { %v1400_v36 = vrot.slane %v5590_v34, %v5822_v8  ;;  %4747 = vset.pattern.permute.xlu1 %v7358_v28  ;;  %v2601_v37 = vrot.slane %v2600_v53, 1  ;;  %v1256_v49 = vadd.f32 %v1248_v54, %v1176_v1  ;;  %v1540_v56 = vrot.slane %v7400_v51, %v5641_v44  ;;  %v7418_v54 = vld [vmem:[#allocation59_spill] sm:$0xff] }
 0x2dc   : > { %v1483_v23 = vmul.f32 %v7415_v60, %v7414_v40  ;;  %v1484_v33 = vmul.f32 %v7417_v24, %v7416_v45  ;;  %v1544_v48 = vrot.slane %v7397_v21, %v5641_v44  ;;  %v1411_v39 = vadd.f32 %v1403_v50, %v1331_v10  ;;  %2219 = vperm.xlu1 %4747, %v6052_v26   ;;  %v6173_v4 = vpop.permute.xlu1 %1669 }
 0x2dd   : > { %v2677_v52 = vsel %vm2669_vm14, %v5944_v6, %v2631_v19  ;;  %v2678_v9 = vsel %vm2670_vm15, %v5952_v58, %v2638_v30  ;;  %v2658_v15 = vrot.slane %v2657_v32, 1  ;;  %2372 = vbcast.lane.b32.xlu0 %v2370_v38, 256  ;;  %v2377_v28 = vrot.slane %v6116_v18, %v5450_v0  ;;  %v7419_v30 = vld [vmem:[#allocation76_spill] sm:$0xff]  ;;  %v7420_v38 = vld [vmem:[#allocation74_spill] sm:$0xff] }
 0x2de   : > { %v1492_v46 = vadd.f32 %v1484_v33, %v1412_v3  ;;  %v1336_v51 = vadd.f32 %v1328_v59, %v1256_v49  ;;  %v2595_v21 = vadd.f32 %v2594_v43, %v2593_v42  ;;  %v2665_v1 = vrot.slane %v2664_v25, 1 }
 0x2df   : > { %v1408_v26 = vmul.f32 %v1400_v36, %v7418_v54  ;;  %v1480_v19 = vrot.slane %v5590_v34, %v5653_v16  ;;  %v1701_v61 = vrot.slane %v7381_v27, %v5428_v22  ;;  %v2602_v7 = vadd.f32 %v2601_v37, %v2600_v53 }
 0x2e0   : > { %v1564_v41 = vmul.f32 %v1544_v48, %v7419_v30  ;;  %v1491_v50 = vadd.f32 %v1483_v23, %v1411_v39  ;;  %2227 = vperm.xlu1 %4747, %v4890_v47   ;;  %v1773_v10 = vrot.slane %v7381_v27, %v7395_v17  ;;  %v2685_v42 = vsel %vm2525_vm8, %v2677_v52, %v5944_v6  ;;  %v7421_v6 = vld [vmem:[#allocation66_spill] sm:$0xff] }
 0x2e1   : > { %v1563_v3 = vmul.f32 %v1540_v56, %v7420_v38  ;;  %v2686_v53 = vsel %vm2526_vm9, %v2678_v9, %v5952_v58  ;;  %v2659_v59 = vmax.f32 %v2657_v32, %v2658_v15  ;;  %2379 = vbcast.lane.b32.xlu0 %v2377_v28, 256  ;;  %v2391_v43 = vrot.slane %v6116_v18, %v5653_v16  ;;  %v1740_v36 = vpop.permute.xlu1 %1739  ;;  %v4831_v58 = vld [vmem:[%s7422_s3] sm:$0xff]  }
 0x2e2   : > { %v1572_v40 = vadd.f32 %v1564_v41, %v1492_v46  ;;  %v1416_v60 = vadd.f32 %v1408_v26, %v1336_v51  ;;  %v2666_v23 = vmax.f32 %v2664_v25, %v2665_v1  ;;  %vm2673_vm2 = vcmp.gt.f32.partialorder %v2595_v21, 1.0  ;;  %v7423_v56 = vld [vmem:[#allocation27_spill] sm:$0xff]  ;;  %v7425_v39 = vld [vmem:[#allocation38_spill] sm:$0xff]  ;;  %4582 = vmatprep.subr.bf16.mxu1 %v4831_v58 }
 0x2e3   : > { %v2013_v45 = vrot.slane %v7381_v27, %v5450_v0  ;;  %v1488_v24 = vmul.f32 %v1480_v19, %v7421_v6  ;;  %v1560_v33 = vrot.slane %v5590_v34, %v5641_v44  ;;  %vm2674_vm3 = vcmp.gt.f32.partialorder %v2602_v7, 1.0  ;;  %v7427_v28 = vld [vmem:[#allocation31_spill] sm:$0xff]  ;;  %4583 = vmatpush3.bf16.msra.mxu1 %v4831_v58  ;;  %v7430_v19 = vld [vmem:[#allocation22_spill] sm:$0xff] }
 0x2e4   : > { %v1571_v32 = vadd.f32 %v1563_v3, %v1491_v50  ;;  %v1718_v37 = vmul.f32 %v1701_v61, %v1665_v20  ;;  %v1790_v49 = vmul.f32 %v1773_v10, %v1740_v36  ;;  %2231 = vperm.xlu1 %4747, %v5947_v29   ;;  %v4754_v25 = vpack.i.bf16 %v2686_v53, %v2685_v42  ;;  %v4833_v51 = vld [vmem:[%s7422_s3 + $0x8] sm:$0xff]   ;;  %v4834_v42 = vld [vmem:[%s7422_s3 + $0x10] sm:$0xff]  }
 0x2e5   : > { %4868 = vrcp.f32 %v1616_v2  ;;  %v7424_v48 = vrot.slane %v7381_v27, %v7406_v12  ;;  %v7426_v52 = vrot.slane %v7381_v27, %v5440_v57  ;;  %v2681_v15 = vsel %vm2673_vm2, %v6000_v5, %v2659_v59  ;;  %2393 = vbcast.lane.b32.xlu0 %v2391_v43, 256  ;;  %v6218_v2 = vpop.permute.xlu1 %1743  ;;  %v7428_v27 = vld [vmem:[#allocation75_spill] sm:$0xff]  ;;  %4584 = vmatprep.subr.bf16.mxu1 %v4833_v51  ;;  %v2128_v43 = vpop.permute.xlu0 %2127 }
 0x2e6   : > { %v1496_v20 = vadd.f32 %v1488_v24, %v1416_v60  ;;  %v1798_v29 = vadd.f32 %v1790_v49, %v1718_v37  ;;  %v1637_v46 = vmul.f32 %v7427_v28, %v1572_v40  ;;  %v2682_v13 = vsel %vm2674_vm3, %v6009_v14, %v2666_v23  ;;  %v7429_v1 = vld [vmem:[#allocation11_spill] sm:$0xff]  ;;  %v7432_v40 = vld [vmem:[#allocation16_spill] sm:$0xff]  ;;  %v7434_v49 = vld [vmem:[#allocation57_spill] sm:$0xff] }
 0x2e7   : > { %v1870_v34 = vmul.f32 %v7424_v48, %v7423_v56  ;;  %v1950_v9 = vmul.f32 %v7426_v52, %v7425_v39  ;;  %v2030_v21 = vmul.f32 %v2013_v45, %v7428_v27  ;;  %v1568_v54 = vmul.f32 %v1560_v33, %v7429_v1  ;;  %4585 = vmatpush3.bf16.msra.mxu1 %v4833_v51  ;;  %v6245_v53 = vld [vmem:[%s5418_s2 + $0x8] sm:$0xff] }
 0x2e8   : > { %4755 = vrot.lane.b32.xlu1 %v4754_v25, %s4924_s7  ;;  %v1636_v61 = vmul.f32 %v7430_v19, %v1571_v32  ;;  %v2689_v7 = vsel %vm2529_vm12, %v2681_v15, %v6000_v5  ;;  %v2690_v30 = vsel %vm2530_vm13, %v2682_v13, %v6009_v14  ;;  %v7431_v41 = vmov 0   ;;  %4586 = vmatprep.subr.bf16.mxu1 %v4834_v42  ;;  %v7433_v32 = vld [vmem:[#allocation48_spill] sm:$0xff] }
 0x2e9   : > { %v1878_v26 = vadd.f32 %v1870_v34, %v1798_v29  ;;  %4829 = vset.pattern.permute.xlu1 %v7431_v41  ;;  %v1576_v50 = vadd.f32 %v1568_v54, %v1496_v20  ;;  %v4774_v5 = vpack.i.bf16 %v2690_v30, %v2689_v7  ;;  %v2081_v14 = vrot.slane %v6245_v53, %v5822_v8 }
 0x2ea   : > { %v4764_v47 = vpack.i.bf16 %v1637_v46, %v1636_v61  ;;  %v6239_v38 = vpop.permute.xlu1 %2043  ;;  %v2161_v59 = vrot.slane %v6245_v53, %v5653_v16  ;;  %v2241_v45 = vrot.slane %v6245_v53, %v5641_v44  ;;  %v2356_v56 = vrot.slane %v6116_v18, %v7395_v17 }
 0x2eb   : > { %v1958_v10 = vadd.f32 %v1950_v9, %v1878_v26  ;;  %v1641_v60 = vmul.f32 %v7432_v40, %v1576_v50  ;;  %4587 = vmatpush3.bf16.msra.mxu1 %v4834_v42  ;;  %v1781_v9 = vrot.slane %v7382_v31, %v7395_v17  ;;  %v6278_v26 = vld [vmem:[%s5418_s2] sm:$0xff]  ;;  %v6290_v50 = vpop.permute.xlu0 %2131  ;;  %v1765_v42 = vrot.slane %v5726_v62, %v7395_v17  ;;  %v7438_v40 = vld [vmem:[#allocation64_spill] sm:$0xff] }
 0x2ec   : > { %4765 = vrot.lane.b32.xlu1 %v4764_v47, %s4925_s21  ;;  %v2187_v36 = vmul.f32 %v2161_v59, %v2128_v43  ;;  %v2267_v37 = vmul.f32 %v2241_v45, %v7433_v32  ;;  %v1757_v19 = vrot.slane %v6278_v26, %v7395_v17  ;;  %v1685_v7 = vrot.slane %v6278_v26, %v5428_v22  ;;  %v7437_v59 = vld [vmem:[#allocation49_spill] sm:$0xff]  ;;  %v7439_v45 = vld [vmem:[#allocation32_spill] sm:$0xff]  ;;  %v7440_v32 = vld [vmem:[#allocation70_spill] sm:$0xff] }
 0x2ed   : > { %v6242_v3 = vadd.f32 %v2030_v21, %v1958_v10  ;;  %v1861_v21 = vrot.slane %v7382_v31, %v7406_v12  ;;  %v1837_v30 = vrot.slane %v6278_v26, %v7406_v12  ;;  %v1917_v10 = vrot.slane %v6278_v26, %v5440_v57 }
 0x2ee   : > { %v2048_v6 = vpop.permute.xlu1 %2047  ;;  %v1714_v43 = vmul.f32 %v1685_v7, %v7437_v59  ;;  %vm3294_vm6 = vcmask 1041409   ;;  %vm3296_vm7 = vcmask 1042434   ;;  %vm3298_vm8 = vcmask 1043459  }
 0x2ef   : > { %v4869_v23 = vpop.eup %4868  ;;  %v2107_v33 = vmul.f32 %v2081_v14, %v2048_v6  ;;  %v2314_v6 = vmax.f32 %v7439_v45, 1e-12  ;;  %v7446_v45 = vld [vmem:[#allocation10_spill] sm:$0xff]  ;;  %vm3300_vm9 = vcmask 1044484   ;;  %vm3302_vm10 = vcmask 1045509  }
 0x2f0   : > { %4775 = vrot.lane.b32.xlu1 %v4774_v5, %s4924_s7  ;;  %v1640_v24 = vmul.f32 %v4869_v23, %v6108_v35  ;;  %v1709_v35 = vrot.slane %v7382_v31, %v5428_v22  ;;  %v7435_v31 = vld [vmem:[#allocation55_spill] sm:$0xff]  ;;  %v7436_v5 = vld [vmem:[#allocation5_spill] sm:$0xff]  ;;  %v1997_v23 = vrot.slane %v6278_v26, %v5450_v0  ;;  %vm3304_vm11 = vcmask 1046534  }
 0x2f1   : > { %v2115_v25 = vadd.f32 %v2107_v33, %v7434_v49  ;;  %v1786_v47 = vmul.f32 %v1757_v19, %v7435_v31  ;;  %v2315_v14 = vmax.f32 %v7436_v5, 1e-12  ;;  %v2077_v49 = vrot.slane %v6278_v26, %v5822_v8 }
 0x2f2   : > { %v4784_v58 = vpack.i.bf16 %v1641_v60, %v1640_v24  ;;  %v1866_v60 = vmul.f32 %v1837_v30, %v7438_v40  ;;  %v1693_v24 = vrot.slane %v5726_v62, %v5428_v22  ;;  %v7444_v30 = vld [vmem:[#allocation25_spill] sm:$0xff]  ;;  %v7445_v40 = vld [vmem:[#allocation35_spill] sm:$0xff]  ;;  %vm3306_vm12 = vcmask 1047559  }
 0x2f3   : > { %v2195_v48 = vadd.f32 %v2187_v36, %v2115_v25  ;;  %v1675_v34 = vpop.permute.xlu1 %1674  ;;  %v6307_v36 = vpop.permute.xlu0 %2139  ;;  %v1845_v25 = vrot.slane %v5726_v62, %v7406_v12  ;;  %4870 = vrcp.f32 %v2315_v14  ;;  %vm4926_vm13 = vmmov 0  }
 0x2f4   : > { %4785 = vrot.lane.b32.xlu1 %v4784_v58, %s4925_s21  ;;  %v1720_v20 = vmul.f32 %v1709_v35, %v1675_v34  ;;  %v1794_v58 = vadd.f32 %v1786_v47, %v1714_v43  ;;  %v2026_v35 = vmul.f32 %v1997_v23, %v6104_v63  ;;  %4872 = vrcp.f32 %v2314_v6 }
 0x2f5   : > { %v6261_v39 = vadd.f32 %v2267_v37, %v2195_v48  ;;  %v1946_v37 = vmul.f32 %v1917_v10, %v7440_v32  ;;  %v2106_v63 = vmul.f32 %v2077_v49, %v6239_v38  ;;  %v1868_v31 = vmul.f32 %v1845_v25, %v7444_v30 }
 0x2f6   : > { %v1874_v34 = vadd.f32 %v1866_v60, %v1794_v58  ;;  %v1769_v10 = vrot.slane %v5731_v55, %v7395_v17  ;;  %v2237_v43 = vrot.slane %v6278_v26, %v5641_v44  ;;  %v2245_v38 = vrot.slane %v5726_v62, %v5641_v44 }
 0x2f7   : > { %v6263_v52 = vpop.permute.xlu1 %1679  ;;  %v6334_v5 = vpop.permute.xlu0 %2151  ;;  %v2085_v23 = vrot.slane %v5726_v62, %v5822_v8  ;;  %v1849_v32 = vrot.slane %v5731_v55, %v7406_v12  ;;  %vm4087_vm14 = vcmask 785408  }
 0x2f8   : > { %2358 = vbcast.lane.b32.xlu1 %v2356_v56, 256  ;;  %v7441_v56 = vld [vmem:[#allocation61_spill] sm:$0xff]  ;;  %v1954_v19 = vadd.f32 %v1946_v37, %v1874_v34  ;;  %v7448_v37 = vld [vmem:[#allocation62_spill] sm:$0xff]  ;;  %v1713_v34 = vrot.slane %v7384_v11, %v5428_v22 }
 0x2f9   : > { %v1788_v48 = vmul.f32 %v1765_v42, %v7441_v56  ;;  %v2005_v42 = vrot.slane %v5726_v62, %v5450_v0  ;;  %v1789_v49 = vmul.f32 %v1769_v10, %v7448_v37  ;;  %v7449_v56 = vld [vmem:[#allocation54_spill] sm:$0xff]  ;;  %v7451_v10 = vld [vmem:[#allocation67_spill] sm:$0xff] }
 0x2fa   : > { %v2034_v14 = vadd.f32 %v2026_v35, %v1954_v19  ;;  %v1865_v19 = vrot.slane %v7384_v11, %v7406_v12 }
 0x2fc   : > { %v1748_v15 = vpop.permute.xlu1 %1747 }
 0x2fd   : > { %v1792_v29 = vmul.f32 %v1781_v9, %v1748_v15  ;;  %v2157_v9 = vrot.slane %v6278_v26, %v5653_v16  ;;  %v7442_v15 = vld [vmem:[#allocation7_spill] sm:$0xff]  ;;  %v4871_v30 = vpop.eup %4870 }
 0x2ff   : > { %v1800_v28 = vadd.f32 %v1792_v29, %v1720_v20  ;;  %v2317_v20 = vmax.f32 %v7442_v15, 1e-12  ;;  %v7443_v29 = vld [vmem:[#allocation60_spill] sm:$0xff]  ;;  %v1929_v15 = vrot.slane %v5731_v55, %v5440_v57 }
 0x301   : > { %v6269_v46 = vpop.permute.xlu1 %2051  ;;  %4874 = vrcp.f32 %v2317_v20 }
 0x305   : > { %v6271_v13 = vpop.permute.xlu1 %2055 }
 0x30a   : > { %v6273_v51 = vpop.permute.xlu1 %1823 }
 0x30f   : > { %v2124_v27 = vpop.permute.xlu1 %2123 }
 0x310   : > { %v2186_v59 = vmul.f32 %v2157_v9, %v2124_v27  ;;  %v2114_v27 = vadd.f32 %v2106_v63, %v2034_v14  ;;  %v2025_v9 = vrot.slane %v7384_v11, %v5450_v0  ;;  %v6363_v63 = vpop.permute.xlu0 %2223  ;;  %v2009_v14 = vrot.slane %v5731_v55, %v5450_v0 }
 0x312   : > { %v2194_v20 = vadd.f32 %v2186_v59, %v2114_v27  ;;  %v6374_v27 = vld [vmem:[%s5418_s2 + $0x18] sm:$0xff] }
 0x314   : > { %v1828_v1 = vpop.permute.xlu1 %1827 }
 0x315   : > { %v1872_v54 = vmul.f32 %v1861_v21, %v1828_v1  ;;  %v1925_v21 = vrot.slane %v5726_v62, %v5440_v57  ;;  %v1697_v1 = vrot.slane %v5731_v55, %v5428_v22  ;;  %v2089_v55 = vrot.slane %v6374_v27, %v5822_v8 }
 0x317   : > { %v6282_v61 = vadd.f32 %v1872_v54, %v1800_v28  ;;  %v1716_v28 = vmul.f32 %v1693_v24, %v7443_v29  ;;  %v1785_v54 = vrot.slane %v7384_v11, %v7395_v17  ;;  %v1948_v60 = vmul.f32 %v1925_v21, %v7445_v40  ;;  %v7447_v24 = vld [vmem:[#allocation18_spill] sm:$0xff] }
 0x318   : > { %v6288_v41 = vpop.permute.xlu1 %1831  ;;  %v1717_v6 = vmul.f32 %v1697_v1, %v7446_v45  ;;  %v2108_v1 = vmul.f32 %v2085_v23, %v6269_v46  ;;  %v4873_v46 = vpop.eup %4872  ;;  %v1721_v23 = vmul.f32 %v1713_v34, %v6263_v52  ;;  %v7453_v45 = vld [vmem:[#allocation15_spill] sm:$0xff]  ;;  %v1945_v52 = vrot.slane %v7384_v11, %v5440_v57 }
 0x319   : > { %v1796_v47 = vadd.f32 %v1788_v48, %v1716_v28  ;;  %v1793_v58 = vmul.f32 %v1785_v54, %v7447_v24  ;;  %v2028_v48 = vmul.f32 %v2005_v42, %v7449_v56  ;;  %v4835_v28 = vld [vmem:[%s7142_s10] sm:$0xff]   ;;  %v2165_v54 = vrot.slane %v5726_v62, %v5653_v16 }
 0x31a   : > { %v1869_v42 = vmul.f32 %v1849_v32, %v7451_v10  ;;  %4612 = vmatprep.subr.bf16.mxu0 %v4835_v28  ;;  %v1797_v62 = vadd.f32 %v1789_v49, %v1717_v6  ;;  %v1949_v24 = vmul.f32 %v1929_v15, %v7453_v45  ;;  %v1873_v49 = vmul.f32 %v1865_v19, %v6288_v41  ;;  %v4875_v15 = vpop.eup %4874 }
 0x31b   : > { %v1876_v25 = vadd.f32 %v1868_v31, %v1796_v47  ;;  %v7450_v31 = vld [vmem:[#allocation50_spill] sm:$0xff]  ;;  %4613 = vmatpush3.bf16.msra.mxu0 %v4835_v28  ;;  %v2188_v6 = vmul.f32 %v2165_v54, %v6290_v50  ;;  %v1801_v50 = vadd.f32 %v1793_v58, %v1721_v23  ;;  %v4751_v28 = vpop.permute.xlu0 %4750  ;;  %v7456_v23 = vmov 0.0  }
 0x31c   : > { %v2268_v47 = vmul.f32 %v2245_v38, %v7450_v31  ;;  %v2339_v38 = vmul.f32 %v4871_v30, %v6261_v39  ;;  %v1877_v56 = vadd.f32 %v1869_v42, %v1797_v62  ;;  %v2169_v39 = vrot.slane %v6374_v27, %v5653_v16  ;;  %v4836_v30 = vld [vmem:[%s7142_s10 + $0x8] sm:$0xff]  }
 0x31d   : > { %v6305_v33 = vpop.permute.xlu1 %2135  ;;  %v1956_v21 = vadd.f32 %v1948_v60, %v1876_v25  ;;  %v4753_v54 = vunpack.i.h.bf16 %v4751_v28  ;;  %v4752_v19 = vunpack.i.l.bf16 %v4751_v28  ;;  %v1881_v42 = vadd.f32 %v1873_v49, %v1801_v50  ;;  %4614 = vmatprep.subr.bf16.mxu0 %v4836_v30 }
 0x31e   : > { %v1957_v11 = vadd.f32 %v1949_v24, %v1877_v56 }
 0x31f   : > { %v2036_v60 = vadd.f32 %v2028_v48, %v1956_v21  ;;  %v7454_v48 = vld [vmem:[#allocation23_spill] sm:$0xff]  ;;  %v2109_v21 = vmul.f32 %v2089_v55, %v6271_v13  ;;  %v2249_v13 = vrot.slane %v6374_v27, %v5641_v44  ;;  %4615 = vmatpush3.bf16.msra.mxu0 %v4836_v30 }
 0x320   : > { %v2029_v34 = vmul.f32 %v2009_v14, %v7454_v48  ;;  %v2189_v14 = vmul.f32 %v2169_v39, %v6305_v33  ;;  %v2756_v33 = vsel %vm2410_vm1, %v6245_v53, %v4753_v54  ;;  %4640 = vmatprep.subr.bf16.mxu0 %v7456_v23 }
 0x321   : > { %v2116_v25 = vadd.f32 %v2108_v1, %v2036_v60 }
 0x322   : > { %v6327_v7 = vpop.permute.xlu1 %1903  ;;  %v2037_v58 = vadd.f32 %v2029_v34, %v1957_v11 }
 0x323   : > { %v2196_v31 = vadd.f32 %v2188_v6, %v2116_v25 }
 0x324   : > { %v2117_v60 = vadd.f32 %v2109_v21, %v2037_v58 }
 0x327   : > { %v2204_v35 = vpop.permute.xlu1 %2203 }
 0x328   : > { %v2266_v29 = vmul.f32 %v2237_v43, %v2204_v35  ;;  %v7452_v43 = vld [vmem:[#allocation41_spill] sm:$0xff] }
 0x329   : > { %v2316_v40 = vmax.f32 %v7452_v43, 1e-12 }
 0x32a   : > { %v2274_v59 = vadd.f32 %v2266_v29, %v2194_v20  ;;  %v6388_v20 = vld [vmem:[%s5418_s2 + $0x28] sm:$0xff] }
 0x32b   : > { %4876 = vrcp.f32 %v2316_v40  ;;  %v1705_v29 = vrot.slane %v6388_v20, %v5428_v22  ;;  %v1777_v41 = vrot.slane %v6388_v20, %v7395_v17  ;;  %v1857_v10 = vrot.slane %v6388_v20, %v7406_v12 }
 0x32c   : > { %v2338_v32 = vmul.f32 %v4873_v46, %v2274_v59  ;;  %v6378_v37 = vpop.permute.xlu1 %1907  ;;  %v7455_v59 = vld [vmem:[#allocation79_spill] sm:$0xff]  ;;  %v1937_v40 = vrot.slane %v6388_v20, %v5440_v57  ;;  %v2755_v12 = vsel %vm2410_vm1, %v6278_v26, %v4752_v19  ;;  %v2017_v48 = vrot.slane %v6388_v20, %v5450_v0 }
 0x32d   : > { %v2033_v46 = vmul.f32 %v2025_v9, %v7455_v59  ;;  %v1791_v43 = vmul.f32 %v1777_v41, %v6218_v2  ;;  %v1719_v45 = vmul.f32 %v1705_v29, %v6173_v4  ;;  %v2276_v9 = vadd.f32 %v2268_v47, %v2196_v31  ;;  %v6433_v59 = vld [vmem:[%s5418_s2 + $0x20] sm:$0xff] }
 0x32e   : > { %v4789_v35 = vpack.i.bf16 %v2339_v38, %v2338_v32  ;;  %v1871_v2 = vmul.f32 %v1857_v10, %v6273_v51  ;;  %v2197_v32 = vadd.f32 %v2189_v14, %v2117_v60  ;;  %v1951_v56 = vmul.f32 %v1937_v40, %v6327_v7  ;;  %v7458_v14 = vld [vmem:[#allocation12_spill] sm:$0xff]  ;;  %v7459_v40 = vld [vmem:[#allocation71_spill] sm:$0xff] }
 0x32f   : > { %v2097_v39 = vrot.slane %v6388_v20, %v5822_v8  ;;  %v2384_v31 = vrot.slane %v6116_v18, %v5822_v8 }
 0x330   : > { %v1912_v1 = vpop.permute.xlu1 %1911  ;;  %4790 = vrot.lane.b32.xlu1 %v4789_v35, %s4924_s7 }
 0x331   : > { %v1953_v17 = vmul.f32 %v1945_v52, %v1912_v1  ;;  %v1799_v52 = vadd.f32 %v1791_v43, %v1719_v45  ;;  %v7457_v1 = vld [vmem:[#allocation9_spill] sm:$0xff]  ;;  %v2177_v43 = vrot.slane %v6388_v20, %v5653_v16 }
 0x332   : > { %v2111_v54 = vmul.f32 %v2097_v39, %v7457_v1 }
 0x333   : > { %v1961_v62 = vadd.f32 %v1953_v17, %v1881_v42  ;;  %v1879_v35 = vadd.f32 %v1871_v2, %v1799_v52 }
 0x335   : > { %v2216_v24 = vpop.permute.xlu1 %2215  ;;  %v4761_v38 = vpop.permute.xlu0 %4760  ;;  %v6415_v55 = vadd.f32 %v2033_v46, %v1961_v62  ;;  %v1959_v11 = vadd.f32 %v1951_v56, %v1879_v35  ;;  %v2093_v46 = vrot.slane %v6433_v59, %v5822_v8  ;;  %v2318_v62 = vmax.f32 %v7459_v40, 1e-12  ;;  %v6458_v56 = vld [vmem:[%s5418_s2 + $0x38] sm:$0xff] }
 0x336   : > { %v2269_v25 = vmul.f32 %v2249_v13, %v2216_v24  ;;  %v4763_v6 = vunpack.i.h.bf16 %v4761_v38  ;;  %v4762_v49 = vunpack.i.l.bf16 %v4761_v38  ;;  %v4877_v51 = vpop.eup %4876  ;;  %v2319_v13 = vmax.f32 %v7458_v14, 1e-12 }
 0x337   : > { %v2340_v41 = vmul.f32 %v4877_v51, %v2276_v9  ;;  %v2173_v24 = vrot.slane %v6433_v59, %v5653_v16 }
 0x338   : > { %v2277_v34 = vadd.f32 %v2269_v25, %v2197_v32  ;;  %v2764_v4 = vsel %vm2763_vm4, %v2755_v12, %v4762_v49  ;;  %v2765_v47 = vsel %vm2763_vm4, %v2756_v33, %v4763_v6  ;;  %v6441_v12 = vld [vmem:[%s5418_s2 + $0x30] sm:$0xff]  ;;  %v2257_v33 = vrot.slane %v6388_v20, %v5641_v44  ;;  %v7460_v32 = vld [vmem:[#allocation14_spill] sm:$0xff] }
 0x339   : > { %v2772_v29 = vpack.c.bf16 %v2765_v47, %v2764_v4  ;;  %4878 = vrcp.f32 %v2319_v13  ;;  %v2021_v2 = vrot.slane %v6441_v12, %v5450_v0  ;;  %v2321_v25 = vmax.f32 %v7460_v32, 1e-12  ;;  %v7461_v4 = vld [vmem:[#allocation40_spill] sm:$0xff] }
 0x33a   : > { %v2341_v50 = vmul.f32 %v4875_v15, %v2277_v34  ;;  %v1984_v28 = vpop.permute.xlu1 %1983  ;;  %v2398_v15 = vrot.slane %v6116_v18, %v5641_v44  ;;  %v1941_v18 = vrot.slane %v6441_v12, %v5440_v57  ;;  %4880 = vrcp.f32 %v2318_v62  ;;  %v6482_v62 = vld [vmem:[%s861_s28] sm:$0xff] }
 0x33b   : > { %v2031_v7 = vmul.f32 %v2017_v48, %v1984_v28  ;;  %4588 = vmatprep.mubr.msk.bf16.mxu1 %vm2807_vm5, %v2772_v29  ;;  %v2271_v57 = vmul.f32 %v2257_v33, %v6363_v63  ;;  %v2101_v49 = vrot.slane %v6441_v12, %v5822_v8  ;;  %v2105_v0 = vrot.slane %v6458_v56, %v5822_v8 }
 0x33c   : > { %v4794_v21 = vpack.i.bf16 %v2341_v50, %v2340_v41  ;;  %v1952_v6 = vmul.f32 %v1941_v18, %v6378_v37  ;;  %v2253_v34 = vrot.slane %v6433_v59, %v5641_v44  ;;  %v2320_v47 = vmax.f32 %v7461_v4, 1e-12 }
 0x33d   : > { %v2039_v19 = vadd.f32 %v2031_v7, %v1959_v11  ;;  %v2190_v37 = vmul.f32 %v2173_v24, %v6307_v36  ;;  %v2181_v63 = vrot.slane %v6441_v12, %v5653_v16  ;;  %4882 = vrcp.f32 %v2321_v25 }
 0x33e   : > { %v1988_v30 = vpop.permute.xlu1 %1987  ;;  %4795 = vrot.lane.b32.xlu1 %v4794_v21, %s4924_s7  ;;  %v2261_v8 = vrot.slane %v6441_v12, %v5641_v44  ;;  %4884 = vrcp.f32 %v2320_v47  ;;  %v2185_v36 = vrot.slane %v6458_v56, %v5653_v16 }
 0x33f   : > { %v2119_v10 = vadd.f32 %v2111_v54, %v2039_v19  ;;  %v2032_v51 = vmul.f32 %v2021_v2, %v1988_v30  ;;  %v2265_v30 = vrot.slane %v6458_v56, %v5641_v44 }
 0x342   : > { %2386 = vbcast.lane.b32.xlu1 %v2384_v31, 256  ;;  %v4771_v31 = vpop.permute.xlu0 %4770 }
 0x343   : > { %v4879_v7 = vpop.eup %4878 }
 0x344   : > { %v2060_v42 = vpop.permute.xlu1 %2059  ;;  %v4881_v54 = vpop.eup %4880 }
 0x345   : > { %v2110_v45 = vmul.f32 %v2093_v46, %v2060_v42 }
 0x346   : > { %2400 = vbcast.lane.b32.xlu1 %v2398_v15, 256  ;;  %v4781_v18 = vpop.permute.xlu0 %4780 }
 0x347   : > { %v2118_v52 = vadd.f32 %v2110_v45, %v6242_v3  ;;  %v1960_v3 = vadd.f32 %v1952_v6, %v6282_v61  ;;  %v4883_v44 = vpop.eup %4882  ;;  %v4783_v32 = vunpack.i.h.bf16 %v4781_v18  ;;  %v4782_v25 = vunpack.i.l.bf16 %v4781_v18 }
 0x348   : > { %v2068_v17 = vpop.permute.xlu1 %2067  ;;  %v4885_v33 = vpop.eup %4884 }
 0x349   : > { %v2112_v39 = vmul.f32 %v2101_v49, %v2068_v17  ;;  %v2198_v50 = vadd.f32 %v2190_v37, %v2118_v52  ;;  %v2040_v11 = vadd.f32 %v2032_v51, %v1960_v3  ;;  %v4839_v51 = vld [vmem:[%s7463_s9] sm:$0xff]  }
 0x34a   : > { %4596 = vmatprep.subr.bf16.mxu1 %v4839_v51 }
 0x34b   : > { %v2120_v61 = vadd.f32 %v2112_v39, %v2040_v11 }
 0x34c   : > { %v2072_v58 = vpop.permute.xlu1 %2071 }
 0x34d   : > { %v2113_v29 = vmul.f32 %v2105_v0, %v2072_v58  ;;  %v2193_v58 = vmul.f32 %v2185_v36, %v6334_v5  ;;  %v6493_v0 = vld [vmem:[%s5418_s2 + $0x10] sm:$0xff]  ;;  %s892_s2 = scalar_lea.vmem %s7155_s23, %s6087_s27 }
 0x352   : > { %v2144_v60 = vpop.permute.xlu1 %2143 }
 0x353   : > { %v2191_v9 = vmul.f32 %v2177_v43, %v2144_v60  ;;  %v4772_v60 = vunpack.i.l.bf16 %v4771_v31 }
 0x355   : > { %v2199_v48 = vadd.f32 %v2191_v9, %v2119_v10  ;;  %v2121_v10 = vadd.f32 %v2113_v29, %v6415_v55  ;;  %v4773_v55 = vunpack.i.h.bf16 %v4771_v31  ;;  %v4840_v29 = vld [vmem:[%s7463_s9 + $0x8] sm:$0xff]  }
 0x356   : > { %v2148_v38 = vpop.permute.xlu1 %2147 }
 0x357   : > { %v2279_v41 = vadd.f32 %v2271_v57, %v2199_v48  ;;  %v2192_v21 = vmul.f32 %v2181_v63, %v2148_v38  ;;  %v2201_v43 = vadd.f32 %v2193_v58, %v2121_v10  ;;  %v2760_v6 = vsel %vm2410_vm1, %v6388_v20, %v4773_v55  ;;  %v4900_v58 = vld [vmem:[%s5548_s8 + $0x8] sm:$0xff] }
 0x358   : > { %v2759_v57 = vsel %vm2410_vm1, %v6433_v59, %v4772_v60  ;;  %v2769_v63 = vsel %vm2763_vm4, %v2760_v6, %v4783_v32 }
 0x359   : > { %v2343_v15 = vmul.f32 %v4879_v7, %v2279_v41  ;;  %v2200_v14 = vadd.f32 %v2192_v21, %v2120_v61  ;;  %v2768_v37 = vsel %vm2763_vm4, %v2759_v57, %v4782_v25 }
 0x35a   : > { %v2774_v41 = vpack.c.bf16 %v2769_v63, %v2768_v37 }
 0x35b   : > { %v2220_v35 = vpop.permute.xlu1 %2219 }
 0x35c   : > { %v2270_v28 = vmul.f32 %v2253_v34, %v2220_v35 }
 0x35e   : > { %v2278_v1 = vadd.f32 %v2270_v28, %v2198_v50 }
 0x35f   : > { %v2228_v19 = vpop.permute.xlu1 %2227 }
 0x360   : > { %v2342_v42 = vmul.f32 %v4881_v54, %v2278_v1  ;;  %v2272_v17 = vmul.f32 %v2261_v8, %v2228_v19 }
 0x362   : > { %v4799_v13 = vpack.i.bf16 %v2343_v15, %v2342_v42  ;;  %v2280_v46 = vadd.f32 %v2272_v17, %v2200_v14  ;;  %v4899_v42 = vld [vmem:[%s5548_s8] sm:$0xff] }
 0x363   : > { %v2232_v16 = vpop.permute.xlu1 %2231 }
 0x364   : > { %v2273_v40 = vmul.f32 %v2265_v30, %v2232_v16  ;;  %4800 = vrot.lane.b32.xlu0 %v4799_v13, %s4924_s7  ;;  %v2344_v9 = vmul.f32 %v4885_v33, %v2280_v46  ;;  %v2352_v13 = vpop.permute.xlu0 %2351 }
 0x365   : > { %v2402_v60 = vmul.f32 %v6278_v26, %v2352_v13 }
 0x366   : > { %v2281_v5 = vadd.f32 %v2273_v40, %v2201_v43 }
 0x367   : > { %v4756_v45 = vpop.permute.xlu1 %4755  ;;  %v2411_v25 = vsel %vm2410_vm1, %v2402_v60, 0.0 }
 0x368   : > { %v2345_v2 = vmul.f32 %v4883_v44, %v2281_v5  ;;  %v4758_v24 = vunpack.i.h.bf16 %v4756_v45  ;;  %v4757_v38 = vunpack.i.l.bf16 %v4756_v45  ;;  %3310 = vrot.lane.b32.xlu0 %v6482_v62, %s4924_s7  ;;  %v2366_v46 = vpop.permute.xlu0 %2365  ;;  %v4901_v5 = vld [vmem:[%s5548_s8 + $0x18] sm:$0xff]  ;;  %v4902_v45 = vld [vmem:[%s5548_s8 + $0x10] sm:$0xff] }
 0x36a   : > { %v4804_v49 = vpack.i.bf16 %v2345_v2, %v2344_v9  ;;  %v2758_v52 = vsel %vm2410_vm1, %v6374_v27, %v4758_v24  ;;  %v2757_v48 = vsel %vm2410_vm1, %v6493_v0, %v4757_v38  ;;  %v4837_v2 = vld [vmem:[%s7146_s14] sm:$0xff]   ;;  %v2404_v38 = vmul.f32 %v6493_v0, %v2366_v46 }
 0x36b   : > { %v4766_v34 = vpop.permute.xlu1 %4765 }
 0x36c   : > { %v4768_v4 = vunpack.i.h.bf16 %v4766_v34  ;;  %v4767_v47 = vunpack.i.l.bf16 %v4766_v34  ;;  %4805 = vrot.lane.b32.xlu1 %v4804_v49, %s4924_s7  ;;  %v2373_v18 = vpop.permute.xlu0 %2372  ;;  %v4838_v49 = vld [vmem:[%s7146_s14 + $0x8] sm:$0xff]   ;;  %v2425_v34 = vsel %vm2410_vm1, %v2404_v38, 0.0  ;;  %s901_s7 = scalar_lea.vmem %s7157_s25, %s6087_s27 }
 0x36d   : > { %v2405_v6 = vmul.f32 %v6374_v27, %v2373_v18 }
 0x36e   : > { %v2766_v3 = vsel %vm2763_vm4, %v2757_v48, %v4767_v47  ;;  %v2767_v39 = vsel %vm2763_vm4, %v2758_v52, %v4768_v4  ;;  %v2412_v48 = vrot.slane %v2411_v25, 4 }
 0x36f   : > { %v2773_v35 = vpack.c.bf16 %v2767_v39, %v2766_v3  ;;  %v4776_v8 = vpop.permute.xlu1 %4775  ;;  %v2432_v37 = vsel %vm2410_vm1, %v2405_v6, 0.0 }
 0x370   : > { %v4778_v50 = vunpack.i.h.bf16 %v4776_v8  ;;  %v4777_v28 = vunpack.i.l.bf16 %v4776_v8  ;;  %v2380_v57 = vpop.permute.xlu0 %2379  ;;  %v2413_v3 = vadd.f32 %v2412_v48, %v2411_v25  ;;  %v2433_v8 = vrot.slane %v2432_v37, 4 }
 0x371   : > { %4589 = vmatmul.mubr.msk.bf16.vlgmr.msra.gmra.mrb[0].mxu1 %vm2807_vm5, %v2773_v35  ;;  %v2406_v4 = vmul.f32 %v6433_v59, %v2380_v57 }
 0x372   : > { %4592 = vmatprep.mubr.msk.bf16.mxu1 %vm2807_vm5, %v2774_v41  ;;  %4597 = vmatpush3.bf16.msra.mxu1 %v4839_v51  ;;  %v2762_v11 = vsel %vm2410_vm1, %v6458_v56, %v4778_v50  ;;  %v2761_v7 = vsel %vm2410_vm1, %v6441_v12, %v4777_v28  ;;  %v2426_v51 = vrot.slane %v2425_v34, 4  ;;  %v2414_v28 = vrot.slane %v2413_v3, 2 }
 0x373   : > { %v4786_v36 = vpop.permute.xlu1 %4785  ;;  %4598 = vmatprep.subr.bf16.mxu1 %v4840_v29 }
 0x374   : > { %v4788_v21 = vunpack.i.h.bf16 %v4786_v36  ;;  %v4787_v1 = vunpack.i.l.bf16 %v4786_v36  ;;  %v2394_v35 = vpop.permute.xlu0 %2393  ;;  %v2427_v41 = vadd.f32 %v2426_v51, %v2425_v34 }
 0x376   : > { %v2770_v54 = vsel %vm2763_vm4, %v2761_v7, %v4787_v1  ;;  %v2771_v61 = vsel %vm2763_vm4, %v2762_v11, %v4788_v21  ;;  %4599 = vmatpush3.bf16.msra.mxu1 %v4840_v29  ;;  %v2439_v29 = vsel %vm2410_vm1, %v2406_v4, 0.0  ;;  %v2408_v11 = vmul.f32 %v6441_v12, %v2394_v35 }
 0x377   : > { %v2775_v19 = vpack.c.bf16 %v2771_v61, %v2770_v54  ;;  %v2359_v30 = vpop.permute.xlu1 %2358  ;;  %v2440_v36 = vrot.slane %v2439_v29, 4  ;;  %v2434_v1 = vadd.f32 %v2433_v8, %v2432_v37  ;;  %v2428_v54 = vrot.slane %v2427_v41, 2 }
 0x378   : > { %v2403_v40 = vmul.f32 %v6245_v53, %v2359_v30 }
 0x379   : > { %4593 = vmatmul.mubr.msk.bf16.gmra.mrb[4].mxu1 %vm2807_vm5, %v2775_v19  ;;  %v4841_v19 = vld [vmem:[%s7463_s9 + $0x10] sm:$0xff]  }
 0x37a   : > { %v2418_v32 = vsel %vm2410_vm1, %v2403_v40, 0.0  ;;  %4600 = vmatprep.subr.bf16.mxu1 %v4841_v19 }
 0x37b   : > { %v2419_v52 = vrot.slane %v2418_v32, 4  ;;  %4601 = vmatpush3.bf16.msra.mxu1 %v4841_v19 }
 0x37d   : > { %v2420_v63 = vadd.f32 %v2419_v52, %v2418_v32 }
 0x37f   : > { %v2421_v50 = vrot.slane %v2420_v63, 2 }
 0x381   : > { %v2422_v30 = vadd.f32 %v2421_v50, %v2420_v63 }
 0x383   : > { %v2423_v46 = vrot.slane %v2422_v30, 1 }
 0x3a2   : > { %v4791_v31 = vpop.permute.xlu1 %4790 }
 0x3a3   : > { %v4793_v10 = vunpack.i.h.bf16 %v4791_v31  ;;  %v4792_v15 = vunpack.i.l.bf16 %v4791_v31  ;;  %v2415_v31 = vadd.f32 %v2414_v28, %v2413_v3  ;;  %v4904_v28 = vld [vmem:[%s5548_s8 + $0x20] sm:$0xff] }
 0x3a5   : > { %v3046_v17 = vsel %vm2410_vm1, %v4899_v42, %v4792_v15  ;;  %v3047_v14 = vsel %vm2410_vm1, %v4900_v58, %v4793_v10  ;;  %v2453_v15 = vsel %vm2410_vm1, %v2408_v11, 0.0  ;;  %v2441_v42 = vadd.f32 %v2440_v36, %v2439_v29 }
 0x3a6   : > { %v3054_v16 = vpack.c.bf16 %v3047_v14, %v3046_v17  ;;  %v2435_v17 = vrot.slane %v2434_v1, 2  ;;  %v2429_v58 = vadd.f32 %v2428_v54, %v2427_v41  ;;  %v2454_v14 = vrot.slane %v2453_v15, 4  ;;  %v4903_v41 = vld [vmem:[%s5548_s8 + $0x28] sm:$0xff] }
 0x3a8   : > { %4616 = vmatprep.mubr.msk.bf16.mxu0 %vm2763_vm4, %v3054_v16  ;;  %v4842_v16 = vld [vmem:[%s7463_s9 + $0x18] sm:$0xff]   ;;  %v2430_v18 = vrot.slane %v2429_v58, 1 }
 0x3a9   : > { %4602 = vmatprep.subr.bf16.mxu1 %v4842_v16 }
 0x3aa   : > { %4603 = vmatpush3.bf16.msra.mxu1 %v4842_v16  ;;  %v2431_v32 = vadd.f32 %v2430_v18, %v2429_v58  ;;  %v4906_v58 = vld [vmem:[%s5548_s8 + $0x30] sm:$0xff]  ;;  %v7464_v18 = vld [vmem:[#allocation51_spill] sm:$0xff] }
 0x3b0   : > { %v4796_v43 = vpop.permute.xlu1 %4795 }
 0x3b1   : > { %v4798_v44 = vunpack.i.h.bf16 %v4796_v43  ;;  %v4797_v55 = vunpack.i.l.bf16 %v4796_v43  ;;  %v2416_v43 = vrot.slane %v2415_v31, 1 }
 0x3b3   : > { %v3049_v33 = vsel %vm2410_vm1, %v4901_v5, %v4798_v44  ;;  %v3048_v9 = vsel %vm2410_vm1, %v4902_v45, %v4797_v55  ;;  %v2442_v44 = vrot.slane %v2441_v42, 2  ;;  %v2436_v55 = vadd.f32 %v2435_v17, %v2434_v1 }
 0x3b4   : > { %v3055_v24 = vpack.c.bf16 %v3049_v33, %v3048_v9  ;;  %v2387_v47 = vpop.permute.xlu1 %2386  ;;  %v2455_v5 = vadd.f32 %v2454_v14, %v2453_v15  ;;  %v2424_v33 = vadd.f32 %v2423_v46, %v2422_v30  ;;  %v2417_v45 = vadd.f32 %v2416_v43, %v2415_v31 }
 0x3b5   : > { %v2407_v39 = vmul.f32 %v6388_v20, %v2387_v47 }
 0x3b6   : > { %4617 = vmatmul.mubr.msk.bf16.vlgmr.msra.gmra.mrb[0].mxu0 %vm2763_vm4, %v3055_v24  ;;  %v2437_v24 = vrot.slane %v2436_v55, 1  ;;  %v2456_v25 = vrot.slane %v2455_v5, 2  ;;  %v3295_v6 = vsel %vm3294_vm6, %v2424_v33, %v2417_v45  ;;  %v3572_v33 = vcombine.high %v6482_v62, %v6482_v62 }
 0x3b7   : > { %4641 = vmatpush3.bf16.msra.mxu0 %v4837_v2  ;;  %v2446_v21 = vsel %vm2410_vm1, %v2407_v39, 0.0  ;;  %v2443_v2 = vadd.f32 %v2442_v44, %v2441_v42  ;;  %v3297_v34 = vsel %vm3296_vm7, %v2431_v32, %v3295_v6  ;;  %v6561_v39 = vld [vmem:[%s7144_s12] sm:$0xff]   ;;  %v4905_v42 = vld [vmem:[%s5548_s8 + $0x38] sm:$0xff]  ;;  %v4927_v44 = vmov 1966171168   ;;  %s4928_s8 = smov 64  }
 0x3b8   : > { %4642 = vmatprep.subr.bf16.mxu0 %v7456_v23  ;;  %v2401_v7 = vpop.permute.xlu1 %2400  ;;  %v2447_v10 = vrot.slane %v2446_v21, 4  ;;  %v2438_v52 = vadd.f32 %v2437_v24, %v2436_v55  ;;  %v2457_v4 = vadd.f32 %v2456_v25, %v2455_v5  ;;  %4624 = vmatprep.subr.bf16.mxu1 %v6561_v39  ;;  %v3469_v55 = vunpack.c.l.s4 %v4927_v44  ;;  %v4481_v25 = vld [vmem:[%s7465_s1] ss:$0 sm:$0xff] }
 0x3b9   : > { %v2409_v61 = vmul.f32 %v6458_v56, %v2401_v7 }
 0x3ba   : > { %v2448_v40 = vadd.f32 %v2447_v10, %v2446_v21  ;;  %v3299_v35 = vsel %vm3298_vm8, %v2438_v52, %v3297_v34  ;;  %v2458_v29 = vrot.slane %v2457_v4, 1 }
 0x3bb   : > { %4643 = vmatpush3.bf16.msra.mxu0 %v4838_v49  ;;  %v2460_v13 = vsel %vm2410_vm1, %v2409_v61, 0.0  ;;  %v2444_v49 = vrot.slane %v2443_v2, 1 }
 0x3bc   : > { %v2461_v60 = vrot.slane %v2460_v13, 4  ;;  %v2449_v9 = vrot.slane %v2448_v40, 2  ;;  %v2459_v54 = vadd.f32 %v2458_v29, %v2457_v4 }
 0x3bd   : > { %v2445_v37 = vadd.f32 %v2444_v49, %v2443_v2 }
 0x3be   : > { %v2462_v38 = vadd.f32 %v2461_v60, %v2460_v13  ;;  %v2450_v57 = vadd.f32 %v2449_v9, %v2448_v40  ;;  %v3470_v60 = vunpack.c.0.s8 %v3469_v55 }
 0x3bf   : > { %v3301_v21 = vsel %vm3300_vm9, %v2445_v37, %v3299_v35 }
 0x3c0   : > { %v2463_v48 = vrot.slane %v2462_v38, 2  ;;  %v2451_v47 = vrot.slane %v2450_v57, 1  ;;  %v6584_v5 = vsub.s32 %v3470_v60, %v7464_v18  ;;  %v4498_v60 = vld [vmem:[%s7143_s11] ss:$0 sm:$0xff] }
 0x3c2   : > { %v2464_v8 = vadd.f32 %v2463_v48, %v2462_v38  ;;  %v2452_v7 = vadd.f32 %v2451_v47, %v2450_v57  ;;  %v3579_v45 = vrot.slane %v6482_v62, %v6584_v5  ;;  %v3586_v9 = vrot.slane %v3572_v33, %v6584_v5 }
 0x3c4   : > { %v2465_v1 = vrot.slane %v2464_v8, 1  ;;  %v3303_v61 = vsel %vm3302_vm10, %v2452_v7, %v3301_v21  ;;  %v3587_v2 = vcombine.high %v3579_v45, %v3579_v45  ;;  %v3588_v24 = vcombine.high %v3586_v9, %v3586_v9 }
 0x3c5   : > { %v3305_v15 = vsel %vm3304_vm11, %v2459_v54, %v3303_v61  ;;  %v6592_v38 = vrot.slane %v3579_v45, %v6584_v5  ;;  %v6601_v6 = vrot.slane %v3586_v9, %v6584_v5 }
 0x3c6   : > { %v2466_v10 = vadd.f32 %v2465_v1, %v2464_v8  ;;  %v6595_v32 = vrot.slane %v3587_v2, %v6584_v5  ;;  %v6604_v52 = vrot.slane %v3588_v24, %v6584_v5 }
 0x3c7   : > { %v3624_v48 = vrot.slane %v6592_v38, %v5428_v22 }
 0x3c8   : > { %v3307_v46 = vsel %vm3306_vm12, %v2466_v10, %v3305_v15  ;;  %v3628_v34 = vrot.slane %v6595_v32, %v5428_v22 }
 0x3d6   : > { %v4801_v51 = vpop.permute.xlu0 %4800 }
 0x3d7   : > { %v4803_v63 = vunpack.i.h.bf16 %v4801_v51  ;;  %v4802_v3 = vunpack.i.l.bf16 %v4801_v51  ;;  %v3640_v51 = vrot.slane %v6601_v6, %v5428_v22 }
 0x3d9   : > { %v3051_v50 = vsel %vm2410_vm1, %v4903_v41, %v4803_v63  ;;  %v3050_v11 = vsel %vm2410_vm1, %v4904_v28, %v4802_v3  ;;  %v3662_v28 = vsub.f32 %v3628_v34, %v6245_v53 }
 0x3da   : > { %v3056_v36 = vpack.c.bf16 %v3051_v50, %v3050_v11  ;;  %v3311_v16 = vpop.permute.xlu0 %3310  ;;  %v3661_v50 = vsub.f32 %v3624_v48, %v6278_v26  ;;  %v3644_v11 = vrot.slane %v6604_v52, %v5428_v22  ;;  %v4844_v26 = vld [vmem:[%s7144_s12 + $0x8] sm:$0xff]  }
 0x3db   : > { %v3313_v43 = vsel %vm2410_vm1, %v3307_v46, %v3311_v16  ;;  %v3670_v61 = vand.u32 2147483647, %v3662_v28  ;;  %v4845_v46 = vld [vmem:[%s7144_s12 + $0x10] sm:$0xff]   ;;  %v3618_v28 = vcombine.high %v6601_v6, %v6601_v6 }
 0x3dc   : > { %4620 = vmatprep.mubr.msk.bf16.mxu0 %vm2763_vm4, %v3056_v36  ;;  %v3314_v40 = vpack.c.bf16 %v3313_v43, %v3313_v43  ;;  %v3665_v36 = vsub.f32 %v3640_v51, %v6433_v59  ;;  %v3669_v54 = vand.u32 2147483647, %v3661_v50 }
 0x3de   : > { %v4806_v19 = vpop.permute.xlu1 %4805  ;;  %v3673_v53 = vand.u32 2147483647, %v3665_v36 }
 0x3df   : > { %v4808_v30 = vunpack.i.h.bf16 %v4806_v19  ;;  %v4807_v31 = vunpack.i.l.bf16 %v4806_v19  ;;  %v3666_v19 = vsub.f32 %v3644_v11, %v6388_v20 }
 0x3e1   : > { %v3053_v17 = vsel %vm2410_vm1, %v4905_v42, %v4808_v30  ;;  %v3052_v14 = vsel %vm2410_vm1, %v4906_v58, %v4807_v31  ;;  %vm2936_vm1 = vcmask 523264   ;;  %v4809_v42 = vpack.i.bf16 %v3670_v61, %v3669_v54 }
 0x3e2   : > { %v3057_v13 = vpack.c.bf16 %v3053_v17, %v3052_v14  ;;  %v3674_v17 = vand.u32 2147483647, %v3666_v19 }
 0x3e3   : > { %4810 = vrot.lane.b32.xlu1 %v4809_v42, %s4925_s21 }
 0x3e4   : > { %4621 = vmatmul.mubr.msk.bf16.gmra.mrb[4].mxu0 %vm2763_vm4, %v3057_v13  ;;  %v4819_v20 = vpack.i.bf16 %v3674_v17, %v3673_v53 }
 0x3e5   : > { %4644 = vmatprep.mubr.msk.bf16.mxu0 %vm4926_vm13, %v7456_v23 }
 0x3e7   : > { %4820 = vrot.lane.b32.xlu1 %v4819_v20, %s4925_s21 }
 0x3ec   : > { %4645 = vmatmul.mubr.msk.bf16.vlgmr.msra.gmra.mrb[8].mxu0 %vm2763_vm4, %v3314_v40 }
 0x444   : > { %v4590_v57 = vpop.f32.mrb[0].mxu1 }
 0x445   : > { %v2863_v49 = vadd.f32 %v4590_v57, %v4481_v25  ;;  %v2854_v62 = vpop.f32.mrb[1].mxu1 }
 0x446   : > { %v2855_v4 = vadd.f32 %v4481_v25, %v2854_v62  ;;  %v4591_v47 = vpop.f32.mrb[2].mxu1 }
 0x447   : > { %v2866_v37 = vadd.f32 %v4591_v47, %v4481_v25  ;;  %v2857_v63 = vpop.f32.mrb[3].mxu1  ;;  %v2887_v35 = vmax.f32 %v2863_v49, 0.0 }
 0x448   : > { %v2858_v3 = vadd.f32 %v4481_v25, %v2857_v63  ;;  %v2885_v8 = vmax.f32 %v2855_v4, 0.0  ;;  %v4848_v63 = vld [vmem:[%s7148_s16 + $0x8] sm:$0xff]  }
 0x449   : > { %v2888_v29 = vmax.f32 %v2866_v37, 0.0  ;;  %v4847_v37 = vld [vmem:[%s7148_s16] sm:$0xff]  }
 0x44a   : > { %v2886_v41 = vmax.f32 %v2858_v3, 0.0  ;;  %v4849_v3 = vld [vmem:[%s7148_s16 + $0x10] sm:$0xff]  }
 0x44b   : > { %v2894_v7 = vpack.c.bf16 %v2888_v29, %v2887_v35  ;;  %v3617_v35 = vcombine.high %v6592_v38, %v6592_v38  ;;  %v3619_v29 = vcombine.high %v6595_v32, %v6595_v32  ;;  %v3620_v38 = vcombine.high %v6604_v52, %v6604_v52 }
 0x44c   : > { %v2893_v21 = vpack.c.bf16 %v2886_v41, %v2885_v8  ;;  %v4594_v1 = vpop.f32.mrb[4].mxu1  ;;  %v4850_v8 = vld [vmem:[%s7148_s16 + $0x18] sm:$0xff]   ;;  %v4533_v41 = vld [vmem:[#allocation2] ss:$0 sm:$0xff]  ;;  %v3648_v32 = vrot.slane %v3618_v28, %v5428_v22 }
 0x44d   : > { %v2879_v30 = vadd.f32 %v4594_v1, %v4481_v25  ;;  %v2870_v31 = vpop.f32.mrb[5].mxu1  ;;  %v3632_v50 = vrot.slane %v3617_v35, %v5428_v22  ;;  %3883 = vperm.xlu1 %4829, %v4533_v41   ;;  %v3636_v11 = vrot.slane %v3619_v29, %v5428_v22  ;;  %v3652_v54 = vrot.slane %v3620_v38, %v5428_v22 }
 0x44e   : > { %v2871_v10 = vadd.f32 %v4481_v25, %v2870_v31  ;;  %v4595_v15 = vpop.f32.mrb[6].mxu1  ;;  %4604 = vmatprep.mubr.msk.bf16.mxu1 %vm2936_vm1, %v2893_v21  ;;  %v3667_v19 = vsub.f32 %v3648_v32, %v6441_v12 }
 0x44f   : > { %v2882_v59 = vadd.f32 %v4595_v15, %v4481_v25  ;;  %v2873_v58 = vpop.f32.mrb[7].mxu1  ;;  %4605 = vmatmul.mubr.msk.bf16.vlgmr.msra.gmra.mrb[8].mxu1 %vm2936_vm1, %v2894_v7  ;;  %v2891_v13 = vmax.f32 %v2879_v30, 0.0  ;;  %v3663_v7 = vsub.f32 %v3632_v50, %v6493_v0  ;;  %v3664_v36 = vsub.f32 %v3636_v11, %v6374_v27 }
 0x450   : > { %v2874_v14 = vadd.f32 %v4481_v25, %v2873_v58  ;;  %4625 = vmatpush3.bf16.msra.mxu1 %v6561_v39  ;;  %v2889_v43 = vmax.f32 %v2871_v10, 0.0  ;;  %v4846_v39 = vld [vmem:[%s7144_s12 + $0x18] sm:$0xff]   ;;  %v3668_v6 = vsub.f32 %v3652_v54, %v6458_v56  ;;  %v3675_v52 = vand.u32 2147483647, %v3667_v19  ;;  %v4514_v56 = vld [vmem:[%s7147_s15] ss:$0 sm:$0xff] }
 0x451   : > { %v2892_v16 = vmax.f32 %v2882_v59, 0.0  ;;  %4626 = vmatprep.subr.bf16.mxu1 %v4844_v26  ;;  %v3671_v21 = vand.u32 2147483647, %v3663_v7  ;;  %v3672_v1 = vand.u32 2147483647, %v3664_v36 }
 0x452   : > { %v2890_v40 = vmax.f32 %v2874_v14, 0.0  ;;  %v3676_v30 = vand.u32 2147483647, %v3668_v6 }
 0x453   : > { %v2896_v44 = vpack.c.bf16 %v2892_v16, %v2891_v13  ;;  %v4814_v61 = vpack.i.bf16 %v3672_v1, %v3671_v21 }
 0x454   : > { %v2895_v55 = vpack.c.bf16 %v2890_v40, %v2889_v43  ;;  %4627 = vmatpush3.bf16.msra.mxu1 %v4844_v26  ;;  %v4824_v31 = vpack.i.bf16 %v3676_v30, %v3675_v52 }
 0x455   : > { %4628 = vmatprep.subr.bf16.mxu1 %v4845_v46  ;;  %4815 = vrot.lane.b32.xlu0 %v4814_v61, %s4925_s21 }
 0x456   : > { %4608 = vmatprep.mubr.msk.bf16.mxu1 %vm2936_vm1, %v2895_v55 }
 0x457   : > { %4609 = vmatmul.mubr.msk.bf16.gmra.mrb[12].mxu1 %vm2936_vm1, %v2896_v44 }
 0x458   : > { %4629 = vmatpush3.bf16.msra.mxu1 %v4845_v46 }
 0x459   : > { %4630 = vmatprep.subr.bf16.mxu1 %v4846_v39  ;;  %4825 = vrot.lane.b32.xlu0 %v4824_v31, %s4925_s21 }
 0x45c   : > { %4631 = vmatpush3.bf16.msra.mxu1 %v4846_v39 }
 0x45d   : > { %4648 = vmatprep.subr.bf16.mxu1 %v7456_v23 }
 0x489   : > { %v4618_v33 = vpop.f32.mrb[0].mxu0 }
 0x48a   : > { %v3136_v45 = vadd.f32 %v4618_v33, %v4498_v60  ;;  %v3127_v9 = vpop.f32.mrb[1].mxu0 }
 0x48b   : > { %v3128_v2 = vadd.f32 %v4498_v60, %v3127_v9  ;;  %v4619_v24 = vpop.f32.mrb[2].mxu0 }
 0x48c   : > { %v3139_v25 = vadd.f32 %v4619_v24, %v4498_v60  ;;  %v3130_v57 = vpop.f32.mrb[3].mxu0  ;;  %v3160_v62 = vmax.f32 %v3136_v45, 0.0 }
 0x48d   : > { %v3131_v49 = vadd.f32 %v4498_v60, %v3130_v57  ;;  %v3158_v34 = vmax.f32 %v3128_v2, 0.0 }
 0x48e   : > { %v3161_v48 = vmax.f32 %v3139_v25, 0.0 }
 0x48f   : > { %v3159_v4 = vmax.f32 %v3131_v49, 0.0 }
 0x490   : > { %v3167_v47 = vpack.c.bf16 %v3161_v48, %v3160_v62 }
 0x491   : > { %v3166_v51 = vpack.c.bf16 %v3159_v4, %v3158_v34 }
 0x493   : > { %4632 = vmatprep.mubr.msk.bf16.mxu1 %vm2936_vm1, %v3166_v51 }
 0x494   : > { %4633 = vmatmul.mubr.msk.bf16.vlgmr.msra.gmra.mrb[16].mxu1 %vm2936_vm1, %v3167_v47 }
 0x495   : > { %4649 = vmatpush3.bf16.msra.mxu1 %v4847_v37 }
 0x496   : > { %4650 = vmatprep.subr.bf16.mxu1 %v7456_v23 }
 0x499   : > { %4651 = vmatpush3.bf16.msra.mxu1 %v4848_v63 }
 0x49a   : > { %4652 = vmatprep.subr.bf16.mxu1 %v7456_v23 }
 0x49d   : > { %4653 = vmatpush3.bf16.msra.mxu1 %v4849_v3 }
 0x49e   : > { %4654 = vmatprep.subr.bf16.mxu1 %v7456_v23 }
 0x4a1   : > { %4655 = vmatpush3.bf16.msra.mxu1 %v4850_v8  ;;  %v4851_v8 = vld [vmem:[%s7150_s18] sm:$0xff]  }
 0x4a2   : > { %4660 = vmatprep.subr.bf16.mxu0 %v4851_v8 }
 0x4a3   : > { %4661 = vmatpush3.bf16.msra.mxu0 %v4851_v8 }
 0x4b7   : > { %v4622_v0 = vpop.f32.mrb[4].mxu0 }
 0x4b8   : > { %v3152_v27 = vadd.f32 %v4622_v0, %v4498_v60  ;;  %v3143_v26 = vpop.f32.mrb[5].mxu0 }
 0x4b9   : > { %v3144_v53 = vadd.f32 %v4498_v60, %v3143_v26  ;;  %v4623_v10 = vpop.f32.mrb[6].mxu0 }
 0x4ba   : > { %v3155_v15 = vadd.f32 %v4623_v10, %v4498_v60  ;;  %v3146_v42 = vpop.f32.mrb[7].mxu0  ;;  %v3164_v59 = vmax.f32 %v3152_v27, 0.0 }
 0x4bb   : > { %v3147_v17 = vadd.f32 %v4498_v60, %v3146_v42  ;;  %v3162_v12 = vmax.f32 %v3144_v53, 0.0  ;;  %v4489_v60 = vld [vmem:[%s7466_s4] ss:$0 sm:$0xff] }
 0x4bc   : > { %v3165_v58 = vmax.f32 %v3155_v15, 0.0 }
 0x4bd   : > { %v3163_v14 = vmax.f32 %v3147_v17, 0.0 }
 0x4be   : > { %v3169_v20 = vpack.c.bf16 %v3165_v58, %v3164_v59 }
 0x4bf   : > { %v3168_v13 = vpack.c.bf16 %v3163_v14, %v3162_v12  ;;  %v3375_v16 = vpop.f32.mrb[8].mxu0  ;;  %v4852_v12 = vld [vmem:[%s7150_s18 + $0x8] sm:$0xff]   ;;  %v4853_v14 = vld [vmem:[%s7150_s18 + $0x10] sm:$0xff]  }
 0x4c0   : > { %v3376_v46 = vadd.f32 %v4514_v56, %v3375_v16  ;;  %v4646_v43 = vpop.f32.mrb[9].mxu0  ;;  %4662 = vmatprep.subr.bf16.mxu0 %v4852_v12 }
 0x4c1   : > { %4636 = vmatprep.mubr.msk.bf16.mxu1 %vm2936_vm1, %v3168_v13  ;;  %v3378_v40 = vpop.f32.mrb[10].mxu0  ;;  %4663 = vmatpush3.bf16.msra.mxu0 %v4852_v12 }
 0x4c2   : > { %4637 = vmatmul.mubr.msk.bf16.gmra.mrb[20].mxu1 %vm2936_vm1, %v3169_v20  ;;  %v4647_v44 = vpop.f32.mrb[11].mxu0  ;;  %v3381_v55 = vmax.f32 %v3376_v46, 0.0  ;;  %4664 = vmatprep.subr.bf16.mxu0 %v4853_v14 }
 0x4c3   : > { %4656 = vmatprep.mubr.msk.bf16.mxu1 %vm4926_vm13, %v7456_v23 }
 0x4c4   : > { %v3382_v39 = vpack.c.bf16 %v3381_v55, %v3381_v55 }
 0x4c5   : > { %4665 = vmatpush3.bf16.msra.mxu0 %v4853_v14 }
 0x4ca   : > { %4657 = vmatmul.mubr.msk.bf16.vlgmr.msra.gmra.mrb[24].mxu1 %vm2936_vm1, %v3382_v39 }
 0x522   : > { %v4606_v33 = vpop.f32.mrb[8].mxu1 }
 0x523   : > { %v2983_v45 = vpop.f32.mrb[9].mxu1  ;;  %v6686_v25 = vadd.f32 %v4606_v33, %v4489_v60  ;;  %v6760_v33 = vld [vmem:[%s7145_s13] ss:$0 sm:$0xff] }
 0x524   : > { %v6684_v9 = vadd.f32 %v4489_v60, %v2983_v45  ;;  %v4607_v2 = vpop.f32.mrb[10].mxu1 }
 0x525   : > { %v2986_v24 = vpop.f32.mrb[11].mxu1  ;;  %v6691_v49 = vadd.f32 %v4607_v2, %v4489_v60  ;;  %v4037_v63 = vrot.slane %v6686_v25, 3  ;;  %v3970_v3 = vrot.slane %v6686_v25, 7 }
 0x526   : > { %v6688_v57 = vadd.f32 %v4489_v60, %v2986_v24  ;;  %v3968_v23 = vrot.slane %v6684_v9, 1  ;;  %v4034_v62 = vrot.slane %v6684_v9, 5  ;;  %v3985_v34 = vrot.slane %v6684_v9, 2 }
 0x527   : > { %v3972_v50 = vrot.slane %v6691_v49, 6  ;;  %v4039_v32 = vrot.slane %v6691_v49, 2  ;;  %v3989_v54 = vrot.slane %v6691_v49, 7 }
 0x528   : > { %v4035_v48 = vrot.slane %v6688_v57, 4  ;;  %v3986_v4 = vrot.slane %v6688_v57, 1  ;;  %v3969_v47 = vsel %vm3294_vm6, %v6688_v57, %v3968_v23 }
 0x529   : > { %v3971_v7 = vsel %vm3296_vm7, %v3970_v3, %v3969_v47 }
 0x52a   : > { %v4610_v51 = vpop.f32.mrb[12].mxu1  ;;  %v4036_v37 = vsel %vm3294_vm6, %v4035_v48, %v4034_v62  ;;  %v3987_v35 = vsel %vm3294_vm6, %v3986_v4, %v3985_v34  ;;  %v3973_v0 = vsel %vm3298_vm8, %v3972_v50, %v3971_v7 }
 0x52b   : > { %v6706_v29 = vadd.f32 %v4610_v51, %v4489_v60  ;;  %v2999_v41 = vpop.f32.mrb[13].mxu1  ;;  %v4038_v11 = vsel %vm3296_vm7, %v4037_v63, %v4036_v37  ;;  %v3988_v36 = vsel %vm3296_vm7, %v6686_v25, %v3987_v35 }
 0x52c   : > { %v6709_v28 = vadd.f32 %v4489_v60, %v2999_v41  ;;  %v4611_v38 = vpop.f32.mrb[14].mxu1  ;;  %v4040_v30 = vsel %vm3298_vm8, %v4039_v32, %v4038_v11  ;;  %v3990_v27 = vsel %vm3298_vm8, %v3989_v54, %v3988_v36 }
 0x52d   : > { %v6715_v21 = vadd.f32 %v4611_v38, %v4489_v60  ;;  %v3002_v1 = vpop.f32.mrb[15].mxu1  ;;  %v4044_v31 = vrot.slane %v6706_v29, 7  ;;  %v3978_v59 = vrot.slane %v6706_v29, 3  ;;  %v3995_v40 = vrot.slane %v6706_v29, 4 }
 0x52e   : > { %v6719_v61 = vadd.f32 %v4489_v60, %v3002_v1  ;;  %v4041_v19 = vrot.slane %v6709_v28, 1  ;;  %v3974_v6 = vrot.slane %v6709_v28, 5  ;;  %v3991_v52 = vrot.slane %v6709_v28, 6 }
 0x52f   : > { %v4046_v17 = vrot.slane %v6715_v21, 6  ;;  %v3980_v13 = vrot.slane %v6715_v21, 2  ;;  %v3997_v39 = vrot.slane %v6715_v21, 3 }
 0x530   : > { %v4042_v26 = vsel %vm3300_vm9, %v4041_v19, %v4040_v30  ;;  %v3975_v53 = vsel %vm3300_vm9, %v3974_v6, %v3973_v0  ;;  %v3976_v10 = vrot.slane %v6719_v61, 4  ;;  %v3992_v15 = vsel %vm3300_vm9, %v3991_v52, %v3990_v27 }
 0x531   : > { %v4043_v42 = vsel %vm3302_vm10, %v6719_v61, %v4042_v26  ;;  %v3993_v58 = vrot.slane %v6719_v61, 5 }
 0x532   : > { %v4045_v56 = vsel %vm3304_vm11, %v4044_v31, %v4043_v42  ;;  %v3977_v20 = vsel %vm3302_vm10, %v3976_v10, %v3975_v53 }
 0x533   : > { %v4047_v16 = vsel %vm3306_vm12, %v4046_v17, %v4045_v56  ;;  %v3979_v46 = vsel %vm3304_vm11, %v3978_v59, %v3977_v20  ;;  %v3994_v43 = vsel %vm3302_vm10, %v3993_v58, %v3992_v15 }
 0x534   : > { %4048 = vrot.lane.b32.xlu1 %v4047_v16, %s4925_s21  ;;  %v3981_v44 = vsel %vm3306_vm12, %v3980_v13, %v3979_v46  ;;  %v3996_v55 = vsel %vm3304_vm11, %v3995_v40, %v3994_v43 }
 0x535   : > { %3982 = vrot.lane.b32.xlu0 %v3981_v44, %s4925_s21  ;;  %v3998_v60 = vsel %vm3306_vm12, %v3997_v39, %v3996_v55 }
 0x539   : > { %3999 = vrot.lane.b32.xlu0 %v3998_v60, %s4928_s8 }
 0x567   : > { %v4634_v45 = vpop.f32.mrb[16].mxu1 }
 0x568   : > { %v3264_v2 = vadd.f32 %v4634_v45, %v6760_v33  ;;  %v3255_v24 = vpop.f32.mrb[17].mxu1 }
 0x569   : > { %v3256_v23 = vadd.f32 %v6760_v33, %v3255_v24  ;;  %v4635_v62 = vpop.f32.mrb[18].mxu1 }
 0x56a   : > { %v3267_v48 = vadd.f32 %v4635_v62, %v6760_v33  ;;  %v3258_v34 = vpop.f32.mrb[19].mxu1  ;;  %v4119_v4 = vrot.slane %v3264_v2, 7  ;;  %v4186_v47 = vrot.slane %v3264_v2, 3  ;;  %v4203_v51 = vrot.slane %v3264_v2, 4 }
 0x56b   : > { %v3259_v37 = vadd.f32 %v6760_v33, %v3258_v34  ;;  %v4134_v63 = vrot.slane %v3256_v23, 2  ;;  %v4117_v3 = vrot.slane %v3256_v23, 1  ;;  %v4183_v35 = vrot.slane %v3256_v23, 5 }
 0x56c   : > { %v4138_v8 = vrot.slane %v3267_v48, 7  ;;  %v4121_v41 = vrot.slane %v3267_v48, 6  ;;  %v4188_v50 = vrot.slane %v3267_v48, 2  ;;  %v4200_v38 = vrot.slane %v3256_v23, 6 }
 0x56d   : > { %v4135_v11 = vrot.slane %v3259_v37, 1  ;;  %v4118_v7 = vsel %vm3294_vm6, %v3259_v37, %v4117_v3  ;;  %v4184_v36 = vrot.slane %v3259_v37, 4  ;;  %v4201_v1 = vrot.slane %v3259_v37, 5 }
 0x56e   : > { %v4120_v32 = vsel %vm3296_vm7, %v4119_v4, %v4118_v7  ;;  %v4205_v54 = vrot.slane %v3267_v48, 3  ;;  %v4102_v19 = vrot.slane %v3259_v37, 7  ;;  %v4104_v6 = vrot.slane %v3264_v2, 6 }
 0x56f   : > { %v4136_v52 = vsel %vm3294_vm6, %v4135_v11, %v4134_v63  ;;  %v6770_v30 = vsel %vm3298_vm8, %v4121_v41, %v4120_v32  ;;  %v4185_v31 = vsel %vm3294_vm6, %v4184_v36, %v4183_v35  ;;  %v4202_v0 = vsel %vm3294_vm6, %v4201_v1, %v4200_v38  ;;  %v6820_v1 = vpop.permute.xlu1 %4810 }
 0x570   : > { %v4137_v27 = vsel %vm3296_vm7, %v3264_v2, %v4136_v52  ;;  %v4187_v26 = vsel %vm3296_vm7, %v4186_v47, %v4185_v31  ;;  %v4204_v53 = vsel %vm3296_vm7, %v4203_v51, %v4202_v0  ;;  %v4106_v10 = vrot.slane %v3267_v48, 5 }
 0x571   : > { %v6778_v15 = vsel %vm3298_vm8, %v4138_v8, %v4137_v27  ;;  %v6781_v42 = vsel %vm3298_vm8, %v4188_v50, %v4187_v26  ;;  %v6784_v17 = vsel %vm3298_vm8, %v4205_v54, %v4204_v53  ;;  %v4103_v59 = vsel %vm3294_vm6, %v4102_v19, %v3256_v23 }
 0x572   : > { %v4105_v58 = vsel %vm3296_vm7, %v4104_v6, %v4103_v59  ;;  %v4168_v12 = vrot.slane %v3256_v23, 4  ;;  %v4169_v14 = vrot.slane %v3259_v37, 3  ;;  %v4171_v20 = vrot.slane %v3264_v2, 2 }
 0x573   : > { %v6789_v56 = vsel %vm3298_vm8, %v4106_v10, %v4105_v58  ;;  %v4217_v13 = vrot.slane %v3256_v23, 7  ;;  %v4218_v16 = vrot.slane %v3259_v37, 6  ;;  %v4173_v43 = vrot.slane %v3267_v48, 1 }
 0x574   : > { %v4170_v46 = vsel %vm3294_vm6, %v4169_v14, %v4168_v12  ;;  %v4220_v40 = vrot.slane %v3264_v2, 5  ;;  %v4222_v44 = vrot.slane %v3267_v48, 4  ;;  %v4151_v60 = vrot.slane %v3256_v23, 3  ;;  %v6836_v14 = vpop.permute.xlu1 %4820 }
 0x575   : > { %v4172_v55 = vsel %vm3296_vm7, %v4171_v20, %v4170_v46  ;;  %v4219_v39 = vsel %vm3294_vm6, %v4218_v16, %v4217_v13  ;;  %v4152_v45 = vrot.slane %v3259_v37, 2  ;;  %v4154_v34 = vrot.slane %v3264_v2, 1  ;;  %v6841_v46 = vpop.permute.xlu0 %4815 }
 0x576   : > { %v6795_v24 = vsel %vm3298_vm8, %v4173_v43, %v4172_v55  ;;  %v4221_v62 = vsel %vm3296_vm7, %v4220_v40, %v4219_v39  ;;  %v4003_v3 = vrot.slane %v6688_v57, 2  ;;  %v4002_v23 = vrot.slane %v6684_v9, 3 }
 0x577   : > { %v6799_v4 = vsel %vm3298_vm8, %v4222_v44, %v4221_v62  ;;  %v4153_v47 = vsel %vm3294_vm6, %v4152_v45, %v4151_v60  ;;  %v4005_v35 = vrot.slane %v6686_v25, 1  ;;  %v4052_v2 = vrot.slane %v6688_v57, 5 }
 0x578   : > { %v4155_v51 = vsel %vm3296_vm7, %v4154_v34, %v4153_v47  ;;  %v4004_v37 = vsel %vm3294_vm6, %v4003_v3, %v4002_v23  ;;  %v4008_v41 = vrot.slane %v6709_v28, 7  ;;  %v4051_v50 = vrot.slane %v6684_v9, 6 }
 0x579   : > { %v6804_v63 = vsel %vm3298_vm8, %v3267_v48, %v4155_v51  ;;  %v4006_v8 = vsel %vm3296_vm7, %v4005_v35, %v4004_v37  ;;  %v4010_v11 = vrot.slane %v6719_v61, 6  ;;  %v4054_v7 = vrot.slane %v6686_v25, 4 }
 0x57a   : > { %v4053_v38 = vsel %vm3294_vm6, %v4052_v2, %v4051_v50  ;;  %v4007_v48 = vsel %vm3298_vm8, %v6691_v49, %v4006_v8  ;;  %v4058_v54 = vrot.slane %v6709_v28, 2  ;;  %v4069_v19 = vrot.slane %v6688_v57, 6 }
 0x57b   : > { %v4009_v36 = vsel %vm3300_vm9, %v4008_v41, %v4007_v48  ;;  %v4055_v32 = vsel %vm3296_vm7, %v4054_v7, %v4053_v38  ;;  %v4056_v6 = vrot.slane %v6691_v49, 3  ;;  %v4068_v31 = vrot.slane %v6684_v9, 7 }
 0x57c   : > { %v4011_v52 = vsel %vm3302_vm10, %v4010_v11, %v4009_v36  ;;  %v4012_v0 = vrot.slane %v6706_v29, 5  ;;  %v4060_v26 = vrot.slane %v6719_v61, 1  ;;  %v4071_v58 = vrot.slane %v6686_v25, 5 }
 0x57d   : > { %v4057_v27 = vsel %vm3298_vm8, %v4056_v6, %v4055_v32  ;;  %v4070_v10 = vsel %vm3294_vm6, %v4069_v19, %v4068_v31  ;;  %v4813_v12 = vunpack.i.h.bf16 %v6820_v1  ;;  %v4014_v20 = vrot.slane %v6715_v21, 4 }
 0x57e   : > { %v4059_v53 = vsel %vm3300_vm9, %v4058_v54, %v4057_v27  ;;  %v4013_v59 = vsel %vm3304_vm11, %v4012_v0, %v4011_v52  ;;  %v4823_v13 = vunpack.i.h.bf16 %v6836_v14  ;;  %v4822_v16 = vunpack.i.l.bf16 %v6836_v14 }
 0x57f   : > { %v4061_v43 = vsel %vm3302_vm10, %v4060_v26, %v4059_v53  ;;  %v4072_v40 = vsel %vm3296_vm7, %v4071_v58, %v4070_v10  ;;  %v4818_v55 = vunpack.i.h.bf16 %v6841_v46  ;;  %v4817_v39 = vunpack.i.l.bf16 %v6841_v46 }
 0x580   : > { %v6848_v60 = vsel %vm3306_vm12, %v4014_v20, %v4013_v59  ;;  %v4073_v45 = vrot.slane %v6691_v49, 4  ;;  %v4063_v47 = vrot.slane %v6715_v21, 7  ;;  %v4075_v51 = vrot.slane %v6709_v28, 3 }
 0x581   : > { %v4077_v3 = vrot.slane %v6719_v61, 2  ;;  %v6862_v35 = vsel %vm3304_vm11, %v6706_v29, %v4061_v43  ;;  %v4079_v8 = vrot.slane %v6706_v29, 1 }
 0x582   : > { %v4074_v2 = vsel %vm3298_vm8, %v4073_v45, %v4072_v40 }
 0x595   : > { %v4638_v44 = vpop.f32.mrb[20].mxu1 }
 0x596   : > { %v6852_v62 = vadd.f32 %v4638_v44, %v6760_v33  ;;  %v3271_v34 = vpop.f32.mrb[21].mxu1 }
 0x597   : > { %v6858_v23 = vadd.f32 %v6760_v33, %v3271_v34  ;;  %v4639_v37 = vpop.f32.mrb[22].mxu1 }
 0x598   : > { %v6867_v41 = vadd.f32 %v4639_v37, %v6760_v33  ;;  %v3274_v50 = vpop.f32.mrb[23].mxu1  ;;  %v4144_v38 = vrot.slane %v6852_v62, 4  ;;  %v4127_v48 = vrot.slane %v6852_v62, 3  ;;  %v4193_v11 = vrot.slane %v6852_v62, 7 }
 0x599   : > { %v6873_v7 = vadd.f32 %v6760_v33, %v3274_v50  ;;  %v4140_v36 = vrot.slane %v6858_v23, 6  ;;  %v4123_v32 = vrot.slane %v6858_v23, 5  ;;  %v4190_v54 = vrot.slane %v6858_v23, 1  ;;  %v4518_v33 = vld [vmem:[%s7149_s17] ss:$0 sm:$0xff] }
 0x59a   : > { %v4146_v19 = vrot.slane %v6867_v41, 3  ;;  %v4129_v6 = vrot.slane %v6867_v41, 2  ;;  %v4195_v52 = vrot.slane %v6867_v41, 6  ;;  %v4207_v31 = vrot.slane %v6858_v23, 2 }
 0x59b   : > { %v4141_v0 = vsel %vm3300_vm9, %v4140_v36, %v6778_v15  ;;  %v4142_v27 = vrot.slane %v6873_v7, 5  ;;  %v4124_v26 = vsel %vm3300_vm9, %v4123_v32, %v6770_v30  ;;  %v4125_v53 = vrot.slane %v6873_v7, 4 }
 0x59c   : > { %v4191_v10 = vsel %vm3300_vm9, %v4190_v54, %v6781_v42  ;;  %v4208_v59 = vsel %vm3300_vm9, %v4207_v31, %v6784_v17  ;;  %v4209_v58 = vrot.slane %v6873_v7, 1  ;;  %v4212_v20 = vrot.slane %v6867_v41, 7 }
 0x59d   : > { %v3459_v15 = vpop.f32.mrb[24].mxu1  ;;  %v4143_v43 = vsel %vm3302_vm10, %v4142_v27, %v4141_v0  ;;  %v4126_v30 = vsel %vm3302_vm10, %v4125_v53, %v4124_v26  ;;  %v4192_v40 = vsel %vm3302_vm10, %v6873_v7, %v4191_v10  ;;  %v4108_v42 = vrot.slane %v6858_v23, 4 }
 0x59e   : > { %v3460_v44 = vadd.f32 %v4518_v33, %v3459_v15  ;;  %v4658_v17 = vpop.f32.mrb[25].mxu1  ;;  %v4145_v45 = vsel %vm3304_vm11, %v4144_v38, %v4143_v43  ;;  %v4128_v34 = vsel %vm3304_vm11, %v4127_v48, %v4126_v30  ;;  %v4194_v37 = vsel %vm3304_vm11, %v4193_v11, %v4192_v40 }
 0x59f   : > { %v3462_v50 = vpop.f32.mrb[26].mxu1  ;;  %v4147_v36 = vsel %vm3306_vm12, %v4146_v19, %v4145_v45  ;;  %v4130_v32 = vsel %vm3306_vm12, %v4129_v6, %v4128_v34  ;;  %v4196_v54 = vsel %vm3306_vm12, %v4195_v52, %v4194_v37  ;;  %v4210_v31 = vsel %vm3302_vm10, %v4209_v58, %v4208_v59 }
 0x5a0   : > { %3465 = vst.msk [vmem:[%s892_s2] sm:$0xff] %vm2763_vm4, %v3460_v44  ;;  %v3467_v0 = vcombine.high %v3460_v44, %v3460_v44  ;;  %v3474_v33 = vrot.slane %v3460_v44, %v6584_v5  ;;  %v4659_v27 = vpop.f32.mrb[27].mxu1  ;;  %4148 = vrot.lane.b32.xlu0 %v4147_v36, %s4928_s8  ;;  %4131 = vrot.lane.b32.xlu1 %v4130_v32, %s4925_s21  ;;  %v4110_v48 = vrot.slane %v6873_v7, 3  ;;  %v4112_v6 = vrot.slane %v6852_v62, 2 }
 0x5a1   : > { %v4211_v38 = vsel %vm3304_vm11, %v6852_v62, %v4210_v31  ;;  %v4076_v19 = vsel %vm3300_vm9, %v4075_v51, %v4074_v2  ;;  %v4109_v52 = vsel %vm3300_vm9, %v4108_v42, %v6789_v56  ;;  %v4114_v58 = vrot.slane %v6867_v41, 1 }
 0x5a2   : > { %v4213_v11 = vsel %vm3306_vm12, %v4212_v20, %v4211_v38  ;;  %v3481_v26 = vrot.slane %v3467_v0, %v6584_v5  ;;  %v3482_v53 = vcombine.high %v3474_v33, %v3474_v33  ;;  %v3490_v10 = vrot.slane %v3474_v33, %v6584_v5 }
 0x5a3   : > { %v4111_v59 = vsel %vm3302_vm10, %v4110_v48, %v4109_v52  ;;  %v4175_v51 = vsel %vm3300_vm9, %v6858_v23, %v6795_v24  ;;  %v4176_v2 = vrot.slane %v6873_v7, 7  ;;  %v4078_v24 = vsel %vm3302_vm10, %v4077_v3, %v4076_v19 }
 0x5a4   : > { %v4113_v15 = vsel %vm3304_vm11, %v4112_v6, %v4111_v59  ;;  %v3483_v20 = vcombine.high %v3481_v26, %v3481_v26  ;;  %v3497_v56 = vrot.slane %v3481_v26, %v6584_v5  ;;  %v3504_v43 = vrot.slane %v3482_v53, %v6584_v5  ;;  %4016 = vrot.lane.b32.xlu0 %v6848_v60, %s4929_s29 }
 0x5a5   : > { %v3512_v30 = vcombine.high %v3490_v10, %v3490_v10  ;;  %v3519_v40 = vrot.slane %v3490_v10, %v5428_v22  ;;  %4197 = vrot.lane.b32.xlu1 %v4196_v54, %s4925_s21  ;;  %v6944_v42 = vsel %vm3306_vm12, %v4114_v58, %v4113_v15  ;;  %v4177_v44 = vsel %vm3302_vm10, %v4176_v2, %v4175_v51  ;;  %s4536_s21 = sshll.u32 %s7471_s30, 4 }
 0x5a6   : > { %v3511_v17 = vrot.slane %v3483_v20, %v6584_v5  ;;  %v3513_v45 = vcombine.high %v3497_v56, %v3497_v56  ;;  %v3514_v34 = vcombine.high %v3504_v43, %v3504_v43  ;;  %v3523_v37 = vrot.slane %v3504_v43, %v5428_v22  ;;  %s888_s26 = scalar_lea.vmem %s7154_s22, %s4536_s21 }
 0x5a7   : > { %v3527_v60 = vrot.slane %v3512_v30, %v5428_v22  ;;  %v3535_v50 = vrot.slane %v3497_v56, %v5428_v22  ;;  %v3556_v36 = vsub.f32 %v3519_v40, %v6684_v9  ;;  %v4064_v3 = vsel %vm3306_vm12, %v4063_v47, %v6862_v35 }
 0x5a8   : > { %v3515_v32 = vcombine.high %v3511_v17, %v3511_v17  ;;  %v3531_v54 = vrot.slane %v3514_v34, %v5428_v22  ;;  %v3539_v5 = vrot.slane %v3511_v17, %v5428_v22  ;;  %v4080_v31 = vsel %vm3304_vm11, %v4079_v8, %v4078_v24  ;;  %v4826_v24 = vpop.permute.xlu0 %4825 }
 0x5a9   : > { %v3543_v0 = vrot.slane %v3513_v45, %v5428_v22  ;;  %v3557_v33 = vsub.f32 %v3523_v37, %v6688_v57  ;;  %v3560_v27 = vsub.f32 %v3535_v50, %v6709_v28  ;;  %v3558_v38 = vsub.f32 %v3527_v60, %v6686_v25  ;;  %4065 = vrot.lane.b32.xlu1 %v4064_v3, %s4928_s8 }
 0x5aa   : > { %v3564_v47 = vand.u32 2147483647, %v3556_v36  ;;  %v3561_v35 = vsub.f32 %v3539_v5, %v6719_v61  ;;  %v3559_v48 = vsub.f32 %v3531_v54, %v6691_v49  ;;  %v3547_v19 = vrot.slane %v3515_v32, %v5428_v22 }
 0x5ab   : > { %v4812_v6 = vunpack.i.l.bf16 %v6820_v1  ;;  %v3568_v8 = vand.u32 2147483647, %v3560_v27  ;;  %v3566_v52 = vand.u32 2147483647, %v3558_v38  ;;  %v3565_v26 = vand.u32 2147483647, %v3557_v33 }
 0x5ac   : > { %v3569_v53 = vand.u32 2147483647, %v3561_v35  ;;  %v3567_v10 = vand.u32 2147483647, %v3559_v48  ;;  %v4081_v59 = vsel %vm3306_vm12, %v6715_v21, %v4080_v31  ;;  %v3562_v58 = vsub.f32 %v3543_v0, %v6706_v29  ;;  %v3983_v48 = vpop.permute.xlu0 %3982 }
 0x5ad   : > { %v3563_v15 = vsub.f32 %v3547_v19, %v6715_v21  ;;  %4214 = vrot.lane.b32.xlu1 %v4213_v11, %s4928_s8  ;;  %v4178_v51 = vrot.slane %v6852_v62, 6  ;;  %v4180_v22 = vrot.slane %v6867_v41, 5  ;;  %v3713_v2 = vsel %vm2763_vm4, %v3568_v8, %v4822_v16 }
 0x5ae   : > { %v3714_v20 = vsel %vm2763_vm4, %v3569_v53, %v4823_v13  ;;  %v3711_v56 = vsel %vm2763_vm4, %v3566_v52, %v4817_v39  ;;  %v3712_v11 = vsel %vm2763_vm4, %v3567_v10, %v4818_v55  ;;  %v3709_v30 = vsel %vm2763_vm4, %v3564_v47, %v4812_v6  ;;  %v7032_v47 = vpop.permute.xlu1 %3883 }
 0x5af   : > { %v3718_v43 = vpack.c.bf16 %v3712_v11, %v3711_v56  ;;  %v3710_v40 = vsel %vm2763_vm4, %v3565_v26, %v4813_v12  ;;  %v4179_v16 = vsel %vm3304_vm11, %v4178_v51, %v4177_v44  ;;  %v3719_v14 = vpack.c.bf16 %v3714_v20, %v3713_v2 }
 0x5b0   : > { %v3717_v13 = vpack.c.bf16 %v3710_v40, %v3709_v30  ;;  %v6995_v17 = vsel %vm3306_vm12, %v4180_v22, %v4179_v16  ;;  %v4224_v39 = vrot.slane %v6858_v23, 3  ;;  %v4828_v46 = vunpack.i.h.bf16 %v4826_v24  ;;  %v4000_v10 = vpop.permute.xlu0 %3999 }
 0x5b1   : > { %4082 = vrot.lane.b32.xlu1 %v4081_v59, %s4929_s29  ;;  %v4226_v55 = vrot.slane %v6873_v7, 2  ;;  %v4157_v45 = vrot.slane %v6858_v23, 7  ;;  %v3571_v1 = vand.u32 2147483647, %v3563_v15  ;;  %v4228_v44 = vrot.slane %v6852_v62, 1 }
 0x5b2   : > { %4666 = vmatprep.mubr.msk.bf16.mxu0 %vm2807_vm5, %v3717_v13  ;;  %v4225_v12 = vsel %vm3300_vm9, %v4224_v39, %v6799_v4  ;;  %v4159_v34 = vrot.slane %v6873_v7, 6  ;;  %v4827_v37 = vunpack.i.l.bf16 %v4826_v24  ;;  %v4161_v23 = vrot.slane %v6852_v62, 5  ;;  %v4049_v26 = vpop.permute.xlu1 %4048 }
 0x5b3   : > { %4667 = vmatmul.mubr.msk.bf16.vlgmr.msra.gmra.mrb[12].mxu0 %vm2807_vm5, %v3718_v43  ;;  %v4227_v60 = vsel %vm3302_vm10, %v4226_v55, %v4225_v12  ;;  %v4158_v50 = vsel %vm3300_vm9, %v4157_v45, %v6804_v63  ;;  %v3570_v36 = vand.u32 2147483647, %v3562_v58  ;;  %v4163_v32 = vrot.slane %v6867_v41, 4 }
 0x5b4   : > { %4670 = vmatprep.mubr.msk.bf16.mxu0 %vm2807_vm5, %v3719_v14  ;;  %v4229_v3 = vsel %vm3304_vm11, %v4228_v44, %v4227_v60  ;;  %v4160_v4 = vsel %vm3302_vm10, %v4159_v34, %v4158_v50  ;;  %v3716_v5 = vsel %vm2763_vm4, %v3571_v1, %v4828_v46  ;;  %v3953_v0 = vrot.slane %v6688_v57, 7 }
 0x5b5   : > { %v7017_v7 = vsel %vm3306_vm12, %v6867_v41, %v4229_v3  ;;  %v4162_v54 = vsel %vm3304_vm11, %v4161_v23, %v4160_v4  ;;  %v3715_v62 = vsel %vm2763_vm4, %v3570_v36, %v4827_v37  ;;  %v3955_v41 = vrot.slane %v6686_v25, 6  ;;  %v4532_v36 = vld [vmem:[%s7152_s20] ss:$0 sm:$0xff] }
 0x5b6   : > { %v7022_v63 = vsel %vm3306_vm12, %v4163_v32, %v4162_v54  ;;  %v3720_v31 = vpack.c.bf16 %v3716_v5, %v3715_v62  ;;  %v3954_v33 = vsel %vm3294_vm6, %v3953_v0, %v6684_v9  ;;  %v3959_v27 = vrot.slane %v6709_v28, 4 }
 0x5b7   : > { %v3956_v38 = vsel %vm3296_vm7, %v3955_v41, %v3954_v33  ;;  %v3957_v35 = vrot.slane %v6691_v49, 5  ;;  %v3961_v19 = vrot.slane %v6719_v61, 3  ;;  %v4020_v52 = vrot.slane %v6688_v57, 3 }
 0x5b8   : > { %v4019_v59 = vrot.slane %v6684_v9, 4  ;;  %v3963_v58 = vrot.slane %v6706_v29, 2  ;;  %v4022_v22 = vrot.slane %v6686_v25, 2  ;;  %v3965_v2 = vrot.slane %v6715_v21, 1 }
 0x5b9   : > { %v3958_v6 = vsel %vm3298_vm8, %v3957_v35, %v3956_v38  ;;  %v4024_v30 = vrot.slane %v6691_v49, 1  ;;  %v4027_v14 = vrot.slane %v6719_v61, 7  ;;  %v4029_v45 = vrot.slane %v6706_v29, 6  ;;  %v4524_v29 = vld [vmem:[%s7151_s19] ss:$0 sm:$0xff] }
 0x5ba   : > { %v3960_v8 = vsel %vm3300_vm9, %v3959_v27, %v3958_v6  ;;  %v4021_v15 = vsel %vm3294_vm6, %v4020_v52, %v4019_v59  ;;  %v4031_v12 = vrot.slane %v6715_v21, 5 }
 0x5bb   : > { %4671 = vmatmul.mubr.msk.bf16.gmra.mrb[16].mxu0 %vm2807_vm5, %v3720_v31  ;;  %v3962_v53 = vsel %vm3302_vm10, %v3961_v19, %v3960_v8  ;;  %v4023_v11 = vsel %vm3296_vm7, %v4022_v22, %v4021_v15 }
 0x5bc   : > { %v3964_v51 = vsel %vm3304_vm11, %v3963_v58, %v3962_v53  ;;  %v4025_v16 = vsel %vm3298_vm8, %v4024_v30, %v4023_v11 }
 0x5bd   : > { %v3966_v9 = vsel %vm3306_vm12, %v3965_v2, %v3964_v51  ;;  %v4026_v39 = vsel %vm3300_vm9, %v6709_v28, %v4025_v16 }
 0x5be   : > { %v4085_v25 = vsel %vm2763_vm4, %v3966_v9, %v3983_v48  ;;  %v4028_v46 = vsel %vm3302_vm10, %v4027_v14, %v4026_v39 }
 0x5bf   : > { %v4086_v40 = vsel %vm2936_vm1, %v4085_v25, %v4000_v10  ;;  %v4030_v1 = vsel %vm3304_vm11, %v4029_v45, %v4028_v46 }
 0x5c0   : > { %v4032_v34 = vsel %vm3306_vm12, %v4031_v12, %v4030_v1 }
 0x612   : > { %v4149_v20 = vpop.permute.xlu0 %4148  ;;  %v4132_v56 = vpop.permute.xlu1 %4131 }
 0x613   : > { %v4234_v57 = vsel %vm2763_vm4, %v6944_v42, %v4132_v56 }
 0x614   : > { %v7052_v43 = vsel %vm2936_vm1, %v4234_v57, %v4149_v20 }
 0x616   : > { %v4017_v42 = vpop.permute.xlu0 %4016 }
 0x617   : > { %v4088_v24 = vsel %vm4087_vm14, %v4086_v40, %v4017_v42  ;;  %v4198_v13 = vpop.permute.xlu1 %4197 }
 0x618   : > { %4092 = vst [vmem:[%s888_s26] sm:$0xff] %v4088_v24  ;;  %v4237_v49 = vsel %vm2763_vm4, %v6995_v17, %v4198_v13  ;;  %v4089_v17 = vsel %vm2763_vm4, %v4032_v34, %v4049_v26  ;;  %v7467_v24 = vlaneseq }
 0x61a   : > { %v3903_v13 = vand.u32 127, %v7467_v24 }
 0x61b   : > { %v4066_v55 = vpop.permute.xlu1 %4065 }
 0x61c   : > { %v4090_v37 = vsel %vm2936_vm1, %v4089_v17, %v4066_v55  ;;  %v3906_v46 = vsub.s32 %v3903_v13, %v7464_v18 }
 0x61f   : > { %v4215_v61 = vpop.permute.xlu1 %4214 }
 0x620   : > { %v7074_v44 = vsel %vm2936_vm1, %v4237_v49, %v4215_v61 }
 0x623   : > { %v4083_v28 = vpop.permute.xlu1 %4082 }
 0x624   : > { %v4091_v60 = vsel %vm4087_vm14, %v4090_v37, %v4083_v28 }
 0x625   : > { %4093 = vst [vmem:[%s888_s26 + $0x8] sm:$0xff] %v4091_v60 }
 0x686   : > { %v4668_v50 = vpop.f32.mrb[12].mxu0 }
 0x687   : > { %v3807_v21 = vadd.f32 %v4668_v50, %v4524_v29  ;;  %v3798_v23 = vpop.f32.mrb[13].mxu0 }
 0x688   : > { %v3799_v3 = vadd.f32 %v4524_v29, %v3798_v23  ;;  %v4669_v4 = vpop.f32.mrb[14].mxu0 }
 0x689   : > { %v3831_v32 = vmax.f32 %v3807_v21, 0.0  ;;  %v3810_v54 = vadd.f32 %v4669_v4, %v4524_v29  ;;  %v3801_v5 = vpop.f32.mrb[15].mxu0 }
 0x68a   : > { %v3829_v62 = vmax.f32 %v3799_v3, 0.0  ;;  %v3802_v31 = vadd.f32 %v4524_v29, %v3801_v5 }
 0x68b   : > { %v3846_v0 = vmul.f32 %v4532_v36, %v3831_v32  ;;  %v3832_v33 = vmax.f32 %v3810_v54, 0.0 }
 0x68c   : > { %v3844_v41 = vmul.f32 %v4532_v36, %v3829_v62  ;;  %v3830_v27 = vmax.f32 %v3802_v31, 0.0 }
 0x68d   : > { %v3847_v38 = vmul.f32 %v4532_v36, %v3832_v33  ;;  %v3858_v35 = vsel %vm2763_vm4, %v3846_v0, 0.0 }
 0x68e   : > { %v4672_v48 = vpop.f32.mrb[16].mxu0  ;;  %3859 = vadd.xlane.f32.xlu0 %v3858_v35  ;;  %v3852_v19 = vsel %vm2763_vm4, %v3844_v41, 0.0  ;;  %v3845_v52 = vmul.f32 %v4532_v36, %v3830_v27 }
 0x68f   : > { %v3823_v6 = vadd.f32 %v4672_v48, %v4524_v29  ;;  %v3814_v8 = vpop.f32.mrb[17].mxu0  ;;  %3853 = vadd.xlane.f32.xlu1 %v3852_v19  ;;  %v3861_v15 = vsel %vm2763_vm4, %v3847_v38, 0.0 }
 0x690   : > { %v3815_v26 = vadd.f32 %v4524_v29, %v3814_v8  ;;  %v4673_v53 = vpop.f32.mrb[18].mxu0  ;;  %v3855_v56 = vsel %vm2763_vm4, %v3845_v52, 0.0 }
 0x691   : > { %v3835_v10 = vmax.f32 %v3823_v6, 0.0  ;;  %v3826_v59 = vadd.f32 %v4673_v53, %v4524_v29  ;;  %v3817_v58 = vpop.f32.mrb[19].mxu0 }
 0x692   : > { %v3833_v51 = vmax.f32 %v3815_v26, 0.0  ;;  %v3818_v22 = vadd.f32 %v4524_v29, %v3817_v58  ;;  %3862 = vadd.xlane.f32.xlu0 %v3861_v15 }
 0x693   : > { %v3850_v2 = vmul.f32 %v4532_v36, %v3835_v10  ;;  %v3836_v20 = vmax.f32 %v3826_v59, 0.0 }
 0x694   : > { %v3848_v57 = vmul.f32 %v4532_v36, %v3833_v51  ;;  %v3834_v9 = vmax.f32 %v3818_v22, 0.0 }
 0x695   : > { %v3851_v11 = vmul.f32 %v4532_v36, %v3836_v20  ;;  %v3870_v30 = vsel %vm2763_vm4, %v3850_v2, 0.0 }
 0x696   : > { %3856 = vadd.xlane.f32.xlu0 %v3855_v56  ;;  %3871 = vadd.xlane.f32.xlu1 %v3870_v30  ;;  %v3849_v25 = vmul.f32 %v4532_v36, %v3834_v9  ;;  %v3864_v42 = vsel %vm2763_vm4, %v3848_v57, 0.0 }
 0x697   : > { %v3873_v40 = vsel %vm2763_vm4, %v3851_v11, 0.0 }
 0x698   : > { %v3867_v16 = vsel %vm2763_vm4, %v3849_v25, 0.0 }
 0x69a   : > { %3874 = vadd.xlane.f32.xlu0 %v3873_v40  ;;  %3865 = vadd.xlane.f32.xlu1 %v3864_v42 }
 0x69e   : > { %3868 = vadd.xlane.f32.xlu0 %v3867_v16 }
 0x6ab   : > { %4231 = vrot.lane.b32.xlu1 %v7017_v7, %s4929_s29 }
 0x6b4   : > { %4165 = vrot.lane.b32.xlu0 %v7022_v63, %s4929_s29  ;;  %s897_s29 = scalar_lea.vmem %s7156_s24, %s4536_s21 }
 0x71b   : > { %v3860_v14 = vpop.xlane.xlu0 %3859 }
 0x71c   : > { %v3854_v49 = vpop.xlane.xlu1 %3853  ;;  %v3888_v45 = vadd.f32 %v7032_v47, %v3860_v14 }
 0x71d   : > { %v3886_v55 = vadd.f32 %v7032_v47, %v3854_v49 }
 0x71e   : > { %v3915_v17 = vrot.slane %v3888_v45, %v3906_v46 }
 0x71f   : > { %v3863_v39 = vpop.xlane.xlu0 %3862  ;;  %v3907_v7 = vrot.slane %v3886_v55, %v3906_v46 }
 0x720   : > { %v3889_v34 = vadd.f32 %v7032_v47, %v3863_v39 }
 0x722   : > { %v3919_v50 = vrot.slane %v3889_v34, %v3906_v46 }
 0x723   : > { %v3857_v1 = vpop.xlane.xlu0 %3856  ;;  %v3872_v12 = vpop.xlane.xlu1 %3871 }
 0x724   : > { %v3887_v61 = vadd.f32 %v7032_v47, %v3857_v1  ;;  %v3892_v21 = vadd.f32 %v7032_v47, %v3872_v12 }
 0x726   : > { %v3911_v63 = vrot.slane %v3887_v61, %v3906_v46  ;;  %v3931_v31 = vrot.slane %v3892_v21, %v3906_v46 }
 0x727   : > { %v3875_v37 = vpop.xlane.xlu0 %3874  ;;  %v3866_v28 = vpop.xlane.xlu1 %3865 }
 0x728   : > { %v3936_v60 = vsel %vm3294_vm6, %v3911_v63, %v3907_v7  ;;  %v3890_v18 = vadd.f32 %v7032_v47, %v3866_v28  ;;  %v3893_v4 = vadd.f32 %v7032_v47, %v3875_v37 }
 0x729   : > { %v3937_v29 = vsel %vm3296_vm7, %v3915_v17, %v3936_v60 }
 0x72a   : > { %v3923_v23 = vrot.slane %v3890_v18, %v3906_v46  ;;  %v3938_v32 = vsel %vm3298_vm8, %v3919_v50, %v3937_v29  ;;  %v3935_v41 = vrot.slane %v3893_v4, %v3906_v46 }
 0x72b   : > { %v3869_v36 = vpop.xlane.xlu0 %3868  ;;  %v4232_v3 = vpop.permute.xlu1 %4231 }
 0x72c   : > { %v3891_v54 = vadd.f32 %v7032_v47, %v3869_v36  ;;  %v4239_v5 = vsel %vm4087_vm14, %v7074_v44, %v4232_v3  ;;  %v3939_v0 = vsel %vm3300_vm9, %v3923_v23, %v3938_v32 }
 0x72d   : > { %4241 = vst [vmem:[%s897_s29 + $0x8] sm:$0xff] %v4239_v5 }
 0x72e   : > { %v3927_v62 = vrot.slane %v3891_v54, %v3906_v46 }
 0x72f   : > { %v4166_v33 = vpop.permute.xlu0 %4165 }
 0x730   : > { %v3940_v27 = vsel %vm3302_vm10, %v3927_v62, %v3939_v0  ;;  %v4236_v38 = vsel %vm4087_vm14, %v7052_v43, %v4166_v33 }
 0x731   : > { %v3941_v47 = vsel %vm3304_vm11, %v3931_v31, %v3940_v27  ;;  %4240 = vst [vmem:[%s897_s29] sm:$0xff] %v4236_v38 }
 0x732   : > { %v3942_v44 = vsel %vm3306_vm12, %v3935_v41, %v3941_v47 }
 0x733   : > { %3944 = vst.msk [vmem:[%s901_s7] sm:$0xff] %vm1585_vm0, %v3942_v44 }
 0x734 PF: > { %s38_s6 = sadd.s32 1, %s4913_s6  }
 0x735   : > { %p35_p5 = scmp.ge.s32.totalorder %s38_s6, 4  }
 0x737   :  { %37 = sbr.rel (!%p35_p5) target bundleno = 11 (0xb), region = 189 }

</bundles_post_ra>
